<compile_context>
chip_gen: v7x
topology: tpu7x:2x2x1
jax: 0.10.0
libtpu: 0.0.40
codegen_flags: <defaults>
</compile_context>

<pallas_src>
import functools
import math

import jax
import jax.numpy as jnp
import numpy as np
from jax import lax
from jax.experimental import pallas as pl
from jax.experimental.pallas import tpu as pltpu

# finite "minus infinity" so an all-masked tile can never make alpha/p NaN
_NEG_INIT = float(np.finfo(np.float32).min)


def _abmil_kernel(tile_n, tiles_per_core,
                  n_valid_ref,
                  x_ref, wa_ref, ba_ref, w1_ref, b1_ref, w2_ref, b2_ref,
                  m_out_ref, l_out_ref, acc_out_ref,
                  m_ref, l_ref, acc_ref):
    c = pl.program_id(0)          # core slice of the bag (parallel axis)
    t = pl.program_id(1)          # instance tile within the slice (reduction)

    @pl.when(t == 0)
    def _init():
        m_ref[...] = jnp.full(m_ref.shape, _NEG_INIT, jnp.float32)
        l_ref[...] = jnp.zeros(l_ref.shape, jnp.float32)
        acc_ref[...] = jnp.zeros(acc_ref.shape, jnp.float32)

    n_valid = n_valid_ref[0]

    # ---- streamed compute on this tile of instances -----------------------
    # x arrives f32 straight from HBM (no wrapper pre-pass); cast to bf16
    # right before the MXU matmul.
    x = x_ref[...].astype(jnp.bfloat16)                               # (TN, Din)
    feat_f32 = jnp.dot(x, wa_ref[...],
                       preferred_element_type=jnp.float32) + ba_ref[...]

    # Mask rows past the bag end (ragged last tile / fully-empty clamped tile
    # slots).  Kept unconditional: with the per-core split padded rows are not
    # confined to one last grid step, and the select is <1% of the tile work.
    tile_idx = c * tiles_per_core + t
    row_ids = tile_idx * tile_n + lax.broadcasted_iota(jnp.int32, (tile_n, 1), 0)
    valid = row_ids < n_valid                                          # (TN, 1)
    # single bf16 streamed copy of feat reused by matmul #2 and the pooling
    feat = jnp.where(valid, feat_f32, 0.0).astype(jnp.bfloat16)        # (TN, E)

    h = jnp.tanh(jnp.dot(feat, w1_ref[...],
                         preferred_element_type=jnp.float32) + b1_ref[...])
    # lane-dense attention scores (VPU mul + lane reduce; no 1-wide MXU column)
    scores = jnp.sum(h * w2_ref[...], axis=-1, keepdims=True) + b2_ref[...]
    scores = jnp.where(valid, scores, -jnp.inf)                        # (TN, 1)

    # ---- online softmax + attention-weighted pooling (f32 accumulators) ---
    m_prev = m_ref[...]
    m_new = jnp.maximum(m_prev, jnp.max(scores, axis=0, keepdims=True))
    alpha = jnp.exp(m_prev - m_new)
    p = jnp.exp(scores - m_new)                                        # 0 on masked rows
    l_ref[...] = alpha * l_ref[...] + jnp.sum(p, axis=0, keepdims=True)
    acc_ref[...] = alpha * acc_ref[...] + jnp.sum(p * feat, axis=0, keepdims=True)
    m_ref[...] = m_new

    @pl.when(t == pl.num_programs(1) - 1)
    def _finalize():
        # per-core softmax partials; the tiny flash-style merge + final divide
        # happen in the wrapper (needed anyway for the multi-core split).
        m_out_ref[0] = m_ref[...]
        l_out_ref[0] = l_ref[...]
        acc_out_ref[0] = acc_ref[...]


def _device_kind():
    try:
        return jax.devices()[0].device_kind.lower()
    except Exception:
        return ""


def _has_big_vmem():
    # v4/v5e/v5p/v6e TensorCores have 128 MiB VMEM; v7x has 64 MiB per core.
    return any(g in _device_kind() for g in ("v4", "v5", "v6"))


def choose_tile_n(n, input_dim, embed_dim):
    """Instance-tile size: as large as comfortably fits the per-generation
    VMEM budget (amortizes the ~0.35us per-grid-step overhead)."""
    big = _has_big_vmem()
    budget = (48 if big else 24) * 1024 * 1024
    clamp = 8192 if big else 4096
    # per-row working set: double-buffered f32 x tile + bf16/f32 feat & h temps
    bytes_per_row = 2 * 4 * input_dim + 12 * embed_dim
    tn = budget // max(bytes_per_row, 1)
    tn = int(max(8, min(clamp, (tn // 8) * 8)))
    return min(tn, max(8, ((n + 7) // 8) * 8))


def _build_abmil_call(din, e, tile_n, num_cores, tiles_per_core, num_tiles,
                      single_buffer_weights):
    kernel = functools.partial(_abmil_kernel, tile_n, tiles_per_core)

    # resident operands: block never changes, so one buffer is enough.
    resident = {"pipeline_mode": pl.Buffered(1)} if single_buffer_weights else {}
    const = lambda c, t, nv: (0, 0)

    def x_map(c, t, nv):
        # clamp so the (at most one) fully-empty trailing tile slot created by
        # an odd tile count split over 2 cores re-reads an in-bounds block;
        # its rows are masked in-kernel via row_ids >= n_valid.
        return (jnp.minimum(c * tiles_per_core + t, num_tiles - 1), 0)

    core_out = lambda c, t, nv: (c, 0, 0)

    vmem_limit = (80 if _has_big_vmem() else 48) * 1024 * 1024

    grid_spec = pltpu.PrefetchScalarGridSpec(
        num_scalar_prefetch=1,                      # n_valid (bag size) in SMEM
        grid=(num_cores, tiles_per_core),
        in_specs=[
            pl.BlockSpec((tile_n, din), x_map),                  # x tile (streamed)
            pl.BlockSpec((din, e), const, **resident),           # aggregator W
            pl.BlockSpec((1, e), const, **resident),             # aggregator b
            pl.BlockSpec((e, e), const, **resident),             # attention[0] W
            pl.BlockSpec((1, e), const, **resident),             # attention[0] b
            pl.BlockSpec((1, e), const, **resident),             # attention[2] W (row)
            pl.BlockSpec((1, 1), const, **resident),             # attention[2] b
        ],
        out_specs=[
            pl.BlockSpec((1, 1, 1), core_out),                   # per-core m
            pl.BlockSpec((1, 1, 1), core_out),                   # per-core l
            pl.BlockSpec((1, 1, e), core_out),                   # per-core acc
        ],
        scratch_shapes=[
            pltpu.VMEM((1, 1), jnp.float32),                     # running max m
            pltpu.VMEM((1, 1), jnp.float32),                     # running sum l
            pltpu.VMEM((1, e), jnp.float32),                     # running weighted feat
        ],
    )
    return pl.pallas_call(
        kernel,
        out_shape=(
            jax.ShapeDtypeStruct((num_cores, 1, 1), jnp.float32),
            jax.ShapeDtypeStruct((num_cores, 1, 1), jnp.float32),
            jax.ShapeDtypeStruct((num_cores, 1, e), jnp.float32),
        ),
        grid_spec=grid_spec,
        compiler_params=pltpu.CompilerParams(
            dimension_semantics=("parallel", "arbitrary"),       # cores x reduction
            vmem_limit_bytes=vmem_limit,
        ),
    )


def abmil_forward(x, params, *, tile_n=None, num_cores=2):
    """x: [B, N, Din] with B == 1.  Returns {'logits', 'Y_prob', 'Y_hat'}."""
    B, N, Din = x.shape
    assert B == 1, "reference module's `modify` requires batch size 1"
    assert N >= 1
    wa, ba, w1, b1, w2, b2, wc, bc = params
    E = wa.shape[1]

    if tile_n is None:
        tile_n = choose_tile_n(N, Din, E)
    assert tile_n % 8 == 0 and tile_n >= 8
    num_tiles = pl.cdiv(N, tile_n)
    num_cores = max(1, min(num_cores, num_tiles))
    tiles_per_core = pl.cdiv(num_tiles, num_cores)

    # x streamed exactly as provided: no whole-bag jnp.pad / bf16 pre-pass.
    x0 = x[0]
    wa_bf = wa.astype(jnp.bfloat16)                 # tiny one-time weight casts
    w1_bf = w1.astype(jnp.bfloat16)
    ba_f = ba.reshape(1, E).astype(jnp.float32)
    b1_f = b1.reshape(1, E).astype(jnp.float32)
    w2_row = w2.reshape(1, E).astype(jnp.float32)
    b2_11 = b2.reshape(1, 1).astype(jnp.float32)
    # bag size as a prefetched scalar: bags sharing the same tile count reuse
    # the same compiled kernel instead of recompiling per N.
    n_valid = jnp.array([N], dtype=jnp.int32)

    args = (n_valid, x0, wa_bf, ba_f, w1_bf, b1_f, w2_row, b2_11)

    def run(single_buffer_weights):
        call = _build_abmil_call(Din, E, tile_n, num_cores, tiles_per_core,
                                 num_tiles, single_buffer_weights)
        outs = call(*args)
        jax.block_until_ready(outs)
        return outs

    try:
        m_p, l_p, acc_p = run(True)
    except Exception:
        # pl.Buffered(1) single-buffering of the resident weights is not
        # supported by this JAX build; fall back to default double-buffering.
        m_p, l_p, acc_p = run(False)

    # ---- flash-style merge of the per-core softmax partials (tiny, in XLA) --
    m_p = m_p.reshape(num_cores, 1)
    l_p = l_p.reshape(num_cores, 1)
    acc_p = acc_p.reshape(num_cores, E)
    m_g = jnp.max(m_p, axis=0, keepdims=True)
    scale = jnp.exp(m_p - m_g)
    l_g = jnp.sum(scale * l_p, axis=0, keepdims=True)
    cls = jnp.sum(scale * acc_p, axis=0, keepdims=True) / l_g         # (1, E)

    # TODO(synk): self.modify() uses DownSample / MultiLevelFuse /
    # FeatureFreProcessing / InstanceMemory / InterventionOnline which are not
    # defined in the reference source; it is treated as identity on cls_token.

    logits = cls @ wc + bc                          # tiny 2-column classifier in XLA
    y_prob = jax.nn.softmax(logits, axis=1)
    y_hat = jnp.argmax(logits, axis=1)
    return {'logits': logits, 'Y_prob': y_prob, 'Y_hat': y_hat}


def reference_forward(x, params):
    """Pure-JAX f32 reference (same math as the PyTorch module, modify() = id)."""
    wa, ba, w1, b1, w2, b2, wc, bc = params
    feat = x[0] @ wa + ba                           # [N, E]
    s = jnp.tanh(feat @ w1 + b1) @ w2 + b2          # [N, 1]
    attn = jax.nn.softmax(s, axis=0)                # softmax over instances
    cls = attn.T @ feat                             # [1, E]
    return cls @ wc + bc                            # [1, 2]


def reference_forward_matched(x, params):
    """Reference with the same bf16 quantization points as the kernel (so the
    comparison tolerance can be tight enough to catch real regressions)."""
    wa, ba, w1, b1, w2, b2, wc, bc = params
    E = wa.shape[1]
    xb = x[0].astype(jnp.bfloat16)
    feat32 = jnp.dot(xb, wa.astype(jnp.bfloat16),
                     preferred_element_type=jnp.float32) + ba
    feat = feat32.astype(jnp.bfloat16)
    h = jnp.tanh(jnp.dot(feat, w1.astype(jnp.bfloat16),
                         preferred_element_type=jnp.float32) + b1)
    s = jnp.sum(h * w2.reshape(1, E), axis=-1, keepdims=True) + b2.reshape(1, 1)
    attn = jax.nn.softmax(s, axis=0)
    cls = jnp.sum(attn * feat.astype(jnp.float32), axis=0, keepdims=True)
    return cls @ wc + bc


def init_params(key, input_dim, embed_dim):
    """Deterministic Linear params (stored as [in, out]), PyTorch-style uniform."""
    def linear(k, fan_in, fan_out):
        kw, kb = jax.random.split(k)
        bound = 1.0 / math.sqrt(fan_in)
        w = jax.random.uniform(kw, (fan_in, fan_out), jnp.float32, -bound, bound)
        b = jax.random.uniform(kb, (1, fan_out), jnp.float32, -bound, bound)
        return w, b

    k0, k1, k2, k3 = jax.random.split(key, 4)
    wa, ba = linear(k0, input_dim, embed_dim)       # aggregator
    w1, b1 = linear(k1, embed_dim, embed_dim)       # attention[0]
    w2, b2 = linear(k2, embed_dim, 1)               # attention[2]  (K = 1)
    wc, bc = linear(k3, embed_dim, 2)               # classifier
    return (wa, ba, w1, b1, w2, b2, wc, bc)


if __name__ == "__main__":
    key = jax.random.PRNGKey(0)
    kx, kp = jax.random.split(key)

    # Lane-friendly small sizes; the bag size is NOT a tile multiple so the
    # in-kernel ragged-row masking path is exercised.
    input_dim, embed_dim = 128, 128
    B, N = 1, 1000
    x = jax.random.normal(kx, (B, N, input_dim), dtype=jnp.float32)
    params = init_params(kp, input_dim, embed_dim)

    ref_matched = reference_forward_matched(x, params)
    ref_f32 = reference_forward(x, params)

    # (a) 4 tiles -> clean 2-way core split with a ragged last tile,
    # (b) 3 tiles -> one fully-empty (clamped, fully-masked) tile slot on core 1,
    # (c) auto tile size -> whole bag in one tile on one core.
    for tn in (256, 384, None):
        out = abmil_forward(x, params, tile_n=tn)
        jax.block_until_ready(out['logits'])

        assert out['logits'].shape == (1, 2)
        assert out['Y_prob'].shape == (1, 2)
        assert out['Y_hat'].shape == (1,)

        # tight check vs the precision-matched reference ...
        np.testing.assert_allclose(np.asarray(out['logits']), np.asarray(ref_matched),
                                   rtol=2e-3, atol=2e-3)
        # ... plus a loose sanity bound vs the pure-f32 reference.
        np.testing.assert_allclose(np.asarray(out['logits']), np.asarray(ref_f32),
                                   rtol=1.5e-1, atol=1.5e-1)

    print("KERNEL_OK")
</pallas_src>

<mosaic_0001>
module attributes {stable_mosaic.version = 11 : i64} {
  func.func @_abmil_kernel(%arg0: i32, %arg1: i32, %arg2: memref<1xi32, #tpu.memory_space<smem>>, %arg3: memref<256x128xf32, #tpu.memory_space<vmem>>, %arg4: memref<128x128xbf16, #tpu.memory_space<vmem>>, %arg5: memref<1x128xf32, #tpu.memory_space<vmem>>, %arg6: memref<128x128xbf16, #tpu.memory_space<vmem>>, %arg7: memref<1x128xf32, #tpu.memory_space<vmem>>, %arg8: memref<1x128xf32, #tpu.memory_space<vmem>>, %arg9: memref<1x1xf32, #tpu.memory_space<vmem>>, %arg10: memref<1x1x1xf32, #tpu.memory_space<vmem>>, %arg11: memref<1x1x1xf32, #tpu.memory_space<vmem>>, %arg12: memref<1x1x128xf32, #tpu.memory_space<vmem>>, %arg13: memref<1x1xf32, #tpu.memory_space<vmem>>, %arg14: memref<1x1xf32, #tpu.memory_space<vmem>>, %arg15: memref<1x128xf32, #tpu.memory_space<vmem>>) attributes {dimension_semantics = [#tpu.dimension_semantics<parallel>, #tpu.dimension_semantics<arbitrary>], iteration_bounds = array<i64: 2, 2>, scalar_prefetch = 1 : i64, scratch_operands = 3 : i64, tpu.core_type = #tpu.core_type<tc>, window_params = [{transform_indices = @transform_0, window_bounds = array<i64: 256, 128>}, {pipeline_mode = #tpu.pipeline_mode<synchronous>, transform_indices = @transform_1, window_bounds = array<i64: 128, 128>}, {pipeline_mode = #tpu.pipeline_mode<synchronous>, transform_indices = @transform_2, window_bounds = array<i64: 1, 128>}, {pipeline_mode = #tpu.pipeline_mode<synchronous>, transform_indices = @transform_3, window_bounds = array<i64: 128, 128>}, {pipeline_mode = #tpu.pipeline_mode<synchronous>, transform_indices = @transform_4, window_bounds = array<i64: 1, 128>}, {pipeline_mode = #tpu.pipeline_mode<synchronous>, transform_indices = @transform_5, window_bounds = array<i64: 1, 128>}, {pipeline_mode = #tpu.pipeline_mode<synchronous>, transform_indices = @transform_6, window_bounds = array<i64: 1, 1>}, {transform_indices = @transform_7, window_bounds = array<i64: 1, 1, 1>}, {transform_indices = @transform_8, window_bounds = array<i64: 1, 1, 1>}, {transform_indices = @transform_9, window_bounds = array<i64: 1, 1, 128>}]} {
    %c0_i32 = arith.constant 0 : i32
    %0 = arith.cmpi eq, %arg1, %c0_i32 : i32
    %1 = arith.extui %0 : i1 to i32
    %c0_i32_0 = arith.constant 0 : i32
    %2 = arith.cmpi ne, %1, %c0_i32_0 : i32
    scf.if %2 {
      %cst_35 = arith.constant -3.40282347E+38 : f32
      %69 = vector.broadcast %cst_35 : f32 to vector<1x1xf32>
      %c0_36 = arith.constant 0 : index
      %c0_37 = arith.constant 0 : index
      %70 = vector.load %arg13[%c0_36, %c0_37] : memref<1x1xf32, #tpu.memory_space<vmem>>, vector<1x1xf32>
      tpu.vector_store %arg13[%c0_36, %c0_37], %69 {strides = array<i32>} : memref<1x1xf32, #tpu.memory_space<vmem>>, vector<1x1xf32>,
      %cst_38 = arith.constant 0.000000e+00 : f32
      %71 = vector.broadcast %cst_38 : f32 to vector<1x1xf32>
      %c0_39 = arith.constant 0 : index
      %c0_40 = arith.constant 0 : index
      %72 = vector.load %arg14[%c0_39, %c0_40] : memref<1x1xf32, #tpu.memory_space<vmem>>, vector<1x1xf32>
      tpu.vector_store %arg14[%c0_39, %c0_40], %71 {strides = array<i32>} : memref<1x1xf32, #tpu.memory_space<vmem>>, vector<1x1xf32>,
      %cst_41 = arith.constant 0.000000e+00 : f32
      %73 = vector.broadcast %cst_41 : f32 to vector<1x128xf32>
      %c0_42 = arith.constant 0 : index
      %c0_43 = arith.constant 0 : index
      %74 = vector.load %arg15[%c0_42, %c0_43] : memref<1x128xf32, #tpu.memory_space<vmem>>, vector<1x128xf32>
      tpu.vector_store %arg15[%c0_42, %c0_43], %73 {strides = array<i32>} : memref<1x128xf32, #tpu.memory_space<vmem>>, vector<1x128xf32>,
    } else {
    }
    %c0 = arith.constant 0 : index
    %3 = memref.load %arg2[%c0] : memref<1xi32, #tpu.memory_space<smem>>
    %c0_1 = arith.constant 0 : index
    %c0_2 = arith.constant 0 : index
    %4 = vector.load %arg3[%c0_1, %c0_2] : memref<256x128xf32, #tpu.memory_space<vmem>>, vector<256x128xf32>
    %5 = arith.truncf %4 : vector<256x128xf32> to vector<256x128xbf16>
    %c0_3 = arith.constant 0 : index
    %c0_4 = arith.constant 0 : index
    %6 = vector.load %arg4[%c0_3, %c0_4] : memref<128x128xbf16, #tpu.memory_space<vmem>>, vector<128x128xbf16>
    %cst = arith.constant dense<0.000000e+00> : vector<256x128xf32>
    %7 = tpu.matmul %5, %6, %cst {dimension_numbers = #tpu.dot_dimension_numbers<[1], [0], [0], [1], [0, 0, 1, 1], [], []>} : vector<256x128xbf16>, vector<128x128xbf16>, vector<256x128xf32> -> vector<256x128xf32>
    %c0_5 = arith.constant 0 : index
    %c0_6 = arith.constant 0 : index
    %8 = vector.load %arg5[%c0_5, %c0_6] : memref<1x128xf32, #tpu.memory_space<vmem>>, vector<1x128xf32>
    %9 = vector.broadcast %8 : vector<1x128xf32> to vector<256x128xf32>
    %10 = arith.addf %7, %9 : vector<256x128xf32>
    %c2_i32 = arith.constant 2 : i32
    %11 = arith.muli %arg0, %c2_i32 : i32
    %12 = arith.addi %11, %arg1 : i32
    %c256_i32 = arith.constant 256 : i32
    %13 = arith.muli %12, %c256_i32 : i32
    %14 = tpu.iota {dimensions = array<i32: 0>} : vector<256x1xi32>
    %15 = vector.broadcast %13 : i32 to vector<256x1xi32>
    %16 = arith.addi %15, %14 : vector<256x1xi32>
    %17 = vector.broadcast %3 : i32 to vector<256x1xi32>
    %18 = arith.cmpi slt, %16, %17 : vector<256x1xi32>
    %cst_7 = arith.constant 0.000000e+00 : f32
    %19 = vector.shape_cast %18 : vector<256x1xi1> to vector<256x1xi1>
    %20 = vector.broadcast %19 : vector<256x1xi1> to vector<256x128xi1>
    %21 = vector.broadcast %cst_7 : f32 to vector<256x128xf32>
    %22 = arith.select %20, %10, %21 : vector<256x128xi1>, vector<256x128xf32>
    %23 = arith.truncf %22 : vector<256x128xf32> to vector<256x128xbf16>
    %c0_8 = arith.constant 0 : index
    %c0_9 = arith.constant 0 : index
    %24 = vector.load %arg6[%c0_8, %c0_9] : memref<128x128xbf16, #tpu.memory_space<vmem>>, vector<128x128xbf16>
    %cst_10 = arith.constant dense<0.000000e+00> : vector<256x128xf32>
    %25 = tpu.matmul %23, %24, %cst_10 {dimension_numbers = #tpu.dot_dimension_numbers<[1], [0], [0], [1], [0, 0, 1, 1], [], []>} : vector<256x128xbf16>, vector<128x128xbf16>, vector<256x128xf32> -> vector<256x128xf32>
    %c0_11 = arith.constant 0 : index
    %c0_12 = arith.constant 0 : index
    %26 = vector.load %arg7[%c0_11, %c0_12] : memref<1x128xf32, #tpu.memory_space<vmem>>, vector<1x128xf32>
    %27 = vector.broadcast %26 : vector<1x128xf32> to vector<256x128xf32>
    %28 = arith.addf %25, %27 : vector<256x128xf32>
    %29 = math.tanh %28 : vector<256x128xf32>
    %c0_13 = arith.constant 0 : index
    %c0_14 = arith.constant 0 : index
    %30 = vector.load %arg8[%c0_13, %c0_14] : memref<1x128xf32, #tpu.memory_space<vmem>>, vector<1x128xf32>
    %31 = vector.broadcast %30 : vector<1x128xf32> to vector<256x128xf32>
    %32 = arith.mulf %29, %31 : vector<256x128xf32>
    %cst_15 = arith.constant dense<0.000000e+00> : vector<256xf32>
    %33 = vector.multi_reduction <add>, %32, %cst_15 [1] : vector<256x128xf32> to vector<256xf32>
    %34 = vector.shape_cast %33 : vector<256xf32> to vector<256x1xf32>
    %c0_16 = arith.constant 0 : index
    %c0_17 = arith.constant 0 : index
    %35 = vector.load %arg9[%c0_16, %c0_17] : memref<1x1xf32, #tpu.memory_space<vmem>>, vector<1x1xf32>
    %36 = vector.broadcast %35 : vector<1x1xf32> to vector<256x1xf32>
    %37 = arith.addf %34, %36 : vector<256x1xf32>
    %cst_18 = arith.constant 0xFF800000 : f32
    %38 = vector.broadcast %cst_18 : f32 to vector<256x1xf32>
    %39 = arith.select %18, %37, %38 : vector<256x1xi1>, vector<256x1xf32>
    %c0_19 = arith.constant 0 : index
    %c0_20 = arith.constant 0 : index
    %40 = vector.load %arg13[%c0_19, %c0_20] : memref<1x1xf32, #tpu.memory_space<vmem>>, vector<1x1xf32>
    %cst_21 = arith.constant dense<0xFF800000> : vector<1xf32>
    %41 = vector.multi_reduction <maximumf>, %39, %cst_21 [0] : vector<256x1xf32> to vector<1xf32>
    %42 = vector.shape_cast %41 : vector<1xf32> to vector<1x1xf32>
    %43 = arith.maximumf %40, %42 : vector<1x1xf32>
    %44 = arith.subf %40, %43 : vector<1x1xf32>
    %45 = math.exp %44 : vector<1x1xf32>
    %46 = vector.broadcast %43 : vector<1x1xf32> to vector<256x1xf32>
    %47 = arith.subf %39, %46 : vector<256x1xf32>
    %48 = math.exp %47 : vector<256x1xf32>
    %c0_22 = arith.constant 0 : index
    %c0_23 = arith.constant 0 : index
    %49 = vector.load %arg14[%c0_22, %c0_23] : memref<1x1xf32, #tpu.memory_space<vmem>>, vector<1x1xf32>
    %50 = arith.mulf %45, %49 : vector<1x1xf32>
    %cst_24 = arith.constant dense<0.000000e+00> : vector<1xf32>
    %51 = vector.multi_reduction <add>, %48, %cst_24 [0] : vector<256x1xf32> to vector<1xf32>
    %52 = vector.shape_cast %51 : vector<1xf32> to vector<1x1xf32>
    %53 = arith.addf %50, %52 : vector<1x1xf32>
    %c0_25 = arith.constant 0 : index
    %c0_26 = arith.constant 0 : index
    %54 = vector.load %arg14[%c0_25, %c0_26] : memref<1x1xf32, #tpu.memory_space<vmem>>, vector<1x1xf32>
    tpu.vector_store %arg14[%c0_25, %c0_26], %53 {strides = array<i32>} : memref<1x1xf32, #tpu.memory_space<vmem>>, vector<1x1xf32>,
    %c0_27 = arith.constant 0 : index
    %c0_28 = arith.constant 0 : index
    %55 = vector.load %arg15[%c0_27, %c0_28] : memref<1x128xf32, #tpu.memory_space<vmem>>, vector<1x128xf32>
    %56 = vector.broadcast %45 : vector<1x1xf32> to vector<1x128xf32>
    %57 = arith.mulf %56, %55 : vector<1x128xf32>
    %58 = arith.extf %23 : vector<256x128xbf16> to vector<256x128xf32>
    %59 = vector.broadcast %48 : vector<256x1xf32> to vector<256x128xf32>
    %60 = arith.mulf %59, %58 : vector<256x128xf32>
    %cst_29 = arith.constant dense<0.000000e+00> : vector<128xf32>
    %61 = vector.multi_reduction <add>, %60, %cst_29 [0] : vector<256x128xf32> to vector<128xf32>
    %62 = vector.shape_cast %61 : vector<128xf32> to vector<1x128xf32>
    %63 = arith.addf %57, %62 : vector<1x128xf32>
    %c0_30 = arith.constant 0 : index
    %c0_31 = arith.constant 0 : index
    %64 = vector.load %arg15[%c0_30, %c0_31] : memref<1x128xf32, #tpu.memory_space<vmem>>, vector<1x128xf32>
    tpu.vector_store %arg15[%c0_30, %c0_31], %63 {strides = array<i32>} : memref<1x128xf32, #tpu.memory_space<vmem>>, vector<1x128xf32>,
    %c0_32 = arith.constant 0 : index
    %c0_33 = arith.constant 0 : index
    %65 = vector.load %arg13[%c0_32, %c0_33] : memref<1x1xf32, #tpu.memory_space<vmem>>, vector<1x1xf32>
    tpu.vector_store %arg13[%c0_32, %c0_33], %43 {strides = array<i32>} : memref<1x1xf32, #tpu.memory_space<vmem>>, vector<1x1xf32>,
    %c1_i32 = arith.constant 1 : i32
    %66 = arith.cmpi eq, %arg1, %c1_i32 : i32
    %67 = arith.extui %66 : i1 to i32
    %c0_i32_34 = arith.constant 0 : i32
    %68 = arith.cmpi ne, %67, %c0_i32_34 : i32
    scf.if %68 {
      %c0_35 = arith.constant 0 : index
      %c0_36 = arith.constant 0 : index
      %69 = vector.load %arg13[%c0_35, %c0_36] : memref<1x1xf32, #tpu.memory_space<vmem>>, vector<1x1xf32>
      %c0_37 = arith.constant 0 : index
      %c0_38 = arith.constant 0 : index
      %c0_39 = arith.constant 0 : index
      %70 = vector.load %arg10[%c0_37, %c0_38, %c0_39] : memref<1x1x1xf32, #tpu.memory_space<vmem>>, vector<1x1x1xf32>
      %71 = vector.shape_cast %70 : vector<1x1x1xf32> to vector<1x1xf32>
      %72 = vector.shape_cast %69 : vector<1x1xf32> to vector<1x1x1xf32>
      tpu.vector_store %arg10[%c0_37, %c0_38, %c0_39], %72 {strides = array<i32>} : memref<1x1x1xf32, #tpu.memory_space<vmem>>, vector<1x1x1xf32>,
      %c0_40 = arith.constant 0 : index
      %c0_41 = arith.constant 0 : index
      %73 = vector.load %arg14[%c0_40, %c0_41] : memref<1x1xf32, #tpu.memory_space<vmem>>, vector<1x1xf32>
      %c0_42 = arith.constant 0 : index
      %c0_43 = arith.constant 0 : index
      %c0_44 = arith.constant 0 : index
      %74 = vector.load %arg11[%c0_42, %c0_43, %c0_44] : memref<1x1x1xf32, #tpu.memory_space<vmem>>, vector<1x1x1xf32>
      %75 = vector.shape_cast %74 : vector<1x1x1xf32> to vector<1x1xf32>
      %76 = vector.shape_cast %73 : vector<1x1xf32> to vector<1x1x1xf32>
      tpu.vector_store %arg11[%c0_42, %c0_43, %c0_44], %76 {strides = array<i32>} : memref<1x1x1xf32, #tpu.memory_space<vmem>>, vector<1x1x1xf32>,
      %c0_45 = arith.constant 0 : index
      %c0_46 = arith.constant 0 : index
      %77 = vector.load %arg15[%c0_45, %c0_46] : memref<1x128xf32, #tpu.memory_space<vmem>>, vector<1x128xf32>
      %c0_47 = arith.constant 0 : index
      %c0_48 = arith.constant 0 : index
      %c0_49 = arith.constant 0 : index
      %78 = vector.load %arg12[%c0_47, %c0_48, %c0_49] : memref<1x1x128xf32, #tpu.memory_space<vmem>>, vector<1x1x128xf32>
      %79 = vector.shape_cast %78 : vector<1x1x128xf32> to vector<1x128xf32>
      %80 = vector.shape_cast %77 : vector<1x128xf32> to vector<1x1x128xf32>
      tpu.vector_store %arg12[%c0_47, %c0_48, %c0_49], %80 {strides = array<i32>} : memref<1x1x128xf32, #tpu.memory_space<vmem>>, vector<1x1x128xf32>,
    } else {
    }
    return
  }
  func.func @transform_0(%arg0: i32, %arg1: i32, %arg2: memref<1xi32, #tpu.memory_space<smem>>) -> (i32, i32) {
    %c2_i32 = arith.constant 2 : i32
    %0 = arith.muli %arg0, %c2_i32 : i32
    %1 = arith.addi %0, %arg1 : i32
    %c3_i32 = arith.constant 3 : i32
    %2 = arith.minsi %1, %c3_i32 : i32
    %c0_i32 = arith.constant 0 : i32
    %c0_i32_0 = arith.constant 0 : i32
    return %2, %c0_i32 : i32, i32
  }
  func.func @transform_1(%arg0: i32, %arg1: i32, %arg2: memref<1xi32, #tpu.memory_space<smem>>) -> (i32, i32) {
    %c0_i32 = arith.constant 0 : i32
    %c0_i32_0 = arith.constant 0 : i32
    %c0_i32_1 = arith.constant 0 : i32
    return %c0_i32, %c0_i32_0 : i32, i32
  }
  func.func @transform_2(%arg0: i32, %arg1: i32, %arg2: memref<1xi32, #tpu.memory_space<smem>>) -> (i32, i32) {
    %c0_i32 = arith.constant 0 : i32
    %c0_i32_0 = arith.constant 0 : i32
    %c0_i32_1 = arith.constant 0 : i32
    return %c0_i32, %c0_i32_0 : i32, i32
  }
  func.func @transform_3(%arg0: i32, %arg1: i32, %arg2: memref<1xi32, #tpu.memory_space<smem>>) -> (i32, i32) {
    %c0_i32 = arith.constant 0 : i32
    %c0_i32_0 = arith.constant 0 : i32
    %c0_i32_1 = arith.constant 0 : i32
    return %c0_i32, %c0_i32_0 : i32, i32
  }
  func.func @transform_4(%arg0: i32, %arg1: i32, %arg2: memref<1xi32, #tpu.memory_space<smem>>) -> (i32, i32) {
    %c0_i32 = arith.constant 0 : i32
    %c0_i32_0 = arith.constant 0 : i32
    %c0_i32_1 = arith.constant 0 : i32
    return %c0_i32, %c0_i32_0 : i32, i32
  }
  func.func @transform_5(%arg0: i32, %arg1: i32, %arg2: memref<1xi32, #tpu.memory_space<smem>>) -> (i32, i32) {
    %c0_i32 = arith.constant 0 : i32
    %c0_i32_0 = arith.constant 0 : i32
    %c0_i32_1 = arith.constant 0 : i32
    return %c0_i32, %c0_i32_0 : i32, i32
  }
  func.func @transform_6(%arg0: i32, %arg1: i32, %arg2: memref<1xi32, #tpu.memory_space<smem>>) -> (i32, i32) {
    %c0_i32 = arith.constant 0 : i32
    %c0_i32_0 = arith.constant 0 : i32
    %c0_i32_1 = arith.constant 0 : i32
    return %c0_i32, %c0_i32_0 : i32, i32
  }
  func.func @transform_7(%arg0: i32, %arg1: i32, %arg2: memref<1xi32, #tpu.memory_space<smem>>) -> (i32, i32, i32) {
    %c0_i32 = arith.constant 0 : i32
    %c0_i32_0 = arith.constant 0 : i32
    %c0_i32_1 = arith.constant 0 : i32
    return %arg0, %c0_i32, %c0_i32_0 : i32, i32, i32
  }
  func.func @transform_8(%arg0: i32, %arg1: i32, %arg2: memref<1xi32, #tpu.memory_space<smem>>) -> (i32, i32, i32) {
    %c0_i32 = arith.constant 0 : i32
    %c0_i32_0 = arith.constant 0 : i32
    %c0_i32_1 = arith.constant 0 : i32
    return %arg0, %c0_i32, %c0_i32_0 : i32, i32, i32
  }
  func.func @transform_9(%arg0: i32, %arg1: i32, %arg2: memref<1xi32, #tpu.memory_space<smem>>) -> (i32, i32, i32) {
    %c0_i32 = arith.constant 0 : i32
    %c0_i32_0 = arith.constant 0 : i32
    %c0_i32_1 = arith.constant 0 : i32
    return %arg0, %c0_i32, %c0_i32_0 : i32, i32, i32
  }
}

module attributes {stable_mosaic.version = 11 : i64} {
  func.func @_abmil_kernel(%arg0: i32, %arg1: i32, %arg2: memref<1xi32, #tpu.memory_space<smem>>, %arg3: memref<256x128xf32, #tpu.memory_space<vmem>>, %arg4: memref<128x128xbf16, #tpu.memory_space<vmem>>, %arg5: memref<1x128xf32, #tpu.memory_space<vmem>>, %arg6: memref<128x128xbf16, #tpu.memory_space<vmem>>, %arg7: memref<1x128xf32, #tpu.memory_space<vmem>>, %arg8: memref<1x128xf32, #tpu.memory_space<vmem>>, %arg9: memref<1x1xf32, #tpu.memory_space<vmem>>, %arg10: memref<1x1x1xf32, #tpu.memory_space<vmem>>, %arg11: memref<1x1x1xf32, #tpu.memory_space<vmem>>, %arg12: memref<1x1x128xf32, #tpu.memory_space<vmem>>, %arg13: memref<1x1xf32, #tpu.memory_space<vmem>>, %arg14: memref<1x1xf32, #tpu.memory_space<vmem>>, %arg15: memref<1x128xf32, #tpu.memory_space<vmem>>) attributes {dimension_semantics = [#tpu.dimension_semantics<parallel>, #tpu.dimension_semantics<arbitrary>], iteration_bounds = array<i64: 2, 2>, scalar_prefetch = 1 : i64, scratch_operands = 3 : i64, tpu.core_type = #tpu.core_type<tc>, window_params = [{transform_indices = @transform_0, window_bounds = array<i64: 256, 128>}, {pipeline_mode = #tpu.pipeline_mode<synchronous>, transform_indices = @transform_1, window_bounds = array<i64: 128, 128>}, {pipeline_mode = #tpu.pipeline_mode<synchronous>, transform_indices = @transform_2, window_bounds = array<i64: 1, 128>}, {pipeline_mode = #tpu.pipeline_mode<synchronous>, transform_indices = @transform_3, window_bounds = array<i64: 128, 128>}, {pipeline_mode = #tpu.pipeline_mode<synchronous>, transform_indices = @transform_4, window_bounds = array<i64: 1, 128>}, {pipeline_mode = #tpu.pipeline_mode<synchronous>, transform_indices = @transform_5, window_bounds = array<i64: 1, 128>}, {pipeline_mode = #tpu.pipeline_mode<synchronous>, transform_indices = @transform_6, window_bounds = array<i64: 1, 1>}, {transform_indices = @transform_7, window_bounds = array<i64: 1, 1, 1>}, {transform_indices = @transform_8, window_bounds = array<i64: 1, 1, 1>}, {transform_indices = @transform_9, window_bounds = array<i64: 1, 1, 128>}]} {
    %c0_i32 = arith.constant 0 : i32
    %0 = arith.cmpi eq, %arg1, %c0_i32 : i32
    %1 = arith.extui %0 : i1 to i32
    %c0_i32_0 = arith.constant 0 : i32
    %2 = arith.cmpi ne, %1, %c0_i32_0 : i32
    scf.if %2 {
      %cst_35 = arith.constant -3.40282347E+38 : f32
      %69 = vector.broadcast %cst_35 : f32 to vector<1x1xf32>
      %c0_36 = arith.constant 0 : index
      %c0_37 = arith.constant 0 : index
      %70 = vector.load %arg13[%c0_36, %c0_37] : memref<1x1xf32, #tpu.memory_space<vmem>>, vector<1x1xf32>
      tpu.vector_store %arg13[%c0_36, %c0_37], %69 {strides = array<i32>} : memref<1x1xf32, #tpu.memory_space<vmem>>, vector<1x1xf32>,
      %cst_38 = arith.constant 0.000000e+00 : f32
      %71 = vector.broadcast %cst_38 : f32 to vector<1x1xf32>
      %c0_39 = arith.constant 0 : index
      %c0_40 = arith.constant 0 : index
      %72 = vector.load %arg14[%c0_39, %c0_40] : memref<1x1xf32, #tpu.memory_space<vmem>>, vector<1x1xf32>
      tpu.vector_store %arg14[%c0_39, %c0_40], %71 {strides = array<i32>} : memref<1x1xf32, #tpu.memory_space<vmem>>, vector<1x1xf32>,
      %cst_41 = arith.constant 0.000000e+00 : f32
      %73 = vector.broadcast %cst_41 : f32 to vector<1x128xf32>
      %c0_42 = arith.constant 0 : index
      %c0_43 = arith.constant 0 : index
      %74 = vector.load %arg15[%c0_42, %c0_43] : memref<1x128xf32, #tpu.memory_space<vmem>>, vector<1x128xf32>
      tpu.vector_store %arg15[%c0_42, %c0_43], %73 {strides = array<i32>} : memref<1x128xf32, #tpu.memory_space<vmem>>, vector<1x128xf32>,
    } else {
    }
    %c0 = arith.constant 0 : index
    %3 = memref.load %arg2[%c0] : memref<1xi32, #tpu.memory_space<smem>>
    %c0_1 = arith.constant 0 : index
    %c0_2 = arith.constant 0 : index
    %4 = vector.load %arg3[%c0_1, %c0_2] : memref<256x128xf32, #tpu.memory_space<vmem>>, vector<256x128xf32>
    %5 = arith.truncf %4 : vector<256x128xf32> to vector<256x128xbf16>
    %c0_3 = arith.constant 0 : index
    %c0_4 = arith.constant 0 : index
    %6 = vector.load %arg4[%c0_3, %c0_4] : memref<128x128xbf16, #tpu.memory_space<vmem>>, vector<128x128xbf16>
    %cst = arith.constant dense<0.000000e+00> : vector<256x128xf32>
    %7 = tpu.matmul %5, %6, %cst {dimension_numbers = #tpu.dot_dimension_numbers<[1], [0], [0], [1], [0, 0, 1, 1], [], []>} : vector<256x128xbf16>, vector<128x128xbf16>, vector<256x128xf32> -> vector<256x128xf32>
    %c0_5 = arith.constant 0 : index
    %c0_6 = arith.constant 0 : index
    %8 = vector.load %arg5[%c0_5, %c0_6] : memref<1x128xf32, #tpu.memory_space<vmem>>, vector<1x128xf32>
    %9 = vector.broadcast %8 : vector<1x128xf32> to vector<256x128xf32>
    %10 = arith.addf %7, %9 : vector<256x128xf32>
    %c2_i32 = arith.constant 2 : i32
    %11 = arith.muli %arg0, %c2_i32 : i32
    %12 = arith.addi %11, %arg1 : i32
    %c256_i32 = arith.constant 256 : i32
    %13 = arith.muli %12, %c256_i32 : i32
    %14 = tpu.iota {dimensions = array<i32: 0>} : vector<256x1xi32>
    %15 = vector.broadcast %13 : i32 to vector<256x1xi32>
    %16 = arith.addi %15, %14 : vector<256x1xi32>
    %17 = vector.broadcast %3 : i32 to vector<256x1xi32>
    %18 = arith.cmpi slt, %16, %17 : vector<256x1xi32>
    %cst_7 = arith.constant 0.000000e+00 : f32
    %19 = vector.shape_cast %18 : vector<256x1xi1> to vector<256x1xi1>
    %20 = vector.broadcast %19 : vector<256x1xi1> to vector<256x128xi1>
    %21 = vector.broadcast %cst_7 : f32 to vector<256x128xf32>
    %22 = arith.select %20, %10, %21 : vector<256x128xi1>, vector<256x128xf32>
    %23 = arith.truncf %22 : vector<256x128xf32> to vector<256x128xbf16>
    %c0_8 = arith.constant 0 : index
    %c0_9 = arith.constant 0 : index
    %24 = vector.load %arg6[%c0_8, %c0_9] : memref<128x128xbf16, #tpu.memory_space<vmem>>, vector<128x128xbf16>
    %cst_10 = arith.constant dense<0.000000e+00> : vector<256x128xf32>
    %25 = tpu.matmul %23, %24, %cst_10 {dimension_numbers = #tpu.dot_dimension_numbers<[1], [0], [0], [1], [0, 0, 1, 1], [], []>} : vector<256x128xbf16>, vector<128x128xbf16>, vector<256x128xf32> -> vector<256x128xf32>
    %c0_11 = arith.constant 0 : index
    %c0_12 = arith.constant 0 : index
    %26 = vector.load %arg7[%c0_11, %c0_12] : memref<1x128xf32, #tpu.memory_space<vmem>>, vector<1x128xf32>
    %27 = vector.broadcast %26 : vector<1x128xf32> to vector<256x128xf32>
    %28 = arith.addf %25, %27 : vector<256x128xf32>
    %29 = math.tanh %28 : vector<256x128xf32>
    %c0_13 = arith.constant 0 : index
    %c0_14 = arith.constant 0 : index
    %30 = vector.load %arg8[%c0_13, %c0_14] : memref<1x128xf32, #tpu.memory_space<vmem>>, vector<1x128xf32>
    %31 = vector.broadcast %30 : vector<1x128xf32> to vector<256x128xf32>
    %32 = arith.mulf %29, %31 : vector<256x128xf32>
    %cst_15 = arith.constant dense<0.000000e+00> : vector<256xf32>
    %33 = vector.multi_reduction <add>, %32, %cst_15 [1] : vector<256x128xf32> to vector<256xf32>
    %34 = vector.shape_cast %33 : vector<256xf32> to vector<256x1xf32>
    %c0_16 = arith.constant 0 : index
    %c0_17 = arith.constant 0 : index
    %35 = vector.load %arg9[%c0_16, %c0_17] : memref<1x1xf32, #tpu.memory_space<vmem>>, vector<1x1xf32>
    %36 = vector.broadcast %35 : vector<1x1xf32> to vector<256x1xf32>
    %37 = arith.addf %34, %36 : vector<256x1xf32>
    %cst_18 = arith.constant 0xFF800000 : f32
    %38 = vector.broadcast %cst_18 : f32 to vector<256x1xf32>
    %39 = arith.select %18, %37, %38 : vector<256x1xi1>, vector<256x1xf32>
    %c0_19 = arith.constant 0 : index
    %c0_20 = arith.constant 0 : index
    %40 = vector.load %arg13[%c0_19, %c0_20] : memref<1x1xf32, #tpu.memory_space<vmem>>, vector<1x1xf32>
    %cst_21 = arith.constant dense<0xFF800000> : vector<1xf32>
    %41 = vector.multi_reduction <maximumf>, %39, %cst_21 [0] : vector<256x1xf32> to vector<1xf32>
    %42 = vector.shape_cast %41 : vector<1xf32> to vector<1x1xf32>
    %43 = arith.maximumf %40, %42 : vector<1x1xf32>
    %44 = arith.subf %40, %43 : vector<1x1xf32>
    %45 = math.exp %44 : vector<1x1xf32>
    %46 = vector.broadcast %43 : vector<1x1xf32> to vector<256x1xf32>
    %47 = arith.subf %39, %46 : vector<256x1xf32>
    %48 = math.exp %47 : vector<256x1xf32>
    %c0_22 = arith.constant 0 : index
    %c0_23 = arith.constant 0 : index
    %49 = vector.load %arg14[%c0_22, %c0_23] : memref<1x1xf32, #tpu.memory_space<vmem>>, vector<1x1xf32>
    %50 = arith.mulf %45, %49 : vector<1x1xf32>
    %cst_24 = arith.constant dense<0.000000e+00> : vector<1xf32>
    %51 = vector.multi_reduction <add>, %48, %cst_24 [0] : vector<256x1xf32> to vector<1xf32>
    %52 = vector.shape_cast %51 : vector<1xf32> to vector<1x1xf32>
    %53 = arith.addf %50, %52 : vector<1x1xf32>
    %c0_25 = arith.constant 0 : index
    %c0_26 = arith.constant 0 : index
    %54 = vector.load %arg14[%c0_25, %c0_26] : memref<1x1xf32, #tpu.memory_space<vmem>>, vector<1x1xf32>
    tpu.vector_store %arg14[%c0_25, %c0_26], %53 {strides = array<i32>} : memref<1x1xf32, #tpu.memory_space<vmem>>, vector<1x1xf32>,
    %c0_27 = arith.constant 0 : index
    %c0_28 = arith.constant 0 : index
    %55 = vector.load %arg15[%c0_27, %c0_28] : memref<1x128xf32, #tpu.memory_space<vmem>>, vector<1x128xf32>
    %56 = vector.broadcast %45 : vector<1x1xf32> to vector<1x128xf32>
    %57 = arith.mulf %56, %55 : vector<1x128xf32>
    %58 = arith.extf %23 : vector<256x128xbf16> to vector<256x128xf32>
    %59 = vector.broadcast %48 : vector<256x1xf32> to vector<256x128xf32>
    %60 = arith.mulf %59, %58 : vector<256x128xf32>
    %cst_29 = arith.constant dense<0.000000e+00> : vector<128xf32>
    %61 = vector.multi_reduction <add>, %60, %cst_29 [0] : vector<256x128xf32> to vector<128xf32>
    %62 = vector.shape_cast %61 : vector<128xf32> to vector<1x128xf32>
    %63 = arith.addf %57, %62 : vector<1x128xf32>
    %c0_30 = arith.constant 0 : index
    %c0_31 = arith.constant 0 : index
    %64 = vector.load %arg15[%c0_30, %c0_31] : memref<1x128xf32, #tpu.memory_space<vmem>>, vector<1x128xf32>
    tpu.vector_store %arg15[%c0_30, %c0_31], %63 {strides = array<i32>} : memref<1x128xf32, #tpu.memory_space<vmem>>, vector<1x128xf32>,
    %c0_32 = arith.constant 0 : index
    %c0_33 = arith.constant 0 : index
    %65 = vector.load %arg13[%c0_32, %c0_33] : memref<1x1xf32, #tpu.memory_space<vmem>>, vector<1x1xf32>
    tpu.vector_store %arg13[%c0_32, %c0_33], %43 {strides = array<i32>} : memref<1x1xf32, #tpu.memory_space<vmem>>, vector<1x1xf32>,
    %c1_i32 = arith.constant 1 : i32
    %66 = arith.cmpi eq, %arg1, %c1_i32 : i32
    %67 = arith.extui %66 : i1 to i32
    %c0_i32_34 = arith.constant 0 : i32
    %68 = arith.cmpi ne, %67, %c0_i32_34 : i32
    scf.if %68 {
      %c0_35 = arith.constant 0 : index
      %c0_36 = arith.constant 0 : index
      %69 = vector.load %arg13[%c0_35, %c0_36] : memref<1x1xf32, #tpu.memory_space<vmem>>, vector<1x1xf32>
      %c0_37 = arith.constant 0 : index
      %c0_38 = arith.constant 0 : index
      %c0_39 = arith.constant 0 : index
      %70 = vector.load %arg10[%c0_37, %c0_38, %c0_39] : memref<1x1x1xf32, #tpu.memory_space<vmem>>, vector<1x1x1xf32>
      %71 = vector.shape_cast %70 : vector<1x1x1xf32> to vector<1x1xf32>
      %72 = vector.shape_cast %69 : vector<1x1xf32> to vector<1x1x1xf32>
      tpu.vector_store %arg10[%c0_37, %c0_38, %c0_39], %72 {strides = array<i32>} : memref<1x1x1xf32, #tpu.memory_space<vmem>>, vector<1x1x1xf32>,
      %c0_40 = arith.constant 0 : index
      %c0_41 = arith.constant 0 : index
      %73 = vector.load %arg14[%c0_40, %c0_41] : memref<1x1xf32, #tpu.memory_space<vmem>>, vector<1x1xf32>
      %c0_42 = arith.constant 0 : index
      %c0_43 = arith.constant 0 : index
      %c0_44 = arith.constant 0 : index
      %74 = vector.load %arg11[%c0_42, %c0_43, %c0_44] : memref<1x1x1xf32, #tpu.memory_space<vmem>>, vector<1x1x1xf32>
      %75 = vector.shape_cast %74 : vector<1x1x1xf32> to vector<1x1xf32>
      %76 = vector.shape_cast %73 : vector<1x1xf32> to vector<1x1x1xf32>
      tpu.vector_store %arg11[%c0_42, %c0_43, %c0_44], %76 {strides = array<i32>} : memref<1x1x1xf32, #tpu.memory_space<vmem>>, vector<1x1x1xf32>,
      %c0_45 = arith.constant 0 : index
      %c0_46 = arith.constant 0 : index
      %77 = vector.load %arg15[%c0_45, %c0_46] : memref<1x128xf32, #tpu.memory_space<vmem>>, vector<1x128xf32>
      %c0_47 = arith.constant 0 : index
      %c0_48 = arith.constant 0 : index
      %c0_49 = arith.constant 0 : index
      %78 = vector.load %arg12[%c0_47, %c0_48, %c0_49] : memref<1x1x128xf32, #tpu.memory_space<vmem>>, vector<1x1x128xf32>
      %79 = vector.shape_cast %78 : vector<1x1x128xf32> to vector<1x128xf32>
      %80 = vector.shape_cast %77 : vector<1x128xf32> to vector<1x1x128xf32>
      tpu.vector_store %arg12[%c0_47, %c0_48, %c0_49], %80 {strides = array<i32>} : memref<1x1x128xf32, #tpu.memory_space<vmem>>, vector<1x1x128xf32>,
    } else {
    }
    return
  }
  func.func @transform_0(%arg0: i32, %arg1: i32, %arg2: memref<1xi32, #tpu.memory_space<smem>>) -> (i32, i32) {
    %c2_i32 = arith.constant 2 : i32
    %0 = arith.muli %arg0, %c2_i32 : i32
    %1 = arith.addi %0, %arg1 : i32
    %c3_i32 = arith.constant 3 : i32
    %2 = arith.minsi %1, %c3_i32 : i32
    %c0_i32 = arith.constant 0 : i32
    %c0_i32_0 = arith.constant 0 : i32
    return %2, %c0_i32 : i32, i32
  }
  func.func @transform_1(%arg0: i32, %arg1: i32, %arg2: memref<1xi32, #tpu.memory_space<smem>>) -> (i32, i32) {
    %c0_i32 = arith.constant 0 : i32
    %c0_i32_0 = arith.constant 0 : i32
    %c0_i32_1 = arith.constant 0 : i32
    return %c0_i32, %c0_i32_0 : i32, i32
  }
  func.func @transform_2(%arg0: i32, %arg1: i32, %arg2: memref<1xi32, #tpu.memory_space<smem>>) -> (i32, i32) {
    %c0_i32 = arith.constant 0 : i32
    %c0_i32_0 = arith.constant 0 : i32
    %c0_i32_1 = arith.constant 0 : i32
    return %c0_i32, %c0_i32_0 : i32, i32
  }
  func.func @transform_3(%arg0: i32, %arg1: i32, %arg2: memref<1xi32, #tpu.memory_space<smem>>) -> (i32, i32) {
    %c0_i32 = arith.constant 0 : i32
    %c0_i32_0 = arith.constant 0 : i32
    %c0_i32_1 = arith.constant 0 : i32
    return %c0_i32, %c0_i32_0 : i32, i32
  }
  func.func @transform_4(%arg0: i32, %arg1: i32, %arg2: memref<1xi32, #tpu.memory_space<smem>>) -> (i32, i32) {
    %c0_i32 = arith.constant 0 : i32
    %c0_i32_0 = arith.constant 0 : i32
    %c0_i32_1 = arith.constant 0 : i32
    return %c0_i32, %c0_i32_0 : i32, i32
  }
  func.func @transform_5(%arg0: i32, %arg1: i32, %arg2: memref<1xi32, #tpu.memory_space<smem>>) -> (i32, i32) {
    %c0_i32 = arith.constant 0 : i32
    %c0_i32_0 = arith.constant 0 : i32
    %c0_i32_1 = arith.constant 0 : i32
    return %c0_i32, %c0_i32_0 : i32, i32
  }
  func.func @transform_6(%arg0: i32, %arg1: i32, %arg2: memref<1xi32, #tpu.memory_space<smem>>) -> (i32, i32) {
    %c0_i32 = arith.constant 0 : i32
    %c0_i32_0 = arith.constant 0 : i32
    %c0_i32_1 = arith.constant 0 : i32
    return %c0_i32, %c0_i32_0 : i32, i32
  }
  func.func @transform_7(%arg0: i32, %arg1: i32, %arg2: memref<1xi32, #tpu.memory_space<smem>>) -> (i32, i32, i32) {
    %c0_i32 = arith.constant 0 : i32
    %c0_i32_0 = arith.constant 0 : i32
    %c0_i32_1 = arith.constant 0 : i32
    return %arg0, %c0_i32, %c0_i32_0 : i32, i32, i32
  }
  func.func @transform_8(%arg0: i32, %arg1: i32, %arg2: memref<1xi32, #tpu.memory_space<smem>>) -> (i32, i32, i32) {
    %c0_i32 = arith.constant 0 : i32
    %c0_i32_0 = arith.constant 0 : i32
    %c0_i32_1 = arith.constant 0 : i32
    return %arg0, %c0_i32, %c0_i32_0 : i32, i32, i32
  }
  func.func @transform_9(%arg0: i32, %arg1: i32, %arg2: memref<1xi32, #tpu.memory_space<smem>>) -> (i32, i32, i32) {
    %c0_i32 = arith.constant 0 : i32
    %c0_i32_0 = arith.constant 0 : i32
    %c0_i32_1 = arith.constant 0 : i32
    return %arg0, %c0_i32, %c0_i32_0 : i32, i32, i32
  }
}

</mosaic_0001>

<bundles_post_ra>
// kernel: tpu_custom_call.1
= control target key start
LH: loop header
LB: loop body
LE: loop exit
PB: predicated region body
PF: predicated region fallthrough
CT: control target
= control target key end

     0   :  { %s4191_s0 = inlined_call_operand.<no memory space> [shape: s32[1], index: 0, kind: input, shape index: {}]   ;;  %s4192_s1 = inlined_call_operand.hbm [shape: f32[1000,128], index: 1, kind: input, shape index: {}]   ;;  %s4193_s2 = inlined_call_operand.hbm [shape: bf16[128,128], index: 2, kind: input, shape index: {}]   ;;  %s4194_s3 = inlined_call_operand.vmem [shape: f32[1,128], index: 3, kind: input, shape index: {}]   ;;  %s4195_s4 = inlined_call_operand.hbm [shape: bf16[128,128], index: 4, kind: input, shape index: {}]   ;;  %s4196_s5 = inlined_call_operand.vmem [shape: f32[1,128], index: 5, kind: input, shape index: {}]   ;;  %s4197_s6 = inlined_call_operand.vmem [shape: f32[1,128], index: 6, kind: input, shape index: {}]   ;;  %s4198_s7 = inlined_call_operand.<no memory space> [shape: f32[1,1], index: 7, kind: input, shape index: {}]   ;;  %s4199_s8 = inlined_call_operand.vmem [shape: f32[2,1,1], index: 8, kind: output, shape index: {0}]   ;;  %s4200_s9 = inlined_call_operand.vmem [shape: f32[2,1,1], index: 9, kind: output, shape index: {1}]   ;;  %s4201_s10 = inlined_call_operand.hbm [shape: f32[2,1,128], index: 10, kind: output, shape index: {2}]  }
   0x1   :  { %4252 = sst [smem:[#allocation44_spill]] %s4196_s5  ;;  %v17_v0 = vstv %s4198_s7 }
   0x2   :  { %4253 = sst [smem:[#allocation45_spill]] %s4197_s6  ;;  %18 = vst [vmem:[#allocation7] sm:$0x1] %v17_v0 }
   0x3   :  { %4254 = sst [smem:[#allocation46_spill]] %s4201_s10 }
   0x4   :  { %16 = sst [smem:[#allocation6]] %s4191_s0 }
   0x5   :  { %19 = vsyncpa [#allocation9], 0 }
   0x6   :  { %21 = vsyncpa [#allocation9 + $0x1], 0 }
   0x7   :  { %22 = vsyncpa [#allocation12], 0 }
   0x8   :  { %23 = vsyncpa [#allocation10], 0 }
   0x9   :  { %25 = vsyncpa [#allocation10 + $0x1], 0  ;;  %s2872_s17 = smov 0   ;;  %s2874_s18 = smov 0  }
   0xa   :  { %s2876_s19 = smov 0   ;;  %s2878_s20 = smov 0  }
   0xb   :  { %s2880_s21 = smov 0   ;;  %s2882_s0 = smov 0  }
   0xc   :  { %s2884_s22 = smov 0   ;;  %s2886_s7 = smov 0  }
   0xd   :  { %s2888_s23 = smov 0   ;;  %s2890_s24 = smov 0  }
   0xe   :  { %s2892_s25 = smov 0  }
   0xf LB: > { %4255 = sst [smem:[#allocation18_spill]] %s2758_s17  ;;  %s4203_s26 = sadd.s32 4294967295, %s2798_s25   ;;  %s2798_s25 = sphi %s2892_s25, %s31_s25   ;;  %s2794_s24 = sphi %s2890_s24, %s4351_s24   ;;  %s2790_s23 = sphi %s2888_s23, %s4342_s23   ;;  %s2786_s7 = sphi %s2886_s7, %s4341_s7   ;;  %s2782_s22 = sphi %s2884_s22, %s4350_s22   ;;  %s2778_s0 = sphi %s2882_s0, %s4349_s0   ;;  %s2774_s21 = sphi %s2880_s21, %s4348_s21   ;;  %s2770_s20 = sphi %s2878_s20, %s4347_s20   ;;  %s2766_s19 = sphi %s2876_s19, %s4346_s19   ;;  %s2762_s18 = sphi %s2874_s18, %s4345_s18   ;;  %s2758_s17 = sphi %s2872_s17, %s4344_s17  }
  0x10   : > { %4256 = sst [smem:[#allocation19_spill]] %s2766_s19  ;;  %s40_s28 = sadd.s32 1, %s2790_s23 }
  0x11   : > { %4257 = sst [smem:[#allocation20_spill]] %s2790_s23  ;;  %s43_s29 = sadd.s32 1, %s2794_s24 }
  0x12   : > { %4258 = sst [smem:[#allocation21_spill]] %s2794_s24  ;;  %p41_p0 = scmp.ge.s32.totalorder %s40_s28, 2 }
  0x13   : > { %s2078_s30 = sshll.u32 %s2794_s24, 1  ;;  %s58_s12 = sadd.s32 1, %s2778_s0 }
  0x14   : > { %s48_s11 = sadd.s32 %s2790_s23, %s2078_s30  ;;  %s4353_s28 = smov (%p41_p0, %s40_s28), 0 }
  0x15   : > { %4259 = sst [smem:[#allocation22_spill]] %s4353_s28  ;;  %s4355_s29 = smov (!%p41_p0, %s43_s29), %s2794_s24 }
  0x16   : > { %p49_p1 = scmp.lt.s32.totalorder %s48_s11, 3  ;;  %p65_p2 = scmp.ne.s32.totalorder %s2778_s0, %s2774_s21 }
  0x17   : > { %p45_p3 = scmp.ge.s32.totalorder %s4355_s29, 2  ;;  %p66_p4 = scmp.eq.s32.totalorder %s2798_s25, 0 }
  0x18   : > { %s4357_s11 = smov (!%p49_p1, %s48_s11), 3  ;;  %p71_p6 = scmp.ne.s32.totalorder %s2774_s21, %s2770_s20 }
  0x19   : > { %s4359_s29 = smov (%p45_p3, %s4355_s29), 0  ;;  %p2944_p5 = por %p66_p4, %p65_p2 }
  0x1a   : > { %4260 = sst [smem:[#allocation23_spill]] %s4359_s29  ;;  %s2079_s14 = sshll.u32 %s4359_s29, 1 }
  0x1b   : > { %s4261_s13 = scalar_select %p2944_p5, 1, 0 }
  0x1c   : > { %p2953_p7 = scmp.eq.s32.totalorder %s4203_s26, 0  ;;  %s52_s16 = sadd.s32 %s2079_s14, %s4353_s28 }
  0x1d   : > { %s259_s30 = ssub.s32 %s2794_s24, %s4359_s29  ;;  %p53_p8 = scmp.lt.s32.totalorder %s52_s16, 3 }
  0x1e   : > { %s4262_s15 = scalar_select %p2953_p7, 1, 0 }
  0x1f   : > { %p2962_p9 = por %p2953_p7, %p71_p6  ;;  %p260_p10 = scmp.eq.s32.totalorder %s259_s30, 0 }
  0x20   : > { %s262_s20 = sadd.s32 1, %s2766_s19  ;;  %s4361_s16 = smov (!%p53_p8, %s52_s16), 3 }
  0x21   : > { %s4263_s27 = scalar_select %p2962_p9, 1, 0 }
  0x22   : > { %s2968_s23 = scalar_select %p260_p10, %s2766_s19, %s262_s20  }
  0x23   : > { %s55_s26 = ssub.s32 %s4357_s11, %s4361_s16  ;;  %p272_p11 = scmp.ne.s32.totalorder %s2766_s19, %s2762_s18 }
  0x24   : > { %4264 = sst [smem:[#allocation24_spill]] %s2968_s23  ;;  %p56_p12 = scmp.eq.s32.totalorder %s55_s26, 0 }
  0x25   : > { %s4265_s10 = sadd.s32 4294967295, %s2798_s25   ;;  %p278_p0 = scmp.ne.s32.totalorder %s2762_s18, %s2758_s17 }
  0x26   : > { %p273_p13 = scmp.eq.s32.totalorder %s4265_s10, 3  ;;  %s4266_s14 = sadd.s32 4294967294, %s2798_s25  }
  0x27   : > { %p279_p1 = scmp.eq.s32.totalorder %s4266_s14, 3  ;;  %p2080_p4 = scmp.ge.s32.totalorder %s2798_s25, 1 }
  0x28   : > { %s2980_s29 = scalar_select %p56_p12, %s2778_s0, %s58_s12  }
  0x29   : > { %p2982_p2 = por %p273_p13, %p272_p11  ;;  %p2986_p3 = por %p279_p1, %p278_p0 }
  0x2a   : > { %4267 = sst [smem:[#allocation25_spill]] %s2980_s29  ;;  %p286_p6 = scmp.lt.s32.totalorder %s2798_s25, 5 }
  0x2b   : > { %s4268_s28 = scalar_select %p2982_p2, 1, 0 }
  0x2c   : > { %s4270_s30 = scalar_select %p2986_p3, 1, 0 }
  0x2d   : > { %4269 = sst [smem:[#allocation26_spill]] %s4268_s28  ;;  %p2992_p8 = pnand %p2080_p4, %p286_p6 }
  0x2e   : > { %4271 = sst [smem:[#allocation27_spill]] %s4270_s30  ;;  %s2800_s10 = smov [#allocation11]  }
  0x2f   : > { %s4272_s16 = scalar_select %p2992_p8, 1, 0 }
  0x30   : > { %s298_s26 = sshll.u32 %s2800_s10, 4  ;;  %p2327_p10 = pneg %p2992_p8  ;;  %s299_s26 = int_to_ptr.vmem [resolvable:$true] %s298_s26 }
  0x31   : > { %s2801_s20 = smov [#allocation13]   ;;  %s2588_s23 = scalar_lea.hbm %s4193_s2, 1024 }
  0x32   : > { %p3000_p11 = pnand %p2327_p10, %p2953_p7  ;;  %s314_s14 = sshll.u32 %s2801_s20, 4  ;;  %s3004_s14 = int_to_ptr.vmem [resolvable:$true] %s314_s14 }
  0x33   : > { %p2589_p12 = scmp.ne.s32.totalorder %s4193_s2, %s2588_s23  ;;  %p2595_p4 = scmp.lt.u32.totalorder %s2588_s23, %s4193_s2 }
  0x34   : > { %p2590_p13 = pneg %p3000_p11 }
  0x36   : > { %p2591_p0 = pnand %p2590_p13, %p2589_p12 }
  0x38   : > { %p2592_p1 = pneg %p2591_p0 }
  0x3a   : > { %p2597_p6 = pnand %p2595_p4, %p2592_p1 }
  0x3c   : > { %2600 = shalt.err (!%p2597_p6)
}
  0x3d   : > { %s2601_s20 = scalar_lea.vmem %s299_s26, 1024  ;;  %p2609_p7 = scmp.lt.s32.totalorder %s299_s26, %s299_s26 }
  0x3e   : > { %p2602_p10 = scmp.ne.s32.totalorder %s299_s26, %s2601_s20  ;;  %p2610_p9 = scmp.lt.s32.totalorder %s2601_s20, %s2601_s20 }
  0x40   : > { %p2604_p3 = pnand %p2602_p10, %p2590_p13  ;;  %p2611_p8 = por %p2610_p9, %p2609_p7 }
  0x42   : > { %p2605_p2 = pneg %p2604_p3 }
  0x44   : > { %p2612_p5 = pnand %p2611_p8, %p2605_p2 }
  0x46   : > { %2615 = shalt.err (!%p2612_p5)
}
  0x47   : > { %s2802_s19 = smov 64   ;;  %s2803_s24 = smov 4  }
  0x48   : > { %2330 = dma.hbm_to_vmem [thread:$0]  (!%p3000_p11), %s4193_s2, 1024, %s299_s26, [#allocation12], %s2802_s19, %s2802_s19, %s2803_s24  }
  0x49   : > { %s2616_s10 = scalar_lea.hbm %s4195_s4, 1024 }
  0x4a   : > { %p2617_p3 = scmp.ne.s32.totalorder %s4195_s4, %s2616_s10  ;;  %p2623_p9 = scmp.lt.u32.totalorder %s2616_s10, %s4195_s4 }
  0x4c   : > { %p2619_p5 = pnand %p2617_p3, %p2590_p13 }
  0x4e   : > { %p2620_p7 = pneg %p2619_p5 }
  0x50   : > { %p2625_p2 = pnand %p2623_p9, %p2620_p7 }
  0x52   : > { %2628 = shalt.err (!%p2625_p2)
}
  0x53   : > { %s2629_s26 = scalar_lea.vmem %s3004_s14, 1024  ;;  %p2637_p1 = scmp.lt.s32.totalorder %s3004_s14, %s3004_s14 }
  0x54   : > { %p2630_p8 = scmp.ne.s32.totalorder %s3004_s14, %s2629_s26  ;;  %p2638_p4 = scmp.lt.s32.totalorder %s2629_s26, %s2629_s26 }
  0x56   : > { %p2632_p12 = pnand %p2630_p8, %p2590_p13  ;;  %p2639_p6 = por %p2638_p4, %p2637_p1 }
  0x58   : > { %p2633_p0 = pneg %p2632_p12 }
  0x5a   : > { %p2640_p10 = pnand %p2639_p6, %p2633_p0 }
  0x5c   : > { %2643 = shalt.err (!%p2640_p10)
}
  0x5d   : > { %2333 = dma.hbm_to_vmem [thread:$0]  (!%p3000_p11), %s4195_s4, 1024, %s3004_s14, [#allocation12], %s2802_s19, %s2802_s19, %s2803_s24  }
  0x5e   : > { %p2083_p3 = scmp.ge.s32.totalorder %s2798_s25, 4 }
  0x5f   : > { %p4274_p5 = scmp.ne.s32.totalorder (!%p2083_p3), %s4261_s13, 0 }
  0x60   : > { %333 = sbr.rel (%p2083_p3) target bundleno = 138 (0x8a), region = 40 }
  0x67   : > { %336 = sbr.rel (!%p4274_p5) target bundleno = 138 (0x8a), region = 44  ;;  %s337_s28 = sand.u32 (%p4274_p5), 1, %s2778_s0  }
  0x68   : > { %s2086_s17 = sshll.u32 (%p4274_p5), %s4357_s11, 5  ;;  %s2084_s23 = sshll.u32 (%p4274_p5), %s337_s28, 8 }
  0x69   : > { %s347_s29 = ssub.s32 (%p4274_p5), 125, %s2086_s17  ;;  %s3061_s10 = scalar_lea.sflag (%p4274_p5), [#allocation9], %s337_s28 }
  0x6a   : > { %p348_p13 = scmp.lt.s32.totalorder (%p4274_p5), %s347_s29, 32  ;;  %s341_s14 = scalar_lea.vmem (%p4274_p5), [#allocation8], %s2084_s23 }
  0x6e   : > { %s4363_s29 = smov (!%p348_p13, %s347_s29), 32 }
  0x6f   : > { %s3058_s12 = sshll.u32 %s4363_s29, 7 }
  0x70   : > { %s352_s30 = ssub.s32 4096, %s3058_s12 }
  0x71   : > { %353 = vsyncadd %s3061_s10, %s352_s30  ;;  %p2088_p11 = scmp.ne.s32.totalorder %s3058_s12, 0  ;;  %s2171_s13 = sshll.u32 %s4357_s11, 12 }
  0x72   : > { %s3069_s20 = scalar_lea.hbm %s4192_s1, %s2171_s13  ;;  %s358_s26 = sshll.u32 %s341_s14, 4  ;;  %s3071_s26 = int_to_ptr.vmem [resolvable:$true] %s358_s26 }
  0x73   : > { %s2644_s5 = scalar_lea.hbm %s3069_s20, %s3058_s12  ;;  %s2648_s11 = scalar_lea.hbm %s4192_s1, 16000 }
  0x74   : > { %p2645_p7 = scmp.ne.s32.totalorder %s3069_s20, %s2644_s5  ;;  %p2649_p8 = scmp.lt.u32.totalorder %s3069_s20, %s4192_s1 }
  0x75   : > { %p2650_p12 = scmp.lt.u32.totalorder %s2648_s11, %s2644_s5  ;;  %p2652_p1 = scmp.lt.u32.totalorder %s2644_s5, %s3069_s20 }
  0x76   : > { %p2646_p9 = pnand %p2645_p7, %p2088_p11 }
  0x77   : > { %p2651_p0 = por %p2650_p12, %p2649_p8 }
  0x78   : > { %p2647_p2 = pneg %p2646_p9 }
  0x79   : > { %p2653_p4 = por %p2652_p1, %p2651_p0 }
  0x7b   : > { %p2654_p6 = pnand %p2653_p4, %p2647_p2 }
  0x7d   : > { %2657 = shalt.err (!%p2654_p6)
}
  0x7e   : > { %s2658_s29 = scalar_lea.vmem %s3071_s26, %s3058_s12  ;;  %s2804_s30 = smov [#allocation8]  }
  0x7f   : > { %p2659_p10 = scmp.ne.s32.totalorder %s3071_s26, %s2658_s29  ;;  %s2662_s14 = sshll.u32 %s2804_s30, 4  ;;  %s2663_s14 = int_to_ptr.vmem [resolvable:$false] %s2662_s14 }
  0x80   : > { %s2664_s13 = scalar_lea.vmem %s2663_s14, 8192  ;;  %p2665_p13 = scmp.lt.s32.totalorder %s3071_s26, %s2663_s14 }
  0x81   : > { %p2660_p3 = pnand %p2659_p10, %p2088_p11  ;;  %p2666_p7 = scmp.lt.s32.totalorder %s2664_s13, %s2658_s29 }
  0x83   : > { %p2661_p5 = pneg %p2660_p3  ;;  %p2667_p9 = por %p2666_p7, %p2665_p13 }
  0x85   : > { %p2668_p8 = pnand %p2667_p9, %p2661_p5 }
  0x87   : > { %2671 = shalt.err (!%p2668_p8)
}
  0x88   : > { %s2805_s19 = smov 128   ;;  %s2806_s24 = smov 8  }
  0x89   : > { %364 = dma.hbm_to_vmem [thread:$0]  (%p2088_p11), %s3069_s20, %s3058_s12, %s3071_s26, %s3061_s10, %s2805_s19, %s2805_s19, %s2806_s24  }
  0x8a PF: > { %p4275_p2 = scmp.ne.s32.totalorder %s4272_s16, 0 }
  0x8c   : > { %370 = sbr.rel (%p4275_p2) target bundleno = 1148 (0x47c), region = 48 }
  0x93   : > { %s372_s5 = sand.u32 1, %s2774_s21   ;;  %p4276_p12 = scmp.ne.s32.totalorder %s4263_s27, 0 }
  0x94   : > { %s2093_s6 = sshll.u32 %s372_s5, 8  ;;  %s373_s28 = scalar_lea.sflag [#allocation9], %s372_s5 }
  0x95   : > { %s3101_s11 = scalar_lea.vmem [#allocation8], %s2093_s6 }
  0x96   : > { %2745 = dma.done.wait (%p4276_p12), %s373_s28, 4096  }
  0x97   : > { %2747 = vsyncadd (%p4276_p12), %s373_s28, 4294963200  ;;  %p4277_p0 = scmp.ne.s32.totalorder %s4262_s15, 0 }
  0x99   : > { %2749 = dma.done.wait (%p4277_p0), [#allocation12], 2048  }
  0x9a   : > { %2751 = vsyncadd (%p4277_p0), [#allocation12], 4294965248  ;;  %s422_s16 = sand.u32 1, %s2762_s18   ;;  %p433_p11 = scmp.lt.s32.totalorder %s2786_s7, 1 }
  0x9b   : > { %s3126_s15 = scalar_lea.vmem [#allocation14], %s422_s16  ;;  %p2096_p1 = scmp.ne.s32.totalorder %s2782_s22, 0 }
  0x9c   : > { %s3114_s12 = scalar_select %p433_p11, %s2786_s7, 1 }
  0x9d   : > { %443 = sbr.rel (%p2096_p1) target bundleno = 164 (0xa4), region = 64  ;;  %vm444_vm0 = vcmask (!%p2096_p1), 0   ;;  %v2807_v1 = vmov (!%p2096_p1), -3.4028235e+38   ;;  %v2808_v2 = vmov (!%p2096_p1), 0.0  }
  0x9e   : > { %s435_s27 = scalar_lea.vmem %s4199_s8, %s3114_s12  ;;  %s438_s23 = scalar_lea.vmem %s4200_s9, %s3114_s12  ;;  %445 = vst.msk [vmem:[#allocation2] sm:$0x1] (!%p2096_p1), %vm444_vm0, %v2807_v1  ;;  %446 = vst.msk [vmem:[#allocation3] sm:$0x1] (!%p2096_p1), %vm444_vm0, %v2808_v2 }
  0x9f   : > { %447 = vst [vmem:[#allocation4] sm:$0x1] (!%p2096_p1), %v2808_v2 }
  0xa4 PF: > { %v2442_v3 = vld [vmem:[#allocation11] sm:$0xff]   ;;  %v2443_v4 = vld [vmem:[#allocation11 + $0x8] sm:$0xff]   ;;  %v2444_v5 = vld [vmem:[#allocation11 + $0x10] sm:$0xff]   ;;  %s2106_s29 = sshll.u32 %s2786_s7, 1  ;;  %s448_s14 = sld [smem:[#allocation6]] }
  0xa5   : > { %2220 = vmatprep.subr.bf16.mxu0 %v2442_v3  ;;  %v2445_v6 = vld [vmem:[#allocation11 + $0x18] sm:$0xff]   ;;  %v449_v7 = vld [vmem:[%s3101_s11] sm:$0xff]  ;;  %v450_v8 = vld [vmem:[%s3101_s11 + $0x8] sm:$0xff]  ;;  %s730_s30 = sadd.s32 %s2782_s22, %s2106_s29  ;;  %s4294_s28 = sld [smem:[#allocation44_spill]] }
  0xa6   : > { %2221 = vmatpush3.bf16.msra.mxu0 %v2442_v3  ;;  %v481_v9 = vpack.c.bf16 %v450_v8, %v449_v7  ;;  %v2446_v10 = vld [vmem:[#allocation11 + $0x20] sm:$0xff]   ;;  %v2447_v11 = vld [vmem:[#allocation11 + $0x28] sm:$0xff]   ;;  %v2448_v12 = vld [vmem:[#allocation11 + $0x30] sm:$0xff]   ;;  %v732_v3 = vlaneseq  ;;  %s2107_s13 = sshll.u32 %s730_s30, 8  ;;  %s4295_s20 = sld [smem:[#allocation45_spill]] }
  0xa7   : > { %2222 = vmatprep.subr.bf16.mxu0 %v2443_v4  ;;  %v2450_v13 = vld [vmem:[#allocation13] sm:$0xff]   ;;  %v2451_v14 = vld [vmem:[#allocation13 + $0x8] sm:$0xff]   ;;  %v2452_v15 = vld [vmem:[#allocation13 + $0x10] sm:$0xff]   ;;  %v3168_v8 = vstv %s2107_s13  ;;  %p2167_p4 = scmp.ne.s32.totalorder %s2782_s22, 1 }
  0xa8   : > { %2236 = vmatprep.mubr.bf16.mxu0 %v481_v9  ;;  %2268 = vmatprep.subr.bf16.mxu1 %v2450_v13  ;;  %v2449_v16 = vld [vmem:[#allocation11 + $0x38] sm:$0xff]   ;;  %v451_v17 = vld [vmem:[%s3101_s11 + $0x10] sm:$0xff]  ;;  %v453_v20 = vld [vmem:[%s3101_s11 + $0x20] sm:$0xff] }
  0xa9   : > { %2269 = vmatpush3.bf16.msra.mxu1 %v2450_v13  ;;  %v452_v18 = vld [vmem:[%s3101_s11 + $0x18] sm:$0xff]  ;;  %v454_v21 = vld [vmem:[%s3101_s11 + $0x28] sm:$0xff]  ;;  %v2454_v24 = vld [vmem:[#allocation13 + $0x20] sm:$0xff]  }
  0xaa   : > { %2223 = vmatpush3.bf16.msra.mxu0 %v2443_v4  ;;  %2270 = vmatprep.subr.bf16.mxu1 %v2451_v14  ;;  %v2453_v19 = vld [vmem:[#allocation13 + $0x18] sm:$0xff]   ;;  %v482_v22 = vpack.c.bf16 %v452_v18, %v451_v17  ;;  %v483_v23 = vpack.c.bf16 %v454_v21, %v453_v20  ;;  %v455_v25 = vld [vmem:[%s3101_s11 + $0x30] sm:$0xff]  ;;  %v2455_v27 = vld [vmem:[#allocation13 + $0x28] sm:$0xff]   ;;  %v3163_v4 = vshrl.u32 %v732_v3, 7  ;;  %v3184_v13 = vstv %s448_s14 }
  0xab   : > { %2224 = vmatprep.subr.bf16.mxu0 %v2444_v5  ;;  %v456_v26 = vld [vmem:[%s3101_s11 + $0x38] sm:$0xff]  ;;  %v457_v28 = vld [vmem:[%s3101_s11 + $0x40] sm:$0xff]  ;;  %v458_v29 = vld [vmem:[%s3101_s11 + $0x48] sm:$0xff] }
  0xac   : > { %v484_v30 = vpack.c.bf16 %v456_v26, %v455_v25  ;;  %v485_v31 = vpack.c.bf16 %v458_v29, %v457_v28  ;;  %v459_v32 = vld [vmem:[%s3101_s11 + $0x50] sm:$0xff]  ;;  %v460_v33 = vld [vmem:[%s3101_s11 + $0x58] sm:$0xff]  ;;  %v461_v34 = vld [vmem:[%s3101_s11 + $0x60] sm:$0xff]  ;;  %v734_v7 = vadd.s32 8, %v3163_v4  ;;  %v740_v17 = vadd.s32 56, %v3163_v4 }
  0xad   : > { %2271 = vmatpush3.bf16.msra.mxu1 %v2451_v14  ;;  %v462_v35 = vld [vmem:[%s3101_s11 + $0x68] sm:$0xff]  ;;  %v486_v36 = vpack.c.bf16 %v460_v33, %v459_v32  ;;  %v463_v38 = vld [vmem:[%s3101_s11 + $0x70] sm:$0xff]  ;;  %v464_v39 = vld [vmem:[%s3101_s11 + $0x78] sm:$0xff]  ;;  %v3188_v14 = vadd.s32 %v3168_v8, %v3163_v4  ;;  %v738_v20 = vadd.s32 40, %v3163_v4  ;;  %v737_v25 = vadd.s32 32, %v3163_v4 }
  0xae   : > { %2225 = vmatpush3.bf16.msra.mxu0 %v2444_v5  ;;  %2272 = vmatprep.subr.bf16.mxu1 %v2452_v15  ;;  %v487_v37 = vpack.c.bf16 %v462_v35, %v461_v34  ;;  %v465_v40 = vld [vmem:[%s3101_s11 + $0x80] sm:$0xff]  ;;  %v466_v41 = vld [vmem:[%s3101_s11 + $0x88] sm:$0xff]  ;;  %v488_v42 = vpack.c.bf16 %v464_v39, %v463_v38  ;;  %v467_v44 = vld [vmem:[%s3101_s11 + $0x90] sm:$0xff]  ;;  %v735_v5 = vadd.s32 16, %v3163_v4  ;;  %v3210_v28 = vadd.s32 %v3168_v8, %v740_v17 }
  0xaf   : > { %2226 = vmatprep.subr.bf16.mxu0 %v2445_v6  ;;  %v489_v43 = vpack.c.bf16 %v466_v41, %v465_v40  ;;  %v468_v45 = vld [vmem:[%s3101_s11 + $0x98] sm:$0xff]  ;;  %v469_v46 = vld [vmem:[%s3101_s11 + $0xa0] sm:$0xff]  ;;  %v470_v47 = vld [vmem:[%s3101_s11 + $0xa8] sm:$0xff]  ;;  %vm799_vm4 = vcmp.lt.s32.totalorder %v3188_v14, %v3184_v13  ;;  %v3225_v32 = vadd.s32 %v3168_v8, %v738_v20  ;;  %v3244_v38 = vadd.s32 %v3168_v8, %v737_v25 }
  0xb0   : > { %v490_v48 = vpack.c.bf16 %v468_v45, %v467_v44  ;;  %v491_v49 = vpack.c.bf16 %v470_v47, %v469_v46  ;;  %v471_v50 = vld [vmem:[%s3101_s11 + $0xb0] sm:$0xff]  ;;  %v472_v51 = vld [vmem:[%s3101_s11 + $0xb8] sm:$0xff]  ;;  %v473_v52 = vld [vmem:[%s3101_s11 + $0xc0] sm:$0xff]  ;;  %v743_v40 = vadd.s32 80, %v3163_v4  ;;  %v744_v41 = vadd.s32 88, %v3163_v4 }
  0xb1   : > { %2273 = vmatpush3.bf16.msra.mxu1 %v2452_v15  ;;  %v474_v53 = vld [vmem:[%s3101_s11 + $0xc8] sm:$0xff]  ;;  %v492_v54 = vpack.c.bf16 %v472_v51, %v471_v50  ;;  %v475_v56 = vld [vmem:[%s3101_s11 + $0xd0] sm:$0xff]  ;;  %v476_v57 = vld [vmem:[%s3101_s11 + $0xd8] sm:$0xff]  ;;  %v742_v44 = vadd.s32 72, %v3163_v4  ;;  %vm806_vm8 = vcmp.lt.s32.totalorder %v3210_v28, %v3184_v13  ;;  %vm804_vm9 = vcmp.lt.s32.totalorder %v3225_v32, %v3184_v13 }
  0xb2   : > { %2227 = vmatpush3.bf16.msra.mxu0 %v2445_v6  ;;  %2274 = vmatprep.subr.bf16.mxu1 %v2453_v19  ;;  %v493_v55 = vpack.c.bf16 %v474_v53, %v473_v52  ;;  %v477_v58 = vld [vmem:[%s3101_s11 + $0xe0] sm:$0xff]  ;;  %v478_v59 = vld [vmem:[%s3101_s11 + $0xe8] sm:$0xff]  ;;  %v494_v60 = vpack.c.bf16 %v476_v57, %v475_v56  ;;  %v479_v62 = vld [vmem:[%s3101_s11 + $0xf0] sm:$0xff]  ;;  %v736_v6 = vadd.s32 24, %v3163_v4  ;;  %vm803_vm10 = vcmp.lt.s32.totalorder %v3244_v38, %v3184_v13 }
  0xb3   : > { %2228 = vmatprep.subr.bf16.mxu0 %v2446_v10  ;;  %v495_v61 = vpack.c.bf16 %v478_v59, %v477_v58  ;;  %v480_v63 = vld [vmem:[%s3101_s11 + $0xf8] sm:$0xff]  ;;  %v2456_v1 = vld [vmem:[#allocation13 + $0x30] sm:$0xff]   ;;  %v3263_v51 = vadd.s32 %v3168_v8, %v743_v40  ;;  %v3266_v52 = vadd.s32 %v3168_v8, %v744_v41  ;;  %vm2123_vm11 = vmpackc.low %vm804_vm9, %vm803_vm10  ;;  %v3281_v56 = vadd.s32 %v3168_v8, %v742_v44 }
  0xb4   : > { %v496_v0 = vpack.c.bf16 %v480_v63, %v479_v62  ;;  %v2457_v2 = vld [vmem:[#allocation13 + $0x38] sm:$0xff]   ;;  %v745_v17 = vadd.s32 96, %v3163_v4 }
  0xb5   : > { %2275 = vmatpush3.bf16.msra.mxu1 %v2453_v19  ;;  %v3173_v9 = vld [vmem:[%s4194_s3] ss:$0 sm:$0xff]  ;;  %vm809_vm13 = vcmp.lt.s32.totalorder %v3263_v51, %v3184_v13  ;;  %vm810_vm14 = vcmp.lt.s32.totalorder %v3266_v52, %v3184_v13  ;;  %vm4218_vm15 = vcmp.lt.s32.totalorder %v3281_v56, %v3184_v13 }
  0xb6   : > { %2229 = vmatpush3.bf16.msra.mxu0 %v2446_v10  ;;  %2276 = vmatprep.subr.bf16.mxu1 %v2454_v24  ;;  %v3176_v10 = vadd.s32 %v3168_v8, %v735_v5  ;;  %v746_v5 = vadd.s32 104, %v3163_v4 }
  0xb7   : > { %2230 = vmatprep.subr.bf16.mxu0 %v2447_v11 }
  0xb8   : > { %vm801_vm1 = vcmp.lt.s32.totalorder %v3176_v10, %v3184_v13 }
  0xb9   : > { %2277 = vmatpush3.bf16.msra.mxu1 %v2454_v24 }
  0xba   : > { %2231 = vmatpush3.bf16.msra.mxu0 %v2447_v11  ;;  %2278 = vmatprep.subr.bf16.mxu1 %v2455_v27  ;;  %v3179_v11 = vadd.s32 %v3168_v8, %v736_v6 }
  0xbb   : > { %2232 = vmatprep.subr.bf16.mxu0 %v2448_v12 }
  0xbc   : > { %vm802_vm2 = vcmp.lt.s32.totalorder %v3179_v11, %v3184_v13 }
  0xbd   : > { %2279 = vmatpush3.bf16.msra.mxu1 %v2455_v27  ;;  %vm2120_vm6 = vmpackc.low %vm802_vm2, %vm801_vm1 }
  0xbe   : > { %2233 = vmatpush3.bf16.msra.mxu0 %v2448_v12  ;;  %2280 = vmatprep.subr.bf16.mxu1 %v2456_v1  ;;  %v3182_v12 = vadd.s32 %v3168_v8, %v734_v7 }
  0xbf   : > { %2234 = vmatprep.subr.bf16.mxu0 %v2449_v16 }
  0xc0   : > { %vm800_vm3 = vcmp.lt.s32.totalorder %v3182_v12, %v3184_v13 }
  0xc1   : > { %2281 = vmatpush3.bf16.msra.mxu1 %v2456_v1  ;;  %vm2117_vm5 = vmpackc.low %vm800_vm3, %vm799_vm4  ;;  %v748_v1 = vadd.s32 120, %v3163_v4 }
  0xc2   : > { %2235 = vmatpush3.bf16.msra.mxu0 %v2449_v16  ;;  %2282 = vmatprep.subr.bf16.mxu1 %v2457_v2  ;;  %v739_v16 = vadd.s32 48, %v3163_v4 }
  0xc3   : > { %v3322_v20 = vadd.s32 %v3168_v8, %v748_v1 }
  0xc4   : > { %v3207_v27 = vadd.s32 %v3168_v8, %v739_v16 }
  0xc5   : > { %2237 = vmatmul.mubr.bf16.vlgmr.msra.gmra.mrb[0].mxu0 %v482_v22  ;;  %2283 = vmatpush3.bf16.msra.mxu1 %v2457_v2 }
  0xc6   : > { %2240 = vmatprep.mubr.bf16.mxu0 %v483_v23  ;;  %vm805_vm7 = vcmp.lt.s32.totalorder %v3207_v27, %v3184_v13 }
  0xc7   : > { %vm2126_vm12 = vmpackc.low %vm806_vm8, %vm805_vm7 }
  0xcd   : > { %2241 = vmatmul.mubr.bf16.gmra.mrb[4].mxu0 %v484_v30 }
  0xce   : > { %2244 = vmatprep.mubr.bf16.mxu0 %v485_v31 }
  0xd5   : > { %2245 = vmatmul.mubr.bf16.gmra.mrb[8].mxu0 %v486_v36 }
  0xd6   : > { %2248 = vmatprep.mubr.bf16.mxu0 %v487_v37 }
  0xdd   : > { %2249 = vmatmul.mubr.bf16.gmra.mrb[12].mxu0 %v488_v42 }
  0xde   : > { %2252 = vmatprep.mubr.bf16.mxu0 %v489_v43 }
  0xe5   : > { %2253 = vmatmul.mubr.bf16.gmra.mrb[16].mxu0 %v490_v48 }
  0xe6   : > { %2256 = vmatprep.mubr.bf16.mxu0 %v491_v49  ;;  %v741_v49 = vadd.s32 64, %v3163_v4 }
  0xe8   : > { %v3300_v62 = vadd.s32 %v3168_v8, %v741_v49 }
  0xea   : > { %vm4219_vm0 = vcmp.lt.s32.totalorder %v3300_v62, %v3184_v13 }
  0xed   : > { %2257 = vmatmul.mubr.bf16.gmra.mrb[20].mxu0 %v492_v54 }
  0xee   : > { %2260 = vmatprep.mubr.bf16.mxu0 %v493_v55 }
  0xf5   : > { %2261 = vmatmul.mubr.bf16.gmra.mrb[24].mxu0 %v494_v60 }
  0xf6   : > { %2264 = vmatprep.mubr.bf16.mxu0 %v495_v61 }
  0xfd   : > { %2265 = vmatmul.mubr.bf16.gmra.mrb[28].mxu0 %v496_v0  ;;  %v747_v0 = vadd.s32 112, %v3163_v4 }
 0x198   : > { %v2238_v15 = vpop.f32.mrb[0].mxu0 }
 0x199   : > { %v611_v18 = vadd.f32 %v2238_v15, %v3173_v9  ;;  %v602_v19 = vpop.f32.mrb[1].mxu0 }
 0x19a   : > { %v603_v21 = vadd.f32 %v3173_v9, %v602_v19  ;;  %v2239_v22 = vpop.f32.mrb[2].mxu0  ;;  %v3319_v19 = vadd.s32 %v3168_v8, %v747_v0 }
 0x19b   : > { %v614_v23 = vadd.f32 %v2239_v22, %v3173_v9  ;;  %v605_v24 = vpop.f32.mrb[3].mxu0  ;;  %v897_v29 = vsel %vm801_vm1, %v611_v18, 0.0 }
 0x19c   : > { %v606_v26 = vadd.f32 %v3173_v9, %v605_v24  ;;  %v895_v33 = vsel %vm799_vm4, %v603_v21, 0.0  ;;  %v3337_v24 = vadd.s32 %v3168_v8, %v746_v5  ;;  %v755_v5 = vadd.s32 176, %v3163_v4 }
 0x19d   : > { %v898_v30 = vsel %vm802_vm2, %v614_v23, 0.0  ;;  %v2121_v31 = vpack.c.bf16 %v614_v23, %v611_v18 }
 0x19e   : > { %v3230_v34 = vpack.c.bf16 %v898_v30, %v897_v29  ;;  %v896_v35 = vsel %vm800_vm3, %v606_v26, 0.0  ;;  %v2118_v36 = vpack.c.bf16 %v606_v26, %v603_v21 }
 0x19f   : > { %v3241_v37 = vpack.c.bf16 %v896_v35, %v895_v33  ;;  %v3356_v33 = vadd.s32 %v3168_v8, %v745_v17 }
 0x1a0   : > { %4278 = vst [vmem:[#allocation28_spill] sm:$0xff] %v3230_v34  ;;  %v2242_v39 = vpop.f32.mrb[4].mxu0  ;;  %2284 = vmatprep.mubr.msk.bf16.mxu1 %vm2117_vm5, %v2118_v36  ;;  %vm2129_vm5 = vmpackc.low %vm4218_vm15, %vm4219_vm0  ;;  %v751_v36 = vadd.s32 144, %v3163_v4 }
 0x1a1   : > { %4279 = vst [vmem:[#allocation29_spill] sm:$0xff] %v3241_v37  ;;  %v627_v42 = vadd.f32 %v2242_v39, %v3173_v9  ;;  %v618_v43 = vpop.f32.mrb[5].mxu0  ;;  %2285 = vmatmul.mubr.msk.bf16.vlgmr.msra.gmra.mrb[0].mxu1 %vm2120_vm6, %v2121_v31  ;;  %vm2132_vm6 = vmpackc.low %vm810_vm14, %vm809_vm13  ;;  %v752_v39 = vadd.s32 152, %v3163_v4 }
 0x1a2   : > { %v619_v45 = vadd.f32 %v3173_v9, %v618_v43  ;;  %v2243_v46 = vpop.f32.mrb[6].mxu0  ;;  %v3375_v49 = vadd.s32 %v3168_v8, %v751_v36 }
 0x1a3   : > { %v630_v47 = vadd.f32 %v2243_v46, %v3173_v9  ;;  %v621_v48 = vpop.f32.mrb[7].mxu0  ;;  %v901_v53 = vsel %vm805_vm7, %v627_v42, 0.0 }
 0x1a4   : > { %v622_v50 = vadd.f32 %v3173_v9, %v621_v48  ;;  %v899_v57 = vsel %vm803_vm10, %v619_v45, 0.0 }
 0x1a5   : > { %v902_v54 = vsel %vm806_vm8, %v630_v47, 0.0  ;;  %v2127_v55 = vpack.c.bf16 %v630_v47, %v627_v42  ;;  %v750_v42 = vadd.s32 136, %v3163_v4  ;;  %v749_v47 = vadd.s32 128, %v3163_v4 }
 0x1a6   : > { %v3286_v58 = vpack.c.bf16 %v902_v54, %v901_v53  ;;  %v900_v59 = vsel %vm804_vm9, %v622_v50, 0.0  ;;  %v2124_v60 = vpack.c.bf16 %v622_v50, %v619_v45  ;;  %v3378_v50 = vadd.s32 %v3168_v8, %v752_v39 }
 0x1a7   : > { %v3297_v61 = vpack.c.bf16 %v900_v59, %v899_v57  ;;  %v3393_v57 = vadd.s32 %v3168_v8, %v750_v42 }
 0x1a8   : > { %4280 = vst [vmem:[#allocation30_spill] sm:$0xff] %v3286_v58  ;;  %v2246_v63 = vpop.f32.mrb[8].mxu0  ;;  %2288 = vmatprep.mubr.msk.bf16.mxu1 %vm2123_vm11, %v2124_v60  ;;  %vm4223_vm11 = vcmp.lt.s32.totalorder %v3319_v19, %v3184_v13 }
 0x1a9   : > { %4281 = vst [vmem:[#allocation31_spill] sm:$0xff] %v3297_v61  ;;  %v643_v2 = vadd.f32 %v2246_v63, %v3173_v9  ;;  %v634_v3 = vpop.f32.mrb[9].mxu0  ;;  %2289 = vmatmul.mubr.msk.bf16.gmra.mrb[4].mxu1 %vm2126_vm12, %v2127_v55  ;;  %vm4222_vm12 = vcmp.lt.s32.totalorder %v3322_v20, %v3184_v13 }
 0x1aa   : > { %v635_v6 = vadd.f32 %v3173_v9, %v634_v3  ;;  %v2247_v7 = vpop.f32.mrb[10].mxu0 }
 0x1ab   : > { %v646_v15 = vadd.f32 %v2247_v7, %v3173_v9  ;;  %v637_v16 = vpop.f32.mrb[11].mxu0  ;;  %v905_v21 = vsel %vm809_vm13, %v643_v2, 0.0 }
 0x1ac   : > { %v638_v18 = vadd.f32 %v3173_v9, %v637_v16  ;;  %v903_v25 = vsel %vm4219_vm0, %v635_v6, 0.0  ;;  %vm2138_vm0 = vmpackc.low %vm4222_vm12, %vm4223_vm11  ;;  %v754_v16 = vadd.s32 168, %v3163_v4 }
 0x1ad   : > { %v906_v22 = vsel %vm810_vm14, %v646_v15, 0.0  ;;  %v2133_v23 = vpack.c.bf16 %v646_v15, %v643_v2  ;;  %v3412_v2 = vadd.s32 %v3168_v8, %v749_v47 }
 0x1ae   : > { %v3342_v26 = vpack.c.bf16 %v906_v22, %v905_v21  ;;  %v904_v29 = vsel %vm4218_vm15, %v638_v18, 0.0  ;;  %v2130_v30 = vpack.c.bf16 %v638_v18, %v635_v6  ;;  %vm4221_vm15 = vcmp.lt.s32.totalorder %v3356_v33, %v3184_v13 }
 0x1af   : > { %v3353_v31 = vpack.c.bf16 %v904_v29, %v903_v25  ;;  %v756_v6 = vadd.s32 184, %v3163_v4  ;;  %v3431_v29 = vadd.s32 %v3168_v8, %v755_v5 }
 0x1b0   : > { %4282 = vst [vmem:[#allocation32_spill] sm:$0xff] %v3342_v26  ;;  %v2250_v35 = vpop.f32.mrb[12].mxu0  ;;  %2292 = vmatprep.mubr.msk.bf16.mxu1 %vm2129_vm5, %v2130_v30  ;;  %vm4220_vm5 = vcmp.lt.s32.totalorder %v3337_v24, %v3184_v13 }
 0x1b1   : > { %4283 = vst [vmem:[#allocation33_spill] sm:$0xff] %v3353_v31  ;;  %v659_v40 = vadd.f32 %v2250_v35, %v3173_v9  ;;  %v650_v41 = vpop.f32.mrb[13].mxu0  ;;  %2293 = vmatmul.mubr.msk.bf16.gmra.mrb[8].mxu1 %vm2132_vm6, %v2133_v23  ;;  %vm2135_vm6 = vmpackc.low %vm4220_vm5, %vm4221_vm15  ;;  %v753_v23 = vadd.s32 160, %v3163_v4  ;;  %v3434_v30 = vadd.s32 %v3168_v8, %v756_v6  ;;  %v757_v6 = vadd.s32 192, %v3163_v4 }
 0x1b2   : > { %v651_v43 = vadd.f32 %v3173_v9, %v650_v41  ;;  %v2251_v44 = vpop.f32.mrb[14].mxu0 }
 0x1b3   : > { %v662_v45 = vadd.f32 %v2251_v44, %v3173_v9  ;;  %v653_v46 = vpop.f32.mrb[15].mxu0  ;;  %v909_v53 = vsel %vm4223_vm11, %v659_v40, 0.0 }
 0x1b4   : > { %v654_v48 = vadd.f32 %v3173_v9, %v653_v46  ;;  %v907_v59 = vsel %vm4221_vm15, %v651_v43, 0.0  ;;  %vm4226_vm15 = vcmp.lt.s32.totalorder %v3378_v50, %v3184_v13  ;;  %v3468_v46 = vadd.s32 %v3168_v8, %v753_v23 }
 0x1b5   : > { %v910_v54 = vsel %vm4222_vm12, %v662_v45, 0.0  ;;  %v2139_v55 = vpack.c.bf16 %v662_v45, %v659_v40  ;;  %vm4225_vm12 = vcmp.lt.s32.totalorder %v3412_v2, %v3184_v13  ;;  %v3449_v40 = vadd.s32 %v3168_v8, %v754_v16 }
 0x1b6   : > { %v3398_v60 = vpack.c.bf16 %v910_v54, %v909_v53  ;;  %v908_v63 = vsel %vm4220_vm5, %v654_v48, 0.0  ;;  %v2136_v0 = vpack.c.bf16 %v654_v48, %v651_v43  ;;  %vm4227_vm5 = vcmp.lt.s32.totalorder %v3375_v49, %v3184_v13 }
 0x1b7   : > { %v3409_v1 = vpack.c.bf16 %v908_v63, %v907_v59  ;;  %vm2144_vm11 = vmpackc.low %vm4226_vm15, %vm4227_vm5  ;;  %v759_v48 = vadd.s32 208, %v3163_v4  ;;  %v760_v53 = vadd.s32 216, %v3163_v4  ;;  %v758_v59 = vadd.s32 200, %v3163_v4 }
 0x1b8   : > { %4284 = vst [vmem:[#allocation34_spill] sm:$0xff] %v3398_v60  ;;  %v2254_v3 = vpop.f32.mrb[16].mxu0  ;;  %2296 = vmatprep.mubr.msk.bf16.mxu1 %vm2135_vm6, %v2136_v0  ;;  %vm4224_vm6 = vcmp.lt.s32.totalorder %v3393_v57, %v3184_v13 }
 0x1b9   : > { %4285 = vst [vmem:[#allocation35_spill] sm:$0xff] %v3409_v1  ;;  %v675_v7 = vadd.f32 %v2254_v3, %v3173_v9  ;;  %v666_v15 = vpop.f32.mrb[17].mxu0  ;;  %2297 = vmatmul.mubr.msk.bf16.gmra.mrb[12].mxu1 %vm2138_vm0, %v2139_v55  ;;  %vm2141_vm0 = vmpackc.low %vm4224_vm6, %vm4225_vm12  ;;  %v3490_v16 = vadd.s32 %v3168_v8, %v760_v53 }
 0x1ba   : > { %v667_v17 = vadd.f32 %v3173_v9, %v666_v15  ;;  %v2255_v18 = vpop.f32.mrb[18].mxu0  ;;  %v3487_v15 = vadd.s32 %v3168_v8, %v759_v48 }
 0x1bb   : > { %v678_v21 = vadd.f32 %v2255_v18, %v3173_v9  ;;  %v669_v22 = vpop.f32.mrb[19].mxu0  ;;  %v913_v35 = vsel %vm4227_vm5, %v675_v7, 0.0 }
 0x1bc   : > { %v670_v25 = vadd.f32 %v3173_v9, %v669_v22  ;;  %v911_v41 = vsel %vm4225_vm12, %v667_v17, 0.0  ;;  %vm4229_vm12 = vcmp.lt.s32.totalorder %v3434_v30, %v3184_v13  ;;  %v3505_v22 = vadd.s32 %v3168_v8, %v758_v59 }
 0x1bd   : > { %v914_v36 = vsel %vm4226_vm15, %v678_v21, 0.0  ;;  %v2145_v39 = vpack.c.bf16 %v678_v21, %v675_v7  ;;  %vm4228_vm15 = vcmp.lt.s32.totalorder %v3468_v46, %v3184_v13 }
 0x1be   : > { %v3454_v42 = vpack.c.bf16 %v914_v36, %v913_v35  ;;  %v912_v43 = vsel %vm4224_vm6, %v670_v25, 0.0  ;;  %v2142_v44 = vpack.c.bf16 %v670_v25, %v667_v17  ;;  %vm4231_vm6 = vcmp.lt.s32.totalorder %v3431_v29, %v3184_v13 }
 0x1bf   : > { %v3465_v45 = vpack.c.bf16 %v912_v43, %v911_v41  ;;  %vm2150_vm5 = vmpackc.low %vm4229_vm12, %vm4231_vm6  ;;  %v3524_v41 = vadd.s32 %v3168_v8, %v757_v6 }
 0x1c0   : > { %4286 = vst [vmem:[#allocation36_spill] sm:$0xff] %v3454_v42  ;;  %v2258_v47 = vpop.f32.mrb[20].mxu0  ;;  %2300 = vmatprep.mubr.msk.bf16.mxu1 %vm2141_vm0, %v2142_v44  ;;  %vm4230_vm0 = vcmp.lt.s32.totalorder %v3449_v40, %v3184_v13  ;;  %v763_v44 = vadd.s32 240, %v3163_v4 }
 0x1c1   : > { %4287 = vst [vmem:[#allocation37_spill] sm:$0xff] %v3465_v45  ;;  %v691_v54 = vadd.f32 %v2258_v47, %v3173_v9  ;;  %v682_v55 = vpop.f32.mrb[21].mxu0  ;;  %2301 = vmatmul.mubr.msk.bf16.gmra.mrb[16].mxu1 %vm2144_vm11, %v2145_v39  ;;  %vm2147_vm11 = vmpackc.low %vm4230_vm0, %vm4228_vm15  ;;  %v764_v47 = vadd.s32 248, %v3163_v4 }
 0x1c2   : > { %v683_v63 = vadd.f32 %v3173_v9, %v682_v55  ;;  %v2259_v0 = vpop.f32.mrb[22].mxu0  ;;  %v3543_v6 = vadd.s32 %v3168_v8, %v763_v44 }
 0x1c3   : > { %v694_v3 = vadd.f32 %v2259_v0, %v3173_v9  ;;  %v685_v5 = vpop.f32.mrb[23].mxu0  ;;  %v917_v17 = vsel %vm4231_vm6, %v691_v54, 0.0 }
 0x1c4   : > { %v686_v7 = vadd.f32 %v3173_v9, %v685_v5  ;;  %v915_v23 = vsel %vm4228_vm15, %v683_v63, 0.0  ;;  %vm4234_vm15 = vcmp.lt.s32.totalorder %v3487_v15, %v3184_v13 }
 0x1c5   : > { %v918_v18 = vsel %vm4229_vm12, %v694_v3, 0.0  ;;  %v2151_v21 = vpack.c.bf16 %v694_v3, %v691_v54  ;;  %v762_v54 = vadd.s32 232, %v3163_v4  ;;  %vm4233_vm12 = vcmp.lt.s32.totalorder %v3490_v16, %v3184_v13 }
 0x1c6   : > { %v3510_v25 = vpack.c.bf16 %v918_v18, %v917_v17  ;;  %v916_v35 = vsel %vm4230_vm0, %v686_v7, 0.0  ;;  %v2148_v36 = vpack.c.bf16 %v686_v7, %v683_v63  ;;  %vm4232_vm0 = vcmp.lt.s32.totalorder %v3524_v41, %v3184_v13  ;;  %vm2156_vm6 = vmpackc.low %vm4233_vm12, %vm4234_vm15 }
 0x1c7   : > { %v3521_v39 = vpack.c.bf16 %v916_v35, %v915_v23  ;;  %v761_v3 = vadd.s32 224, %v3163_v4  ;;  %v3546_v7 = vadd.s32 %v3168_v8, %v764_v47  ;;  %v3561_v23 = vadd.s32 %v3168_v8, %v762_v54 }
 0x1c8   : > { %4288 = vst [vmem:[#allocation38_spill] sm:$0xff] %v3510_v25  ;;  %v2262_v43 = vpop.f32.mrb[24].mxu0  ;;  %2304 = vmatprep.mubr.msk.bf16.mxu1 %vm2147_vm11, %v2148_v36  ;;  %vm4235_vm11 = vcmp.lt.s32.totalorder %v3505_v22, %v3184_v13  ;;  %v3696_v25 = vld [vmem:[#allocation7] ss:$0 sm:$0xff] }
 0x1c9   : > { %4289 = vst [vmem:[#allocation39_spill] sm:$0xff] %v3521_v39  ;;  %v707_v48 = vadd.f32 %v2262_v43, %v3173_v9  ;;  %v698_v53 = vpop.f32.mrb[25].mxu0  ;;  %2305 = vmatmul.mubr.msk.bf16.gmra.mrb[20].mxu1 %vm2150_vm5, %v2151_v21  ;;  %vm2153_vm5 = vmpackc.low %vm4235_vm11, %vm4232_vm0 }
 0x1ca   : > { %v699_v55 = vadd.f32 %v3173_v9, %v698_v53  ;;  %v2263_v59 = vpop.f32.mrb[26].mxu0 }
 0x1cb   : > { %v710_v63 = vadd.f32 %v2263_v59, %v3173_v9  ;;  %v701_v0 = vpop.f32.mrb[27].mxu0  ;;  %v921_v17 = vsel %vm4234_vm15, %v707_v48, 0.0  ;;  %vm828_vm15 = vcmp.lt.s32.totalorder %v3561_v23, %v3184_v13 }
 0x1cc   : > { %v702_v5 = vadd.f32 %v3173_v9, %v701_v0  ;;  %v919_v35 = vsel %vm4232_vm0, %v699_v55, 0.0  ;;  %vm829_vm0 = vcmp.lt.s32.totalorder %v3543_v6, %v3184_v13 }
 0x1cd   : > { %v922_v18 = vsel %vm4233_vm12, %v710_v63, 0.0  ;;  %v2157_v21 = vpack.c.bf16 %v710_v63, %v707_v48  ;;  %v3580_v48 = vadd.s32 %v3168_v8, %v761_v3  ;;  %vm830_vm12 = vcmp.lt.s32.totalorder %v3546_v7, %v3184_v13 }
 0x1ce   : > { %v3566_v36 = vpack.c.bf16 %v922_v18, %v921_v17  ;;  %v920_v43 = vsel %vm4235_vm11, %v702_v5, 0.0  ;;  %v2154_v44 = vpack.c.bf16 %v702_v5, %v699_v55 }
 0x1cf   : > { %v3577_v47 = vpack.c.bf16 %v920_v43, %v919_v35  ;;  %vm827_vm11 = vcmp.lt.s32.totalorder %v3580_v48, %v3184_v13 }
 0x1d0   : > { %4290 = vst [vmem:[#allocation40_spill] sm:$0xff] %v3566_v36  ;;  %v2266_v53 = vpop.f32.mrb[28].mxu0  ;;  %2308 = vmatprep.mubr.msk.bf16.mxu1 %vm2153_vm5, %v2154_v44  ;;  %vm2162_vm5 = vmpackc.low %vm830_vm12, %vm829_vm0 }
 0x1d1   : > { %4291 = vst [vmem:[#allocation41_spill] sm:$0xff] %v3577_v47  ;;  %v723_v54 = vadd.f32 %v2266_v53, %v3173_v9  ;;  %v714_v59 = vpop.f32.mrb[29].mxu0  ;;  %2309 = vmatmul.mubr.msk.bf16.gmra.mrb[24].mxu1 %vm2156_vm6, %v2157_v21  ;;  %vm2159_vm6 = vmpackc.low %vm828_vm15, %vm827_vm11  ;;  %v3625_v53 = vld [vmem:[%s4294_s28] ss:$0 sm:$0xff] }
 0x1d2   : > { %v715_v55 = vadd.f32 %v3173_v9, %v714_v59  ;;  %v2267_v63 = vpop.f32.mrb[30].mxu0 }
 0x1d3   : > { %v726_v8 = vadd.f32 %v2267_v63, %v3173_v9  ;;  %v717_v0 = vpop.f32.mrb[31].mxu0  ;;  %v925_v5 = vsel %vm829_vm0, %v723_v54, 0.0 }
 0x1d4   : > { %v718_v3 = vadd.f32 %v3173_v9, %v717_v0  ;;  %v923_v9 = vsel %vm827_vm11, %v715_v55, 0.0 }
 0x1d5   : > { %v926_v17 = vsel %vm830_vm12, %v726_v8, 0.0  ;;  %v2163_v18 = vpack.c.bf16 %v726_v8, %v723_v54 }
 0x1d6   : > { %v3609_v21 = vpack.c.bf16 %v926_v17, %v925_v5  ;;  %v924_v35 = vsel %vm828_vm15, %v718_v3, 0.0  ;;  %v2160_v43 = vpack.c.bf16 %v718_v3, %v715_v55 }
 0x1d7   : > { %v3620_v44 = vpack.c.bf16 %v924_v35, %v923_v9 }
 0x1d8   : > { %4292 = vst [vmem:[#allocation42_spill] sm:$0xff] %v3609_v21  ;;  %2312 = vmatprep.mubr.msk.bf16.mxu1 %vm2159_vm6, %v2160_v43  ;;  %vm1382_vm6 = vcmask 7168  }
 0x1d9   : > { %4293 = vst [vmem:[#allocation43_spill] sm:$0xff] %v3620_v44  ;;  %2313 = vmatmul.mubr.msk.bf16.gmra.mrb[28].mxu1 %vm2162_vm5, %v2163_v18  ;;  %vm4306_vm5 = vcmp.lt.s32.totalorder %v3431_v29, %v3184_v13 }
 0x274   : > { %v2286_v54 = vpop.f32.mrb[0].mxu1 }
 0x275   : > { %v1057_v59 = vadd.f32 %v2286_v54, %v3625_v53  ;;  %v1048_v55 = vpop.f32.mrb[1].mxu1 }
 0x276   : > { %v1049_v63 = vadd.f32 %v3625_v53, %v1048_v55  ;;  %v2287_v8 = vpop.f32.mrb[2].mxu1 }
 0x277   : > { %2458 = vtanh.f32 %v1057_v59  ;;  %v1060_v0 = vadd.f32 %v2287_v8, %v3625_v53  ;;  %v1051_v3 = vpop.f32.mrb[3].mxu1  ;;  %v3637_v59 = vld [vmem:[%s4295_s20] ss:$0 sm:$0xff] }
 0x278   : > { %2460 = vtanh.f32 %v1049_v63  ;;  %v1052_v5 = vadd.f32 %v3625_v53, %v1051_v3 }
 0x279   : > { %2462 = vtanh.f32 %v1060_v0 }
 0x27a   : > { %2464 = vtanh.f32 %v1052_v5 }
 0x27c   : > { %v2290_v17 = vpop.f32.mrb[4].mxu1 }
 0x27d   : > { %v1073_v18 = vadd.f32 %v2290_v17, %v3625_v53  ;;  %v1064_v9 = vpop.f32.mrb[5].mxu1 }
 0x27e   : > { %v1065_v35 = vadd.f32 %v3625_v53, %v1064_v9  ;;  %v2291_v43 = vpop.f32.mrb[6].mxu1 }
 0x27f   : > { %2466 = vtanh.f32 %v1073_v18  ;;  %v1076_v54 = vadd.f32 %v2291_v43, %v3625_v53  ;;  %v1067_v55 = vpop.f32.mrb[7].mxu1 }
 0x280   : > { %v1068_v63 = vadd.f32 %v3625_v53, %v1067_v55 }
 0x281   : > { %v2459_v8 = vpop.eup %2458  ;;  %2468 = vtanh.f32 %v1076_v54 }
 0x282   : > { %v2461_v0 = vpop.eup %2460  ;;  %2470 = vtanh.f32 %v1065_v35  ;;  %v1216_v3 = vmul.f32 %v2459_v8, %v3637_v59 }
 0x283   : > { %v2463_v5 = vpop.eup %2462  ;;  %2472 = vtanh.f32 %v1068_v63  ;;  %v1214_v17 = vmul.f32 %v2461_v0, %v3637_v59 }
 0x284   : > { %v2465_v18 = vpop.eup %2464  ;;  %1250 = vadd.xlane.f32.xlu1 %v1216_v3  ;;  %v2294_v9 = vpop.f32.mrb[8].mxu1  ;;  %v1217_v54 = vmul.f32 %v2463_v5, %v3637_v59 }
 0x285   : > { %v1089_v43 = vadd.f32 %v2294_v9, %v3625_v53  ;;  %v1080_v21 = vpop.f32.mrb[9].mxu1  ;;  %1246 = vadd.xlane.f32.xlu0 %v1214_v17  ;;  %v1215_v63 = vmul.f32 %v2465_v18, %v3637_v59 }
 0x286   : > { %v1081_v44 = vadd.f32 %v3625_v53, %v1080_v21  ;;  %v2295_v55 = vpop.f32.mrb[10].mxu1 }
 0x287   : > { %2474 = vtanh.f32 %v1089_v43  ;;  %v1092_v35 = vadd.f32 %v2295_v55, %v3625_v53  ;;  %v1083_v8 = vpop.f32.mrb[11].mxu1 }
 0x288   : > { %v1084_v0 = vadd.f32 %v3625_v53, %v1083_v8  ;;  %1252 = vadd.xlane.f32.xlu1 %v1217_v54 }
 0x289   : > { %v2467_v3 = vpop.eup %2466  ;;  %2476 = vtanh.f32 %v1092_v35  ;;  %1248 = vadd.xlane.f32.xlu0 %v1215_v63 }
 0x28a   : > { %2478 = vtanh.f32 %v1081_v44  ;;  %v1220_v17 = vmul.f32 %v2467_v3, %v3637_v59 }
 0x28b   : > { %v2469_v9 = vpop.eup %2468  ;;  %2480 = vtanh.f32 %v1084_v0 }
 0x28c   : > { %v2471_v21 = vpop.eup %2470  ;;  %v2298_v36 = vpop.f32.mrb[12].mxu1  ;;  %v1221_v5 = vmul.f32 %v2469_v9, %v3637_v59 }
 0x28d   : > { %v2473_v43 = vpop.eup %2472  ;;  %v1105_v55 = vadd.f32 %v2298_v36, %v3625_v53  ;;  %v1096_v47 = vpop.f32.mrb[13].mxu1  ;;  %1258 = vadd.xlane.f32.xlu0 %v1220_v17  ;;  %v1218_v8 = vmul.f32 %v2471_v21, %v3637_v59 }
 0x28e   : > { %v1097_v18 = vadd.f32 %v3625_v53, %v1096_v47  ;;  %1260 = vadd.xlane.f32.xlu1 %v1221_v5  ;;  %v2299_v54 = vpop.f32.mrb[14].mxu1  ;;  %v1219_v0 = vmul.f32 %v2473_v43, %v3637_v59 }
 0x28f   : > { %2482 = vtanh.f32 %v1105_v55  ;;  %v1108_v44 = vadd.f32 %v2299_v54, %v3625_v53  ;;  %v1099_v35 = vpop.f32.mrb[15].mxu1 }
 0x290   : > { %v1100_v63 = vadd.f32 %v3625_v53, %v1099_v35 }
 0x291   : > { %v2475_v3 = vpop.eup %2474  ;;  %2484 = vtanh.f32 %v1108_v44  ;;  %1254 = vadd.xlane.f32.xlu0 %v1218_v8 }
 0x292   : > { %2486 = vtanh.f32 %v1097_v18  ;;  %1256 = vadd.xlane.f32.xlu1 %v1219_v0  ;;  %v1224_v36 = vmul.f32 %v2475_v3, %v3637_v59 }
 0x293   : > { %v2477_v47 = vpop.eup %2476  ;;  %2488 = vtanh.f32 %v1100_v63 }
 0x294   : > { %v2479_v17 = vpop.eup %2478  ;;  %v2302_v9 = vpop.f32.mrb[16].mxu1  ;;  %v1225_v5 = vmul.f32 %v2477_v47, %v3637_v59 }
 0x295   : > { %v2481_v55 = vpop.eup %2480  ;;  %v1121_v21 = vadd.f32 %v2302_v9, %v3625_v53  ;;  %v1112_v54 = vpop.f32.mrb[17].mxu1  ;;  %1266 = vadd.xlane.f32.xlu0 %v1224_v36  ;;  %v1222_v8 = vmul.f32 %v2479_v17, %v3637_v59 }
 0x296   : > { %v1113_v43 = vadd.f32 %v3625_v53, %v1112_v54  ;;  %v2303_v35 = vpop.f32.mrb[18].mxu1  ;;  %1268 = vadd.xlane.f32.xlu1 %v1225_v5  ;;  %v1223_v0 = vmul.f32 %v2481_v55, %v3637_v59 }
 0x297   : > { %2490 = vtanh.f32 %v1121_v21  ;;  %v1124_v18 = vadd.f32 %v2303_v35, %v3625_v53  ;;  %v1115_v44 = vpop.f32.mrb[19].mxu1 }
 0x298   : > { %v1116_v63 = vadd.f32 %v3625_v53, %v1115_v44 }
 0x299   : > { %v2483_v3 = vpop.eup %2482  ;;  %2492 = vtanh.f32 %v1124_v18  ;;  %1262 = vadd.xlane.f32.xlu0 %v1222_v8 }
 0x29a   : > { %2494 = vtanh.f32 %v1113_v43  ;;  %1264 = vadd.xlane.f32.xlu1 %v1223_v0  ;;  %v1228_v36 = vmul.f32 %v2483_v3, %v3637_v59 }
 0x29b   : > { %v2485_v47 = vpop.eup %2484  ;;  %2496 = vtanh.f32 %v1116_v63 }
 0x29c   : > { %v2487_v9 = vpop.eup %2486  ;;  %v2306_v5 = vpop.f32.mrb[20].mxu1  ;;  %v1229_v21 = vmul.f32 %v2485_v47, %v3637_v59 }
 0x29d   : > { %v2489_v54 = vpop.eup %2488  ;;  %v1137_v17 = vadd.f32 %v2306_v5, %v3625_v53  ;;  %v1128_v35 = vpop.f32.mrb[21].mxu1  ;;  %1274 = vadd.xlane.f32.xlu0 %v1228_v36  ;;  %v1226_v8 = vmul.f32 %v2487_v9, %v3637_v59 }
 0x29e   : > { %v1129_v55 = vadd.f32 %v3625_v53, %v1128_v35  ;;  %v2307_v44 = vpop.f32.mrb[22].mxu1  ;;  %1276 = vadd.xlane.f32.xlu1 %v1229_v21  ;;  %v1227_v0 = vmul.f32 %v2489_v54, %v3637_v59 }
 0x29f   : > { %2498 = vtanh.f32 %v1137_v17  ;;  %v1140_v43 = vadd.f32 %v2307_v44, %v3625_v53  ;;  %v1131_v18 = vpop.f32.mrb[23].mxu1 }
 0x2a0   : > { %v1132_v63 = vadd.f32 %v3625_v53, %v1131_v18 }
 0x2a1   : > { %v2491_v3 = vpop.eup %2490  ;;  %2500 = vtanh.f32 %v1140_v43  ;;  %1270 = vadd.xlane.f32.xlu0 %v1226_v8 }
 0x2a2   : > { %2502 = vtanh.f32 %v1129_v55  ;;  %1272 = vadd.xlane.f32.xlu1 %v1227_v0  ;;  %v1232_v36 = vmul.f32 %v2491_v3, %v3637_v59 }
 0x2a3   : > { %v2493_v47 = vpop.eup %2492  ;;  %2504 = vtanh.f32 %v1132_v63 }
 0x2a4   : > { %v2495_v5 = vpop.eup %2494  ;;  %v2310_v21 = vpop.f32.mrb[24].mxu1  ;;  %v1233_v17 = vmul.f32 %v2493_v47, %v3637_v59 }
 0x2a5   : > { %v2497_v35 = vpop.eup %2496  ;;  %v1153_v9 = vadd.f32 %v2310_v21, %v3625_v53  ;;  %v1144_v44 = vpop.f32.mrb[25].mxu1  ;;  %1282 = vadd.xlane.f32.xlu0 %v1232_v36  ;;  %v1230_v8 = vmul.f32 %v2495_v5, %v3637_v59 }
 0x2a6   : > { %v1145_v54 = vadd.f32 %v3625_v53, %v1144_v44  ;;  %v2311_v18 = vpop.f32.mrb[26].mxu1  ;;  %1284 = vadd.xlane.f32.xlu1 %v1233_v17  ;;  %v1231_v0 = vmul.f32 %v2497_v35, %v3637_v59 }
 0x2a7   : > { %2506 = vtanh.f32 %v1153_v9  ;;  %v1156_v55 = vadd.f32 %v2311_v18, %v3625_v53  ;;  %v1147_v43 = vpop.f32.mrb[27].mxu1 }
 0x2a8   : > { %v1148_v63 = vadd.f32 %v3625_v53, %v1147_v43 }
 0x2a9   : > { %v2499_v3 = vpop.eup %2498  ;;  %2508 = vtanh.f32 %v1156_v55  ;;  %1278 = vadd.xlane.f32.xlu0 %v1230_v8 }
 0x2aa   : > { %2510 = vtanh.f32 %v1145_v54  ;;  %1280 = vadd.xlane.f32.xlu1 %v1231_v0  ;;  %v1236_v36 = vmul.f32 %v2499_v3, %v3637_v59 }
 0x2ab   : > { %v2501_v47 = vpop.eup %2500  ;;  %2512 = vtanh.f32 %v1148_v63 }
 0x2ac   : > { %v2503_v21 = vpop.eup %2502  ;;  %v2314_v17 = vpop.f32.mrb[28].mxu1  ;;  %v1237_v9 = vmul.f32 %v2501_v47, %v3637_v59 }
 0x2ad   : > { %v2505_v44 = vpop.eup %2504  ;;  %v1169_v5 = vadd.f32 %v2314_v17, %v3625_v53  ;;  %v1160_v18 = vpop.f32.mrb[29].mxu1  ;;  %1290 = vadd.xlane.f32.xlu0 %v1236_v36  ;;  %v1234_v54 = vmul.f32 %v2503_v21, %v3637_v59 }
 0x2ae   : > { %v1161_v35 = vadd.f32 %v3625_v53, %v1160_v18  ;;  %v2315_v43 = vpop.f32.mrb[30].mxu1  ;;  %1292 = vadd.xlane.f32.xlu1 %v1237_v9  ;;  %v1235_v0 = vmul.f32 %v2505_v44, %v3637_v59 }
 0x2af   : > { %v1163_v55 = vpop.f32.mrb[31].mxu1  ;;  %v1172_v8 = vadd.f32 %v2315_v43, %v3625_v53 }
 0x2b0   : > { %2514 = vtanh.f32 %v1161_v35  ;;  %v1164_v63 = vadd.f32 %v3625_v53, %v1163_v55 }
 0x2b1   : > { %v2507_v3 = vpop.eup %2506  ;;  %2516 = vtanh.f32 %v1169_v5  ;;  %1286 = vadd.xlane.f32.xlu0 %v1234_v54 }
 0x2b2   : > { %2518 = vtanh.f32 %v1164_v63  ;;  %1288 = vadd.xlane.f32.xlu1 %v1235_v0  ;;  %v1240_v36 = vmul.f32 %v2507_v3, %v3637_v59 }
 0x2b3   : > { %v2509_v47 = vpop.eup %2508  ;;  %2520 = vtanh.f32 %v1172_v8 }
 0x2b4   : > { %v2511_v17 = vpop.eup %2510  ;;  %v1241_v9 = vmul.f32 %v2509_v47, %v3637_v59 }
 0x2b5   : > { %v2513_v21 = vpop.eup %2512  ;;  %1298 = vadd.xlane.f32.xlu0 %v1240_v36  ;;  %v1238_v18 = vmul.f32 %v2511_v17, %v3637_v59 }
 0x2b6   : > { %1300 = vadd.xlane.f32.xlu1 %v1241_v9  ;;  %v1239_v53 = vmul.f32 %v2513_v21, %v3637_v59  ;;  %v2809_v21 = vmov 0  }
 0x2b7   : > { %2440 = vset.pattern.permute.xlu0 %v2809_v21  ;;  %2441 = vset.pattern.permute.xlu1 %v2809_v21 }
 0x2b9   : > { %1294 = vadd.xlane.f32.xlu0 %v1238_v18 }
 0x2ba   : > { %v2515_v44 = vpop.eup %2514  ;;  %1296 = vadd.xlane.f32.xlu1 %v1239_v53 }
 0x2bb   : > { %v2517_v5 = vpop.eup %2516  ;;  %v1242_v35 = vmul.f32 %v2515_v44, %v3637_v59 }
 0x2bc   : > { %v2519_v43 = vpop.eup %2518  ;;  %v1244_v8 = vmul.f32 %v2517_v5, %v3637_v59 }
 0x2bd   : > { %1302 = vadd.xlane.f32.xlu0 %v1242_v35  ;;  %v1243_v55 = vmul.f32 %v2519_v43, %v3637_v59  ;;  %v2521_v54 = vpop.eup %2520 }
 0x2be   : > { %v1245_v63 = vmul.f32 %v2521_v54, %v3637_v59 }
 0x2bf   : > { %1304 = vadd.xlane.f32.xlu1 %v1243_v55 }
 0x2c1   : > { %1306 = vadd.xlane.f32.xlu0 %v1244_v8 }
 0x2c3   : > { %1308 = vadd.xlane.f32.xlu1 %v1245_v63 }
 0x311   : > { %v1251_v0 = vpop.xlane.xlu1 %1250 }
 0x312   : > { %v1247_v3 = vpop.xlane.xlu0 %1246  ;;  %v1319_v63 = vadd.f32 %v3696_v25, %v1251_v0 }
 0x313   : > { %v1317_v1 = vadd.f32 %v3696_v25, %v1247_v3 }
 0x314   : > { %v3704_v60 = vsel %vm801_vm1, %v1319_v63, -inf  ;;  %vm4296_vm1 = vcmp.lt.s32.totalorder %v3300_v62, %v3184_v13 }
 0x315   : > { %v1253_v47 = vpop.xlane.xlu1 %1252  ;;  %v1385_v10 = vsel %vm1382_vm6, %v3704_v60, -inf }
 0x316   : > { %v1249_v36 = vpop.xlane.xlu0 %1248  ;;  %v1320_v26 = vadd.f32 %v3696_v25, %v1253_v47 }
 0x317   : > { %v1318_v0 = vadd.f32 %v3696_v25, %v1249_v36  ;;  %v3727_v36 = vsel %vm799_vm4, %v1317_v1, -inf  ;;  %vm4299_vm4 = vcmp.lt.s32.totalorder %v3322_v20, %v3184_v13 }
 0x318   : > { %v3732_v27 = vsel %vm802_vm2, %v1320_v26, -inf  ;;  %vm4297_vm2 = vcmp.lt.s32.totalorder %v3281_v56, %v3184_v13 }
 0x319   : > { %v1386_v63 = vsel %vm1382_vm6, %v3732_v27, -inf }
 0x31a   : > { %v1259_v17 = vpop.xlane.xlu0 %1258 }
 0x31b   : > { %v1261_v9 = vpop.xlane.xlu1 %1260  ;;  %v1323_v42 = vadd.f32 %v3696_v25, %v1259_v17 }
 0x31c   : > { %v1324_v21 = vadd.f32 %v3696_v25, %v1261_v9 }
 0x31d   : > { %v3713_v17 = vsel %vm805_vm7, %v1323_v42, -inf  ;;  %vm4300_vm7 = vcmp.lt.s32.totalorder %v3356_v33, %v3184_v13 }
 0x31e   : > { %v1255_v18 = vpop.xlane.xlu0 %1254  ;;  %v3721_v3 = vsel %vm806_vm8, %v1324_v21, -inf  ;;  %v1391_v14 = vsel %vm1382_vm6, %v3713_v17, -inf  ;;  %vm4301_vm8 = vcmp.lt.s32.totalorder %v3337_v24, %v3184_v13 }
 0x31f   : > { %v1257_v53 = vpop.xlane.xlu1 %1256  ;;  %v1321_v31 = vadd.f32 %v3696_v25, %v1255_v18  ;;  %v3743_v18 = vsel %vm800_vm3, %v1318_v0, -inf  ;;  %v1393_v38 = vsel %vm1382_vm6, %v3721_v3, -inf  ;;  %vm4298_vm3 = vcmp.lt.s32.totalorder %v3319_v19, %v3184_v13 }
 0x320   : > { %v1322_v9 = vadd.f32 %v3696_v25, %v1257_v53  ;;  %v1394_v0 = vmax.f32 %v1386_v63, %v1393_v38 }
 0x321   : > { %v3737_v42 = vsel %vm803_vm10, %v1321_v31, -inf  ;;  %vm4303_vm10 = vcmp.lt.s32.totalorder %v3378_v50, %v3184_v13 }
 0x322   : > { %v1267_v44 = vpop.xlane.xlu0 %1266  ;;  %v3754_v31 = vsel %vm804_vm9, %v1322_v9, -inf  ;;  %vm4302_vm9 = vcmp.lt.s32.totalorder %v3375_v49, %v3184_v13 }
 0x323   : > { %v1269_v35 = vpop.xlane.xlu1 %1268  ;;  %v1327_v47 = vadd.f32 %v3696_v25, %v1267_v44  ;;  %v1389_v51 = vsel %vm1382_vm6, %v3754_v31, -inf }
 0x324   : > { %v1328_v28 = vadd.f32 %v3696_v25, %v1269_v35  ;;  %v1383_v35 = vsel %vm1382_vm6, %v3727_v36, -inf }
 0x326   : > { %v1263_v43 = vpop.xlane.xlu0 %1262  ;;  %v3775_v21 = vsel %vm810_vm14, %v1328_v28, -inf  ;;  %vm4305_vm14 = vcmp.lt.s32.totalorder %v3393_v57, %v3184_v13 }
 0x327   : > { %v1265_v55 = vpop.xlane.xlu1 %1264  ;;  %v1325_v1 = vadd.f32 %v3696_v25, %v1263_v43  ;;  %v1387_v43 = vsel %vm1382_vm6, %v3737_v42, -inf  ;;  %v1401_v56 = vsel %vm1382_vm6, %v3775_v21, -inf }
 0x328   : > { %v1326_v11 = vadd.f32 %v3696_v25, %v1265_v55  ;;  %v3765_v55 = vsel %vm809_vm13, %v1327_v47, -inf  ;;  %v1388_v47 = vmax.f32 %v1383_v35, %v1387_v43  ;;  %v1402_v63 = vmax.f32 %v1394_v0, %v1401_v56 }
 0x329   : > { %v1399_v52 = vsel %vm1382_vm6, %v3765_v55, -inf  ;;  %vm4304_vm13 = vcmp.lt.s32.totalorder %v3412_v2, %v3184_v13 }
 0x32a   : > { %v1275_v5 = vpop.xlane.xlu0 %1274  ;;  %v3787_v9 = vsel %vm4297_vm2, %v1326_v11, -inf  ;;  %vm4308_vm2 = vcmp.lt.s32.totalorder %v3434_v30, %v3184_v13 }
 0x32b   : > { %v1277_v8 = vpop.xlane.xlu1 %1276  ;;  %v1331_v12 = vadd.f32 %v3696_v25, %v1275_v5  ;;  %v1384_v5 = vsel %vm1382_vm6, %v3743_v18, -inf  ;;  %v1397_v20 = vsel %vm1382_vm6, %v3787_v9, -inf }
 0x32c   : > { %v1332_v53 = vadd.f32 %v3696_v25, %v1277_v8  ;;  %v1392_v8 = vmax.f32 %v1385_v10, %v1391_v14  ;;  %v1390_v38 = vmax.f32 %v1384_v5, %v1389_v51 }
 0x32d   : > { %v3794_v28 = vsel %vm4298_vm3, %v1331_v12, -inf  ;;  %vm4309_vm3 = vcmp.lt.s32.totalorder %v3468_v46, %v3184_v13 }
 0x32e   : > { %v1271_v59 = vpop.xlane.xlu0 %1270  ;;  %v3799_v62 = vsel %vm4299_vm4, %v1332_v53, -inf  ;;  %v1407_v35 = vsel %vm1382_vm6, %v3794_v28, -inf  ;;  %vm4310_vm4 = vcmp.lt.s32.totalorder %v3505_v22, %v3184_v13 }
 0x32f   : > { %v1273_v54 = vpop.xlane.xlu1 %1272  ;;  %v1329_v32 = vadd.f32 %v3696_v25, %v1271_v59  ;;  %v3782_v59 = vsel %vm4296_vm1, %v1325_v1, -inf  ;;  %v1409_v33 = vsel %vm1382_vm6, %v3799_v62, -inf  ;;  %vm4307_vm1 = vcmp.lt.s32.totalorder %v3449_v40, %v3184_v13 }
 0x330   : > { %v1330_v11 = vadd.f32 %v3696_v25, %v1273_v54  ;;  %v1395_v12 = vsel %vm1382_vm6, %v3782_v59, -inf }
 0x331   : > { %v3806_v1 = vsel %vm4300_vm7, %v1329_v32, -inf  ;;  %v1400_v32 = vmax.f32 %v1392_v8, %v1399_v52  ;;  %v1398_v8 = vmax.f32 %v1390_v38, %v1397_v20  ;;  %v1410_v52 = vmax.f32 %v1402_v63, %v1409_v33 }
 0x332   : > { %v1283_v39 = vpop.xlane.xlu0 %1282  ;;  %v1403_v5 = vsel %vm1382_vm6, %v3806_v1, -inf  ;;  %v3827_v37 = vsel %vm4301_vm8, %v1330_v11, -inf  ;;  %vm4311_vm7 = vcmp.lt.s32.totalorder %v3487_v15, %v3184_v13  ;;  %vm4312_vm8 = vcmp.lt.s32.totalorder %v3490_v16, %v3184_v13 }
 0x333   : > { %v1285_v45 = vpop.xlane.xlu1 %1284  ;;  %v1335_v19 = vadd.f32 %v3696_v25, %v1283_v39  ;;  %v1408_v0 = vmax.f32 %v1400_v32, %v1407_v35  ;;  %v1405_v11 = vsel %vm1382_vm6, %v3827_v37, -inf }
 0x334   : > { %v1336_v53 = vadd.f32 %v3696_v25, %v1285_v45  ;;  %v1396_v45 = vmax.f32 %v1388_v47, %v1395_v12  ;;  %v1406_v33 = vmax.f32 %v1398_v8, %v1405_v11 }
 0x336   : > { %v1279_v58 = vpop.xlane.xlu0 %1278  ;;  %v1404_v47 = vmax.f32 %v1396_v45, %v1403_v5 }
 0x337   : > { %v1281_v61 = vpop.xlane.xlu1 %1280  ;;  %v1333_v43 = vadd.f32 %v3696_v25, %v1279_v58  ;;  %v3832_v58 = vsel %vm4302_vm9, %v1335_v19, -inf  ;;  %vm4313_vm9 = vcmp.lt.s32.totalorder %v3524_v41, %v3184_v13  ;;  %v1459_v13 = vsub.s32 0, %v3163_v4 }
 0x338   : > { %v1334_v54 = vadd.f32 %v3696_v25, %v1281_v61  ;;  %v1415_v50 = vsel %vm1382_vm6, %v3832_v58, -inf }
 0x339   : > { %v3843_v24 = vsel %vm4304_vm13, %v1333_v43, -inf  ;;  %v1416_v43 = vmax.f32 %v1408_v0, %v1415_v50 }
 0x33a   : > { %v1291_v26 = vpop.xlane.xlu0 %1290  ;;  %v3848_v49 = vsel %vm4305_vm14, %v1334_v54, -inf  ;;  %v1411_v29 = vsel %vm1382_vm6, %v3843_v24, -inf }
 0x33b   : > { %v1293_v44 = vpop.xlane.xlu1 %1292  ;;  %v1339_v51 = vadd.f32 %v3696_v25, %v1291_v26  ;;  %v3838_v26 = vsel %vm4303_vm10, %v1336_v53, -inf  ;;  %v1413_v53 = vsel %vm1382_vm6, %v3848_v49, -inf  ;;  %v1412_v30 = vmax.f32 %v1404_v47, %v1411_v29 }
 0x33c   : > { %v1417_v57 = vsel %vm1382_vm6, %v3838_v26, -inf  ;;  %v1414_v45 = vmax.f32 %v1406_v33, %v1413_v53 }
 0x33d   : > { %v3858_v2 = vsel %vm4306_vm5, %v1339_v51, -inf  ;;  %v1418_v51 = vmax.f32 %v1410_v52, %v1417_v57 }
 0x33e   : > { %v1287_v10 = vpop.xlane.xlu0 %1286  ;;  %v1423_v40 = vsel %vm1382_vm6, %v3858_v2, -inf }
 0x33f   : > { %v1289_v14 = vpop.xlane.xlu1 %1288  ;;  %v1337_v19 = vadd.f32 %v3696_v25, %v1287_v10  ;;  %v1424_v47 = vmax.f32 %v1416_v43, %v1423_v40 }
 0x340   : > { %v1338_v61 = vadd.f32 %v3696_v25, %v1289_v14  ;;  %v1340_v14 = vadd.f32 %v3696_v25, %v1293_v44 }
 0x341   : > { %v3886_v32 = vsel %vm4309_vm3, %v1337_v19, -inf }
 0x342   : > { %v1299_v39 = vpop.xlane.xlu0 %1298  ;;  %v3866_v44 = vsel %vm4307_vm1, %v1338_v61, -inf  ;;  %v3881_v54 = vsel %vm4308_vm2, %v1340_v14, -inf  ;;  %v1419_v15 = vsel %vm1382_vm6, %v3886_v32, -inf }
 0x343   : > { %v1301_v34 = vpop.xlane.xlu1 %1300  ;;  %v1343_v12 = vadd.f32 %v3696_v25, %v1299_v39  ;;  %v1425_v8 = vsel %vm1382_vm6, %v3881_v54, -inf  ;;  %v1420_v29 = vmax.f32 %v1412_v30, %v1419_v15 }
 0x344   : > { %v1344_v10 = vadd.f32 %v3696_v25, %v1301_v34  ;;  %v1421_v34 = vsel %vm1382_vm6, %v3866_v44, -inf }
 0x345   : > { %v3899_v61 = vsel %vm4311_vm7, %v1343_v12, -inf  ;;  %v1422_v14 = vmax.f32 %v1414_v45, %v1421_v34 }
 0x346   : > { %v1295_v56 = vpop.xlane.xlu0 %1294  ;;  %v3906_v22 = vsel %vm4312_vm8, %v1344_v10, -inf  ;;  %v1431_v16 = vsel %vm1382_vm6, %v3899_v61, -inf }
 0x347   : > { %v1297_v38 = vpop.xlane.xlu1 %1296  ;;  %v1341_v35 = vadd.f32 %v3696_v25, %v1295_v56  ;;  %v1433_v57 = vsel %vm1382_vm6, %v3906_v22, -inf }
 0x348   : > { %v1342_v20 = vadd.f32 %v3696_v25, %v1297_v38  ;;  %v1426_v38 = vmax.f32 %v1418_v51, %v1425_v8 }
 0x349   : > { %v3911_v0 = vsel %vm4313_vm9, %v1341_v35, -inf  ;;  %v1432_v35 = vmax.f32 %v1424_v47, %v1431_v16 }
 0x34a   : > { %v1303_v39 = vpop.xlane.xlu0 %1302  ;;  %v3893_v63 = vsel %vm4310_vm4, %v1342_v20, -inf  ;;  %v1427_v12 = vsel %vm1382_vm6, %v3911_v0, -inf  ;;  %v1434_v40 = vmax.f32 %v1426_v38, %v1433_v57 }
 0x34b   : > { %v1345_v5 = vadd.f32 %v3696_v25, %v1303_v39  ;;  %v1429_v56 = vsel %vm1382_vm6, %v3893_v63, -inf  ;;  %v1428_v39 = vmax.f32 %v1420_v29, %v1427_v12 }
 0x34c   : > { %v1305_v46 = vpop.xlane.xlu1 %1304  ;;  %v1430_v53 = vmax.f32 %v1422_v14, %v1429_v56 }
 0x34d   : > { %v1346_v52 = vadd.f32 %v3696_v25, %v1305_v46  ;;  %v3923_v41 = vsel %vm827_vm11, %v1345_v5, -inf }
 0x34e   : > { %v1307_v11 = vpop.xlane.xlu0 %1306  ;;  %v1435_v33 = vsel %vm1382_vm6, %v3923_v41, -inf }
 0x34f   : > { %v3928_v50 = vsel %vm828_vm15, %v1346_v52, -inf  ;;  %v1347_v19 = vadd.f32 %v3696_v25, %v1307_v11  ;;  %v1436_v51 = vmax.f32 %v1428_v39, %v1435_v33  ;;  %v1381_v11 = vld [vmem:[#allocation2] sm:$0x1]  ;;  %vm1630_vm15 = vcmask 0  }
 0x350   : > { %v1437_v20 = vsel %vm1382_vm6, %v3928_v50, -inf  ;;  %v1309_v48 = vpop.xlane.xlu1 %1308 }
 0x351   : > { %v3940_v23 = vsel %vm829_vm0, %v1347_v19, -inf  ;;  %v1348_v10 = vadd.f32 %v3696_v25, %v1309_v48  ;;  %v1438_v34 = vmax.f32 %v1430_v53, %v1437_v20 }
 0x352   : > { %v1439_v43 = vsel %vm1382_vm6, %v3940_v23, -inf }
 0x353   : > { %v3950_v5 = vsel %vm830_vm12, %v1348_v10, -inf  ;;  %v1440_v25 = vmax.f32 %v1432_v35, %v1439_v43  ;;  %v1443_v45 = vmax.f32 %v1436_v51, %v1438_v34 }
 0x354   : > { %v1441_v6 = vsel %vm1382_vm6, %v3950_v5, -inf }
 0x355   : > { %v1442_v30 = vmax.f32 %v1434_v40, %v1441_v6 }
 0x357   : > { %v1444_v46 = vmax.f32 %v1440_v25, %v1442_v30 }
 0x359   : > { %v1445_v8 = vmax.f32 %v1443_v45, %v1444_v46 }
 0x35b   : > { %v1446_v52 = vrot.slane %v1445_v8, 4 }
 0x35d   : > { %v1447_v47 = vmax.f32 %v1445_v8, %v1446_v52 }
 0x35f   : > { %v1448_v15 = vrot.slane %v1447_v47, 2 }
 0x361   : > { %v1449_v14 = vmax.f32 %v1447_v47, %v1448_v15 }
 0x363   : > { %v1450_v56 = vrot.slane %v1449_v14, 1 }
 0x365   : > { %v1451_v16 = vmax.f32 %v1449_v14, %v1450_v56 }
 0x367   : > { %v1452_v7 = vmax.f32 %v1381_v11, %v1451_v16 }
 0x369   : > { %v1453_v19 = vsub.f32 %v1381_v11, %v1452_v7  ;;  %1906 = vst.msk [vmem:[#allocation2] sm:$0x1] %vm1630_vm15, %v1452_v7  ;;  %v3958_v57 = vrot.slane %v1452_v7, %v1459_v13 }
 0x36b   : > { %v1454_v38 = vmul.f32 1.442695, %v1453_v19  ;;  %v1462_v12 = vsub.f32 %v3727_v36, %v3958_v57  ;;  %v1463_v20 = vsub.f32 %v3743_v18, %v3958_v57  ;;  %v1464_v48 = vsub.f32 %v3704_v60, %v3958_v57 }
 0x36c   : > { %v1465_v29 = vsub.f32 %v3732_v27, %v3958_v57  ;;  %v1466_v53 = vsub.f32 %v3737_v42, %v3958_v57  ;;  %v1467_v33 = vsub.f32 %v3754_v31, %v3958_v57  ;;  %v1470_v36 = vsub.f32 %v3782_v59, %v3958_v57 }
 0x36d   : > { %2522 = vpow2.f32 %v1454_v38  ;;  %v1494_v10 = vmul.f32 1.442695, %v1462_v12  ;;  %v1496_v35 = vmul.f32 1.442695, %v1463_v20  ;;  %v1498_v43 = vmul.f32 1.442695, %v1464_v48 }
 0x36e   : > { %v1500_v40 = vmul.f32 1.442695, %v1465_v29  ;;  %v1468_v60 = vsub.f32 %v3713_v17, %v3958_v57  ;;  %v1502_v18 = vmul.f32 1.442695, %v1466_v53  ;;  %v1469_v42 = vsub.f32 %v3721_v3, %v3958_v57 }
 0x36f   : > { %2524 = vpow2.f32 %v1494_v10  ;;  %v1504_v39 = vmul.f32 1.442695, %v1467_v33  ;;  %v1472_v31 = vsub.f32 %v3765_v55, %v3958_v57  ;;  %v1510_v59 = vmul.f32 1.442695, %v1470_v36 }
 0x370   : > { %2526 = vpow2.f32 %v1496_v35  ;;  %v1506_v34 = vmul.f32 1.442695, %v1468_v60  ;;  %v1471_v17 = vsub.f32 %v3787_v9, %v3958_v57  ;;  %v1508_v6 = vmul.f32 1.442695, %v1469_v42 }
 0x371   : > { %2528 = vpow2.f32 %v1498_v43  ;;  %v1474_v51 = vsub.f32 %v3806_v1, %v3958_v57  ;;  %v1514_v3 = vmul.f32 1.442695, %v1472_v31  ;;  %v1473_v45 = vsub.f32 %v3775_v21, %v3958_v57 }
 0x372   : > { %2530 = vpow2.f32 %v1500_v40  ;;  %v1512_v55 = vmul.f32 1.442695, %v1471_v17  ;;  %v1476_v9 = vsub.f32 %v3794_v28, %v3958_v57  ;;  %v1475_v21 = vsub.f32 %v3827_v37, %v3958_v57 }
 0x373   : > { %2532 = vpow2.f32 %v1502_v18  ;;  %v1518_v52 = vmul.f32 1.442695, %v1474_v51  ;;  %v1516_v11 = vmul.f32 1.442695, %v1473_v45  ;;  %v1478_v7 = vsub.f32 %v3843_v24, %v3958_v57 }
 0x374   : > { %2534 = vpow2.f32 %v1504_v39  ;;  %v1522_v28 = vmul.f32 1.442695, %v1476_v9  ;;  %v1477_v37 = vsub.f32 %v3799_v62, %v3958_v57  ;;  %v1520_v53 = vmul.f32 1.442695, %v1475_v21 }
 0x375   : > { %2536 = vpow2.f32 %v1510_v59  ;;  %v1480_v24 = vsub.f32 %v3832_v58, %v3958_v57  ;;  %v1526_v35 = vmul.f32 1.442695, %v1478_v7  ;;  %v1479_v62 = vsub.f32 %v3848_v49, %v3958_v57 }
 0x376   : > { %2538 = vpow2.f32 %v1506_v34  ;;  %v1524_v18 = vmul.f32 1.442695, %v1477_v37  ;;  %v1482_v58 = vsub.f32 %v3886_v32, %v3958_v57  ;;  %v1481_v49 = vsub.f32 %v3838_v26, %v3958_v57 }
 0x377   : > { %v3976_v27 = vpop.eup %2522  ;;  %2540 = vpow2.f32 %v1508_v6  ;;  %v1530_v39 = vmul.f32 1.442695, %v1480_v24  ;;  %v1528_v51 = vmul.f32 1.442695, %v1479_v62  ;;  %v1484_v32 = vsub.f32 %v3858_v2, %v3958_v57 }
 0x378   : > { %1635 = vperm.xlu0 %2440, %v3976_v27   ;;  %2542 = vpow2.f32 %v1514_v3  ;;  %v1483_v26 = vsub.f32 %v3866_v44, %v3958_v57  ;;  %v1532_v9 = vmul.f32 1.442695, %v1481_v49  ;;  %v1486_v2 = vsub.f32 %v3911_v0, %v3958_v57 }
 0x379   : > { %v2525_v25 = vpop.eup %2524  ;;  %2544 = vpow2.f32 %v1512_v55  ;;  %v1485_v44 = vsub.f32 %v3881_v54, %v3958_v57  ;;  %v1488_v0 = vsub.f32 %v3899_v61, %v3958_v57  ;;  %v1487_v54 = vsub.f32 %v3893_v63, %v3958_v57 }
 0x37a   : > { %v2527_v30 = vpop.eup %2526  ;;  %v1560_v46 = vsel %vm1382_vm6, %v2525_v25, 0.0  ;;  %1677 = vperm.xlu1 %2441, %v2525_v25   ;;  %2546 = vpow2.f32 %v1518_v52  ;;  %v1534_v25 = vmul.f32 1.442695, %v1482_v58  ;;  %v1542_v7 = vmul.f32 1.442695, %v1486_v2 }
 0x37b   : > { %v2529_v8 = vpop.eup %2528  ;;  %v1561_v1 = vsel %vm1382_vm6, %v2527_v30, 0.0  ;;  %2548 = vpow2.f32 %v1516_v11  ;;  %v1536_v11 = vmul.f32 1.442695, %v1483_v26  ;;  %v1490_v61 = vsub.f32 %v3923_v41, %v3958_v57 }
 0x37c   : > { %v2531_v47 = vpop.eup %2530  ;;  %v1562_v15 = vadd.f32 %v1561_v1, %v1560_v46  ;;  %v1563_v14 = vsel %vm1382_vm6, %v2529_v8, 0.0  ;;  %2550 = vpow2.f32 %v1522_v28  ;;  %v1538_v1 = vmul.f32 1.442695, %v1484_v32 }
 0x37d   : > { %v2533_v56 = vpop.eup %2532  ;;  %v1565_v19 = vsel %vm1382_vm6, %v2531_v47, 0.0  ;;  %2552 = vpow2.f32 %v1520_v53  ;;  %v1489_v63 = vsub.f32 %v3906_v22, %v3958_v57  ;;  %v1492_v41 = vsub.f32 %v3940_v23, %v3958_v57 }
 0x37e   : > { %v1564_v16 = vadd.f32 %v1563_v14, %v1562_v15  ;;  %1682 = vperm.xlu1 %2441, %v2527_v30   ;;  %v2535_v38 = vpop.eup %2534  ;;  %v1567_v48 = vsel %vm1382_vm6, %v2533_v56, 0.0  ;;  %2554 = vpow2.f32 %v1526_v35  ;;  %v1491_v22 = vsub.f32 %v3928_v50, %v3958_v57 }
 0x37f   : > { %v2537_v20 = vpop.eup %2536  ;;  %v1569_v33 = vsel %vm1382_vm6, %v2535_v38, 0.0  ;;  %2556 = vpow2.f32 %v1524_v18  ;;  %v1554_v23 = vmul.f32 1.442695, %v1492_v41  ;;  %v4314_v41 = vld [vmem:[#allocation29_spill] sm:$0xff] }
 0x380   : > { %v1566_v12 = vadd.f32 %v1565_v19, %v1564_v16  ;;  %v2539_v29 = vpop.eup %2538  ;;  %1717 = vperm.xlu0 %2440, %v2537_v20   ;;  %v1575_v6 = vsel %vm1382_vm6, %v2537_v20, 0.0  ;;  %2558 = vpow2.f32 %v1530_v39  ;;  %v1548_v39 = vmul.f32 1.442695, %v1489_v63 }
 0x381   : > { %v4005_v43 = vpop.eup %2540  ;;  %v1571_v60 = vsel %vm1382_vm6, %v2539_v29, 0.0  ;;  %2560 = vpow2.f32 %v1528_v51  ;;  %v1493_v51 = vsub.f32 %v3950_v5, %v3958_v57  ;;  %v1552_v50 = vmul.f32 1.442695, %v1491_v22 }
 0x382   : > { %v1568_v10 = vadd.f32 %v1567_v48, %v1566_v12  ;;  %1687 = vperm.xlu1 %2441, %v2529_v8   ;;  %v2543_v36 = vpop.eup %2542  ;;  %v1573_v31 = vsel %vm1382_vm6, %v4005_v43, 0.0  ;;  %2562 = vpow2.f32 %v1534_v25  ;;  %v1540_v48 = vmul.f32 1.442695, %v1485_v44 }
 0x383   : > { %v4014_v59 = vpop.eup %2544  ;;  %v1579_v8 = vsel %vm1382_vm6, %v2543_v36, 0.0  ;;  %2564 = vpow2.f32 %v1532_v9 }
 0x384   : > { %v1570_v40 = vadd.f32 %v1569_v33, %v1568_v10  ;;  %1727 = vperm.xlu0 %2440, %v2543_v36   ;;  %v2547_v17 = vpop.eup %2546  ;;  %v1577_v30 = vsel %vm1382_vm6, %v4014_v59, 0.0  ;;  %2566 = vpow2.f32 %v1538_v1 }
 0x385   : > { %v4023_v45 = vpop.eup %2548  ;;  %v1583_v21 = vsel %vm1382_vm6, %v2547_v17, 0.0  ;;  %2568 = vpow2.f32 %v1536_v11 }
 0x386   : > { %v1572_v42 = vadd.f32 %v1571_v60, %v1570_v40  ;;  %1692 = vperm.xlu1 %2441, %v2531_v47   ;;  %v2551_v46 = vpop.eup %2550  ;;  %v1581_v47 = vsel %vm1382_vm6, %v4023_v45, 0.0  ;;  %2570 = vpow2.f32 %v1542_v7  ;;  %v1544_v40 = vmul.f32 1.442695, %v1487_v54 }
 0x387   : > { %v4032_v15 = vpop.eup %2552  ;;  %v1587_v20 = vsel %vm1382_vm6, %v2551_v46, 0.0  ;;  %2572 = vpow2.f32 %v1540_v48 }
 0x388   : > { %v1574_v34 = vadd.f32 %v1573_v31, %v1572_v42  ;;  %1737 = vperm.xlu0 %2440, %v2547_v17   ;;  %v1585_v28 = vsel %vm1382_vm6, %v4032_v15, 0.0 }
 0x38a   : > { %v1576_v3 = vadd.f32 %v1575_v6, %v1574_v34  ;;  %1697 = vperm.xlu1 %2441, %v2533_v56   ;;  %v2555_v56 = vpop.eup %2554 }
 0x38b   : > { %v2557_v19 = vpop.eup %2556  ;;  %v1591_v33 = vsel %vm1382_vm6, %v2555_v56, 0.0 }
 0x38c   : > { %v1578_v55 = vadd.f32 %v1577_v30, %v1576_v3  ;;  %1747 = vperm.xlu0 %2440, %v2551_v46   ;;  %v2559_v12 = vpop.eup %2558  ;;  %v1589_v53 = vsel %vm1382_vm6, %v2557_v19, 0.0  ;;  %v1556_v46 = vmul.f32 1.442695, %v1493_v51 }
 0x38d   : > { %v2561_v10 = vpop.eup %2560  ;;  %v1595_v58 = vsel %vm1382_vm6, %v2559_v12, 0.0 }
 0x38e   : > { %v1580_v52 = vadd.f32 %v1579_v8, %v1578_v55  ;;  %1702 = vperm.xlu1 %2441, %v2535_v38   ;;  %v2563_v35 = vpop.eup %2562  ;;  %v1593_v60 = vsel %vm1382_vm6, %v2561_v10, 0.0 }
 0x38f   : > { %v2565_v62 = vpop.eup %2564  ;;  %v1599_v49 = vsel %vm1382_vm6, %v2563_v35, 0.0 }
 0x390   : > { %v1582_v14 = vadd.f32 %v1581_v47, %v1580_v52  ;;  %1757 = vperm.xlu0 %2440, %v2555_v56   ;;  %v2567_v42 = vpop.eup %2566 }
 0x391   : > { %v2569_v34 = vpop.eup %2568  ;;  %v1603_v55 = vsel %vm1382_vm6, %v2567_v42, 0.0 }
 0x392   : > { %v1584_v16 = vadd.f32 %v1583_v21, %v1582_v14  ;;  %1707 = vperm.xlu1 %2441, %v2539_v29   ;;  %v1546_v29 = vmul.f32 1.442695, %v1488_v0  ;;  %v2571_v6 = vpop.eup %2570  ;;  %v1601_v32 = vsel %vm1382_vm6, %v2569_v34, 0.0 }
 0x393   : > { %v2573_v25 = vpop.eup %2572  ;;  %v1607_v52 = vsel %vm1382_vm6, %v2571_v6, 0.0 }
 0x394   : > { %v1586_v38 = vadd.f32 %v1585_v28, %v1584_v16  ;;  %1767 = vperm.xlu0 %2440, %v2559_v12   ;;  %2574 = vpow2.f32 %v1546_v29  ;;  %v1605_v5 = vsel %vm1382_vm6, %v2573_v25, 0.0 }
 0x395   : > { %2576 = vpow2.f32 %v1544_v40 }
 0x396   : > { %v1588_v37 = vadd.f32 %v1587_v20, %v1586_v38  ;;  %1712 = vperm.xlu1 %2441, %v4005_v43   ;;  %v1550_v43 = vmul.f32 1.442695, %v1490_v61 }
 0x398   : > { %v1590_v24 = vadd.f32 %v1589_v53, %v1588_v37  ;;  %1777 = vperm.xlu0 %2440, %v2563_v35   ;;  %2578 = vpow2.f32 %v1550_v43  ;;  %v1644_v43 = vunpack.c.h.bf16 %v4314_v41 }
 0x399   : > { %2580 = vpow2.f32 %v1548_v39 }
 0x39a   : > { %v1592_v36 = vadd.f32 %v1591_v33, %v1590_v24  ;;  %1722 = vperm.xlu1 %2441, %v4014_v59   ;;  %v1597_v59 = vsel %vm1382_vm6, %v2565_v62, 0.0  ;;  %2582 = vpow2.f32 %v1554_v23 }
 0x39b   : > { %2584 = vpow2.f32 %v1552_v50  ;;  %v4316_v50 = vld [vmem:[#allocation31_spill] sm:$0xff] }
 0x39c   : > { %v1594_v18 = vadd.f32 %v1593_v60, %v1592_v36  ;;  %1787 = vperm.xlu0 %2440, %v2567_v42   ;;  %2586 = vpow2.f32 %v1556_v46 }
 0x39e   : > { %v1596_v31 = vadd.f32 %v1595_v58, %v1594_v18  ;;  %1732 = vperm.xlu1 %2441, %v4023_v45   ;;  %v2575_v45 = vpop.eup %2574  ;;  %v4315_v58 = vld [vmem:[#allocation28_spill] sm:$0xff] }
 0x39f   : > { %v2577_v57 = vpop.eup %2576  ;;  %v1611_v56 = vsel %vm1382_vm6, %v2575_v45, 0.0  ;;  %v1645_v22 = vunpack.c.l.bf16 %v4315_v58 }
 0x3a0   : > { %v1598_v17 = vadd.f32 %v1597_v59, %v1596_v31  ;;  %1797 = vperm.xlu0 %2440, %v2571_v6   ;;  %v1609_v1 = vsel %vm1382_vm6, %v2577_v57, 0.0 }
 0x3a2   : > { %v1600_v3 = vadd.f32 %v1599_v49, %v1598_v17  ;;  %1742 = vperm.xlu1 %2441, %v4032_v15   ;;  %v2579_v9 = vpop.eup %2578 }
 0x3a3   : > { %v2581_v47 = vpop.eup %2580  ;;  %v1615_v0 = vsel %vm1382_vm6, %v2579_v9, 0.0 }
 0x3a4   : > { %v1602_v30 = vadd.f32 %v1601_v32, %v1600_v3  ;;  %1807 = vperm.xlu0 %2440, %v2575_v45   ;;  %v2583_v14 = vpop.eup %2582  ;;  %v1613_v44 = vsel %vm1382_vm6, %v2581_v47, 0.0  ;;  %v1647_v3 = vunpack.c.l.bf16 %v4316_v50 }
 0x3a5   : > { %v2585_v11 = vpop.eup %2584  ;;  %v1619_v12 = vsel %vm1382_vm6, %v2583_v14, 0.0 }
 0x3a6   : > { %v1604_v8 = vadd.f32 %v1603_v55, %v1602_v30  ;;  %1752 = vperm.xlu1 %2441, %v2557_v19   ;;  %v1617_v28 = vsel %vm1382_vm6, %v2585_v11, 0.0  ;;  %v2587_v19 = vpop.eup %2586  ;;  %v1648_v55 = vunpack.c.h.bf16 %v4316_v50  ;;  %v4323_v50 = vld [vmem:[#allocation36_spill] sm:$0xff] }
 0x3a7   : > { %v1621_v54 = vsel %vm1382_vm6, %v2587_v19, 0.0 }
 0x3a8   : > { %v1606_v26 = vadd.f32 %v1605_v5, %v1604_v8  ;;  %1817 = vperm.xlu0 %2440, %v2579_v9  }
 0x3aa   : > { %v1608_v2 = vadd.f32 %v1607_v52, %v1606_v26  ;;  %1762 = vperm.xlu1 %2441, %v2561_v10   ;;  %v1558_v10 = vld [vmem:[#allocation3] sm:$0x1] }
 0x3ab   : > { %v1559_v35 = vmul.f32 %v3976_v27, %v1558_v10 }
 0x3ac   : > { %v1610_v15 = vadd.f32 %v1609_v1, %v1608_v2  ;;  %1827 = vperm.xlu0 %2440, %v2583_v14   ;;  %v4318_v14 = vld [vmem:[#allocation33_spill] sm:$0xff] }
 0x3ae   : > { %v1612_v21 = vadd.f32 %v1611_v56, %v1610_v15  ;;  %1772 = vperm.xlu1 %2441, %v2565_v62   ;;  %v1643_v62 = vunpack.c.l.bf16 %v4314_v41  ;;  %v1651_v56 = vunpack.c.l.bf16 %v4318_v14  ;;  %v4321_v41 = vld [vmem:[#allocation34_spill] sm:$0xff] }
 0x3b0   : > { %v1614_v16 = vadd.f32 %v1613_v44, %v1612_v21 }
 0x3b2   : > { %v1616_v7 = vadd.f32 %v1615_v0, %v1614_v16  ;;  %1782 = vperm.xlu1 %2441, %v2569_v34   ;;  %v1646_v34 = vunpack.c.h.bf16 %v4315_v58  ;;  %v1652_v0 = vunpack.c.h.bf16 %v4318_v14 }
 0x3b4   : > { %v1618_v38 = vadd.f32 %v1617_v28, %v1616_v7  ;;  %v4319_v28 = vld [vmem:[#allocation32_spill] sm:$0xff] }
 0x3b6   : > { %v1620_v20 = vadd.f32 %v1619_v12, %v1618_v38  ;;  %1792 = vperm.xlu1 %2441, %v2573_v25  }
 0x3b8   : > { %v1622_v48 = vadd.f32 %v1621_v54, %v1620_v20 }
 0x3ba   : > { %v1623_v37 = vrot.slane %v1622_v48, 4  ;;  %1802 = vperm.xlu1 %2441, %v2577_v57   ;;  %v4317_v57 = vld [vmem:[#allocation30_spill] sm:$0xff] }
 0x3bb   : > { %v1649_v26 = vunpack.c.l.bf16 %v4317_v57 }
 0x3bc   : > { %v1624_v61 = vadd.f32 %v1623_v37, %v1622_v48  ;;  %v1654_v48 = vunpack.c.h.bf16 %v4319_v28 }
 0x3be   : > { %v1625_v29 = vrot.slane %v1624_v61, 2  ;;  %1812 = vperm.xlu1 %2441, %v2581_v47   ;;  %v1650_v47 = vunpack.c.h.bf16 %v4317_v57 }
 0x3c0   : > { %v1626_v53 = vadd.f32 %v1625_v29, %v1624_v61  ;;  %v4320_v29 = vld [vmem:[#allocation35_spill] sm:$0xff] }
 0x3c2   : > { %v1627_v24 = vrot.slane %v1626_v53, 1  ;;  %1822 = vperm.xlu1 %2441, %v2585_v11  }
 0x3c4   : > { %v1628_v33 = vadd.f32 %v1627_v24, %v1626_v53  ;;  %v1655_v53 = vunpack.c.l.bf16 %v4320_v29 }
 0x3c6   : > { %v1629_v63 = vadd.f32 %v1628_v33, %v1559_v35  ;;  %1832 = vperm.xlu1 %2441, %v2587_v19   ;;  %v1653_v19 = vunpack.c.l.bf16 %v4319_v28  ;;  %v4326_v28 = vld [vmem:[#allocation41_spill] sm:$0xff] }
 0x3c8   : > { %1631 = vst.msk [vmem:[#allocation3] sm:$0x1] %vm1630_vm15, %v1629_v63  ;;  %v1656_v63 = vunpack.c.h.bf16 %v4320_v29 }
 0x3f7   : > { %v4077_v36 = vpop.permute.xlu0 %1635 }
 0x3f9   : > { %v1678_v40 = vpop.permute.xlu1 %1677 }
 0x3fa   : > { %v1835_v42 = vmul.f32 %v1678_v40, %v1643_v62 }
 0x3fd   : > { %v1683_v60 = vpop.permute.xlu1 %1682 }
 0x3fe   : > { %v1836_v18 = vmul.f32 %v1683_v60, %v1644_v43  ;;  %v1657_v43 = vunpack.c.l.bf16 %v4321_v41 }
 0x3ff   : > { %v1718_v39 = vpop.permute.xlu0 %1717 }
 0x400   : > { %v1867_v27 = vadd.f32 %v1836_v18, %v1835_v42  ;;  %v1843_v11 = vmul.f32 %v1718_v39, %v1651_v56 }
 0x401   : > { %v1688_v31 = vpop.permute.xlu1 %1687 }
 0x402   : > { %v1837_v23 = vmul.f32 %v1688_v31, %v1645_v22  ;;  %v1658_v22 = vunpack.c.h.bf16 %v4321_v41  ;;  %v4322_v31 = vld [vmem:[#allocation37_spill] sm:$0xff]  ;;  %v4328_v41 = vld [vmem:[#allocation43_spill] sm:$0xff] }
 0x403   : > { %v1728_v17 = vpop.permute.xlu0 %1727 }
 0x404   : > { %v1868_v59 = vadd.f32 %v1867_v27, %v1837_v23  ;;  %v1845_v20 = vmul.f32 %v1728_v17, %v1653_v19  ;;  %v1659_v27 = vunpack.c.l.bf16 %v4322_v31  ;;  %v1667_v19 = vunpack.c.l.bf16 %v4326_v28 }
 0x405   : > { %v1693_v6 = vpop.permute.xlu1 %1692 }
 0x406   : > { %v1838_v49 = vmul.f32 %v1693_v6, %v1646_v34  ;;  %v1660_v6 = vunpack.c.h.bf16 %v4322_v31  ;;  %v4329_v31 = vld [vmem:[#allocation42_spill] sm:$0xff] }
 0x407   : > { %v1738_v30 = vpop.permute.xlu0 %1737 }
 0x408   : > { %v1869_v51 = vadd.f32 %v1868_v59, %v1838_v49  ;;  %v1847_v35 = vmul.f32 %v1738_v30, %v1655_v53 }
 0x409   : > { %v1698_v32 = vpop.permute.xlu1 %1697 }
 0x40a   : > { %v1839_v25 = vmul.f32 %v1698_v32, %v1647_v3  ;;  %v1661_v3 = vunpack.c.l.bf16 %v4323_v50 }
 0x40b   : > { %v1748_v9 = vpop.permute.xlu0 %1747 }
 0x40c   : > { %v1870_v45 = vadd.f32 %v1869_v51, %v1839_v25  ;;  %v1849_v42 = vmul.f32 %v1748_v9, %v1657_v43  ;;  %v1671_v43 = vunpack.c.l.bf16 %v4328_v41 }
 0x40d   : > { %v1703_v46 = vpop.permute.xlu1 %1702 }
 0x40e   : > { %v1840_v8 = vmul.f32 %v1703_v46, %v1648_v55  ;;  %v1662_v55 = vunpack.c.h.bf16 %v4323_v50 }
 0x40f   : > { %v1758_v44 = vpop.permute.xlu0 %1757 }
 0x410   : > { %v1871_v5 = vadd.f32 %v1870_v45, %v1840_v8  ;;  %v1851_v34 = vmul.f32 %v1758_v44, %v1659_v27  ;;  %v4324_v8 = vld [vmem:[#allocation39_spill] sm:$0xff]  ;;  %v1673_v27 = vunpack.c.l.bf16 %v4329_v31 }
 0x411   : > { %v1708_v52 = vpop.permute.xlu1 %1707 }
 0x412   : > { %v1841_v2 = vmul.f32 %v1708_v52, %v1649_v26 }
 0x413   : > { %v1768_v37 = vpop.permute.xlu0 %1767 }
 0x414   : > { %v1872_v1 = vadd.f32 %v1871_v5, %v1841_v2  ;;  %v1853_v30 = vmul.f32 %v1768_v37, %v1661_v3  ;;  %v1663_v5 = vunpack.c.l.bf16 %v4324_v8 }
 0x415   : > { %v1713_v15 = vpop.permute.xlu1 %1712 }
 0x416   : > { %v1842_v21 = vmul.f32 %v1713_v15, %v1650_v47  ;;  %v4325_v15 = vld [vmem:[#allocation38_spill] sm:$0xff] }
 0x417   : > { %v1778_v18 = vpop.permute.xlu0 %1777  ;;  %v1665_v14 = vunpack.c.l.bf16 %v4325_v15 }
 0x418   : > { %v1873_v16 = vadd.f32 %v1872_v1, %v1842_v21  ;;  %v1855_v52 = vmul.f32 %v1778_v18, %v1663_v5  ;;  %v1664_v1 = vunpack.c.h.bf16 %v4324_v8 }
 0x419   : > { %v1723_v7 = vpop.permute.xlu1 %1722 }
 0x41a   : > { %v1844_v38 = vmul.f32 %v1723_v7, %v1652_v0  ;;  %v1874_v12 = vadd.f32 %v1873_v16, %v1843_v11  ;;  %v1666_v16 = vunpack.c.h.bf16 %v4325_v15 }
 0x41b   : > { %v1788_v49 = vpop.permute.xlu0 %1787 }
 0x41c   : > { %v1875_v54 = vadd.f32 %v1874_v12, %v1844_v38  ;;  %v1857_v44 = vmul.f32 %v1788_v49, %v1665_v14 }
 0x41d   : > { %v1733_v61 = vpop.permute.xlu1 %1732 }
 0x41e   : > { %v1846_v10 = vmul.f32 %v1733_v61, %v1654_v48  ;;  %v1876_v24 = vadd.f32 %v1875_v54, %v1845_v20  ;;  %v1668_v48 = vunpack.c.h.bf16 %v4326_v28  ;;  %v4327_v61 = vld [vmem:[#allocation40_spill] sm:$0xff] }
 0x41f   : > { %v1798_v9 = vpop.permute.xlu0 %1797  ;;  %v1669_v29 = vunpack.c.l.bf16 %v4327_v61 }
 0x420   : > { %v1877_v33 = vadd.f32 %v1876_v24, %v1846_v10  ;;  %v1859_v20 = vmul.f32 %v1798_v9, %v1667_v19  ;;  %v1911_v9 = vld [vmem:[#allocation2] sm:$0x1] (!%p2167_p4) }
 0x421   : > { %v1743_v40 = vpop.permute.xlu1 %1742  ;;  %1912 = vst.msk [vmem:[%s435_s27] sm:$0x1] (!%p2167_p4), %vm1630_vm15, %v1911_v9 }
 0x422   : > { %v1848_v60 = vmul.f32 %v1743_v40, %v1656_v63  ;;  %v1878_v62 = vadd.f32 %v1877_v33, %v1847_v35  ;;  %v1670_v63 = vunpack.c.h.bf16 %v4327_v61 }
 0x423   : > { %v1808_v0 = vpop.permute.xlu0 %1807 }
 0x424   : > { %v1879_v58 = vadd.f32 %v1878_v62, %v1848_v60  ;;  %v1861_v35 = vmul.f32 %v1808_v0, %v1669_v29 }
 0x425   : > { %v1753_v39 = vpop.permute.xlu1 %1752 }
 0x426   : > { %v1850_v23 = vmul.f32 %v1753_v39, %v1658_v22  ;;  %v1880_v59 = vadd.f32 %v1879_v58, %v1849_v42  ;;  %v1672_v58 = vunpack.c.h.bf16 %v4328_v41 }
 0x427   : > { %v1818_v24 = vpop.permute.xlu0 %1817 }
 0x428   : > { %v1881_v17 = vadd.f32 %v1880_v59, %v1850_v23  ;;  %v1863_v18 = vmul.f32 %v1818_v24, %v1671_v43 }
 0x429   : > { %v1763_v51 = vpop.permute.xlu1 %1762 }
 0x42a   : > { %v1852_v32 = vmul.f32 %v1763_v51, %v1660_v6  ;;  %v1882_v25 = vadd.f32 %v1881_v17, %v1851_v34  ;;  %v1674_v6 = vunpack.c.h.bf16 %v4329_v31 }
 0x42b   : > { %v1828_v22 = vpop.permute.xlu0 %1827 }
 0x42c   : > { %v1883_v45 = vadd.f32 %v1882_v25, %v1852_v32  ;;  %v1865_v34 = vmul.f32 %v1828_v22, %v1673_v27 }
 0x42d   : > { %v1773_v46 = vpop.permute.xlu1 %1772 }
 0x42e   : > { %v1854_v57 = vmul.f32 %v1773_v46, %v1662_v55  ;;  %v1884_v26 = vadd.f32 %v1883_v45, %v1853_v30  ;;  %v1641_v45 = vrot.slane %v4077_v36, %v1459_v13  ;;  %v1632_v46 = vld [vmem:[#allocation4] sm:$0x1] }
 0x430   : > { %v1885_v2 = vadd.f32 %v1884_v26, %v1854_v57  ;;  %v1642_v5 = vmul.f32 %v1641_v45, %v1632_v46 }
 0x431   : > { %v1783_v47 = vpop.permute.xlu1 %1782 }
 0x432   : > { %v1856_v56 = vmul.f32 %v1783_v47, %v1664_v1  ;;  %v1886_v21 = vadd.f32 %v1885_v2, %v1855_v52  ;;  %v1913_v52 = vld [vmem:[#allocation3] sm:$0x1] (!%p2167_p4) }
 0x433   : > { %1914 = vst.msk [vmem:[%s438_s23] sm:$0x1] (!%p2167_p4), %vm1630_vm15, %v1913_v52 }
 0x434   : > { %v1887_v11 = vadd.f32 %v1886_v21, %v1856_v56 }
 0x435   : > { %v1793_v7 = vpop.permute.xlu1 %1792 }
 0x436   : > { %v1858_v38 = vmul.f32 %v1793_v7, %v1666_v16  ;;  %v1888_v12 = vadd.f32 %v1887_v11, %v1857_v44 }
 0x438   : > { %v1889_v54 = vadd.f32 %v1888_v12, %v1858_v38 }
 0x439   : > { %v1803_v37 = vpop.permute.xlu1 %1802 }
 0x43a   : > { %v1860_v53 = vmul.f32 %v1803_v37, %v1668_v48  ;;  %v1890_v10 = vadd.f32 %v1889_v54, %v1859_v20 }
 0x43c   : > { %v1891_v33 = vadd.f32 %v1890_v10, %v1860_v53 }
 0x43d   : > { %v1813_v40 = vpop.permute.xlu1 %1812 }
 0x43e   : > { %v1862_v60 = vmul.f32 %v1813_v40, %v1670_v63  ;;  %v1892_v62 = vadd.f32 %v1891_v33, %v1861_v35 }
 0x440   : > { %v1893_v42 = vadd.f32 %v1892_v62, %v1862_v60 }
 0x441   : > { %v1823_v39 = vpop.permute.xlu1 %1822 }
 0x442   : > { %v1864_v23 = vmul.f32 %v1823_v39, %v1672_v58  ;;  %v1894_v59 = vadd.f32 %v1893_v42, %v1863_v18 }
 0x444   : > { %v1895_v17 = vadd.f32 %v1894_v59, %v1864_v23 }
 0x445   : > { %v1833_v49 = vpop.permute.xlu1 %1832 }
 0x446   : > { %v1866_v51 = vmul.f32 %v1833_v49, %v1674_v6  ;;  %v1896_v50 = vadd.f32 %v1895_v17, %v1865_v34 }
 0x448   : > { %v1897_v3 = vadd.f32 %v1896_v50, %v1866_v51 }
 0x44a   : > { %v1898_v32 = vrot.slane %v1897_v3, 4 }
 0x44c   : > { %v1899_v25 = vadd.f32 %v1898_v32, %v1897_v3 }
 0x44e   : > { %v1900_v30 = vrot.slane %v1899_v25, 2 }
 0x450   : > { %v1901_v55 = vadd.f32 %v1900_v30, %v1899_v25 }
 0x452   : > { %v1902_v8 = vrot.slane %v1901_v55, 1  ;;  %1910 = sbr.rel (%p2167_p4) target bundleno = 1121 (0x461), region = 68 }
 0x454   : > { %v1903_v57 = vadd.f32 %v1902_v8, %v1901_v55 }
 0x456   : > { %v1904_v26 = vadd.f32 %v1903_v57, %v1642_v5 }
 0x458   : > { %1905 = vst [vmem:[#allocation4] sm:$0x1] %v1904_v26 }
 0x45f   : > { %v1915_v2 = vld [vmem:[#allocation4] sm:$0x1] }
 0x460   : > { %1916 = vst [vmem:[%s3126_s15] sm:$0x1] %v1915_v2 }
 0x461 PF: > { %s4330_s22 = sld [smem:[#allocation26_spill]]  ;;  %s2168_s14 = sshll.u32 %s2786_s7, 4 }
 0x462   : > { %s4331_s24 = sld [smem:[#allocation46_spill]]  ;;  %s1942_s28 = sshll.u32 %s3126_s15, 4  ;;  %s1943_s28 = int_to_ptr.vmem [resolvable:$true] %s1942_s28 }
 0x463   : > { %s1924_s27 = scalar_lea.sflag [#allocation10], %s422_s16  ;;  %s2672_s11 = scalar_lea.vmem %s1943_s28, 16 }
 0x464   : > { %p2673_p6 = scmp.ne.s32.totalorder %s1943_s28, %s2672_s11  ;;  %s2810_s12 = smov [#allocation14]  }
 0x465   : > { %s2676_s23 = sshll.u32 %s2810_s12, 4  ;;  %s2677_s23 = int_to_ptr.vmem [resolvable:$false] %s2676_s23 }
 0x466   : > { %s2678_s10 = scalar_lea.vmem %s2677_s23, 32  ;;  %p2679_p13 = scmp.lt.s32.totalorder %s1943_s28, %s2677_s23 }
 0x467   : > { %p4333_p10 = scmp.ne.s32.totalorder %s4330_s22, 0  ;;  %p2680_p7 = scmp.lt.s32.totalorder %s2678_s10, %s2672_s11 }
 0x468   : > { %s4332_s5 = smov %s4331_s24  ;;  %s4132_s6 = scalar_lea.hbm %s4331_s24, %s2168_s14 }
 0x469   : > { %p2674_p3 = pnand %p2673_p6, %p4333_p10  ;;  %p2681_p9 = por %p2680_p7, %p2679_p13 }
 0x46b   : > { %p2675_p5 = pneg %p2674_p3 }
 0x46d   : > { %p2682_p8 = pnand %p2681_p9, %p2675_p5 }
 0x46f   : > { %2685 = shalt.err (!%p2682_p8)
}
 0x470   : > { %s2686_s7 = scalar_lea.hbm %s4132_s6, 16  ;;  %s2690_s20 = scalar_lea.hbm %s4332_s5, 32 }
 0x471   : > { %p2687_p2 = scmp.ne.s32.totalorder %s4132_s6, %s2686_s7  ;;  %p2691_p11 = scmp.lt.u32.totalorder %s4132_s6, %s4332_s5 }
 0x472   : > { %p2692_p1 = scmp.lt.u32.totalorder %s2690_s20, %s2686_s7  ;;  %p2694_p6 = scmp.lt.u32.totalorder %s2686_s7, %s4132_s6 }
 0x473   : > { %p2688_p12 = pnand %p2687_p2, %p4333_p10 }
 0x474   : > { %p2693_p4 = por %p2692_p1, %p2691_p11 }
 0x475   : > { %p2689_p0 = pneg %p2688_p12 }
 0x476   : > { %p2695_p3 = por %p2694_p6, %p2693_p4 }
 0x478   : > { %p2696_p5 = pnand %p2695_p3, %p2689_p0 }
 0x47a   : > { %2699 = shalt.err (!%p2696_p5)
}
 0x47b   : > { %2325 = dma.vmem_to_hbm [thread:$0]  (%p4333_p10), %s1943_s28, 16, %s4132_s6, %s1924_s27  }
 0x47c PF: > { %s4334_s29 = sld [smem:[#allocation18_spill]]  ;;  %s4335_s30 = sld [smem:[#allocation27_spill]] }
 0x47d   : > { %p2342_p13 = scmp.ge.s32.totalorder %s2798_s25, 2 }
 0x482   : > { %s1966_s14 = sand.u32 1, %s4334_s29   ;;  %p4336_p7 = scmp.ne.s32.totalorder %s4335_s30, 0 }
 0x483   : > { %s1967_s13 = scalar_lea.sflag [#allocation10], %s1966_s14 }
 0x484   : > { %p2335_p9 = pnand %p2342_p13, %p4336_p7 }
 0x486   : > { %2753 = dma.done.wait (!%p2335_p9), %s1967_s13, 16  }
 0x487   : > { %2755 = vsyncadd (!%p2335_p9), %s1967_s13, 4294967280  ;;  %s31_s25 = sadd.s32 1, %s2798_s25   ;;  %s4337_s19 = sld [smem:[#allocation19_spill]] }
 0x488   : > { %p28_p8 = scmp.ge.s32.totalorder %s31_s25, 6   ;;  %s4338_s24 = sld [smem:[#allocation24_spill]] }
 0x489   : > { %s4339_s22 = sld [smem:[#allocation25_spill]]  ;;  %s4340_s6 = sld [smem:[#allocation20_spill]] }
 0x48a   : > { %s4341_s7 = sld [smem:[#allocation21_spill]]  ;;  %s4342_s23 = sld [smem:[#allocation22_spill]] }
 0x48b   : > { %s4343_s28 = sld [smem:[#allocation23_spill]]  ;;  %s4344_s17 = smov %s2762_s18 }
 0x48c   : > { %s4347_s20 = smov %s2774_s21  ;;  %s4348_s21 = smov %s2778_s0 }
 0x48d   : > { %s4345_s18 = smov %s4337_s19  ;;  %30 = sbr.rel (!%p28_p8) target bundleno = 15 (0xf), region = 133 }
 0x48e   : > { %s4346_s19 = smov %s4338_s24 }
 0x48f   : > { %s4349_s0 = smov %s4339_s22  ;;  %s4350_s22 = smov %s4340_s6 }
 0x491   : > { %s4351_s24 = smov %s4343_s28 }
 0x494   :  { %1971 = vsyncpa [#allocation9], 1 }
 0x495   :  { %1973 = vsyncpa [#allocation9 + $0x1], 1 }
 0x496   :  { %1974 = vsyncpa [#allocation12], 1 }
 0x497   :  { %1975 = vsyncpa [#allocation10], 1 }
 0x498   :  { %1977 = vsyncpa [#allocation10 + $0x1], 1 }

// kernel: tpu_custom_call.1
= control target key start
LH: loop header
LB: loop body
LE: loop exit
PB: predicated region body
PF: predicated region fallthrough
CT: control target
= control target key end

     0   :  { %s4191_s0 = inlined_call_operand.<no memory space> [shape: s32[1], index: 0, kind: input, shape index: {}]   ;;  %s4192_s1 = inlined_call_operand.hbm [shape: f32[1000,128], index: 1, kind: input, shape index: {}]   ;;  %s4193_s2 = inlined_call_operand.hbm [shape: bf16[128,128], index: 2, kind: input, shape index: {}]   ;;  %s4194_s3 = inlined_call_operand.vmem [shape: f32[1,128], index: 3, kind: input, shape index: {}]   ;;  %s4195_s4 = inlined_call_operand.hbm [shape: bf16[128,128], index: 4, kind: input, shape index: {}]   ;;  %s4196_s5 = inlined_call_operand.vmem [shape: f32[1,128], index: 5, kind: input, shape index: {}]   ;;  %s4197_s6 = inlined_call_operand.vmem [shape: f32[1,128], index: 6, kind: input, shape index: {}]   ;;  %s4198_s7 = inlined_call_operand.<no memory space> [shape: f32[1,1], index: 7, kind: input, shape index: {}]   ;;  %s4199_s8 = inlined_call_operand.vmem [shape: f32[2,1,1], index: 8, kind: output, shape index: {0}]   ;;  %s4200_s9 = inlined_call_operand.vmem [shape: f32[2,1,1], index: 9, kind: output, shape index: {1}]   ;;  %s4201_s10 = inlined_call_operand.hbm [shape: f32[2,1,128], index: 10, kind: output, shape index: {2}]  }
   0x1   :  { %4252 = sst [smem:[#allocation44_spill]] %s4196_s5  ;;  %v17_v0 = vstv %s4198_s7 }
   0x2   :  { %4253 = sst [smem:[#allocation45_spill]] %s4197_s6  ;;  %18 = vst [vmem:[#allocation7] sm:$0x1] %v17_v0 }
   0x3   :  { %4254 = sst [smem:[#allocation46_spill]] %s4201_s10 }
   0x4   :  { %16 = sst [smem:[#allocation6]] %s4191_s0 }
   0x5   :  { %19 = vsyncpa [#allocation9], 0 }
   0x6   :  { %21 = vsyncpa [#allocation9 + $0x1], 0 }
   0x7   :  { %22 = vsyncpa [#allocation12], 0 }
   0x8   :  { %23 = vsyncpa [#allocation10], 0 }
   0x9   :  { %25 = vsyncpa [#allocation10 + $0x1], 0  ;;  %s2872_s17 = smov 0   ;;  %s2874_s18 = smov 0  }
   0xa   :  { %s2876_s19 = smov 0   ;;  %s2878_s20 = smov 0  }
   0xb   :  { %s2880_s21 = smov 0   ;;  %s2882_s0 = smov 0  }
   0xc   :  { %s2884_s22 = smov 0   ;;  %s2886_s7 = smov 0  }
   0xd   :  { %s2888_s23 = smov 0   ;;  %s2890_s24 = smov 0  }
   0xe   :  { %s2892_s25 = smov 0  }
   0xf LB: > { %4255 = sst [smem:[#allocation18_spill]] %s2758_s17  ;;  %s4203_s26 = sadd.s32 4294967295, %s2798_s25   ;;  %s2798_s25 = sphi %s2892_s25, %s31_s25   ;;  %s2794_s24 = sphi %s2890_s24, %s4351_s24   ;;  %s2790_s23 = sphi %s2888_s23, %s4342_s23   ;;  %s2786_s7 = sphi %s2886_s7, %s4341_s7   ;;  %s2782_s22 = sphi %s2884_s22, %s4350_s22   ;;  %s2778_s0 = sphi %s2882_s0, %s4349_s0   ;;  %s2774_s21 = sphi %s2880_s21, %s4348_s21   ;;  %s2770_s20 = sphi %s2878_s20, %s4347_s20   ;;  %s2766_s19 = sphi %s2876_s19, %s4346_s19   ;;  %s2762_s18 = sphi %s2874_s18, %s4345_s18   ;;  %s2758_s17 = sphi %s2872_s17, %s4344_s17  }
  0x10   : > { %4256 = sst [smem:[#allocation19_spill]] %s2766_s19  ;;  %s40_s28 = sadd.s32 1, %s2790_s23 }
  0x11   : > { %4257 = sst [smem:[#allocation20_spill]] %s2790_s23  ;;  %s43_s29 = sadd.s32 1, %s2794_s24 }
  0x12   : > { %4258 = sst [smem:[#allocation21_spill]] %s2794_s24  ;;  %p41_p0 = scmp.ge.s32.totalorder %s40_s28, 2 }
  0x13   : > { %s2078_s30 = sshll.u32 %s2794_s24, 1  ;;  %s58_s12 = sadd.s32 1, %s2778_s0 }
  0x14   : > { %s48_s11 = sadd.s32 %s2790_s23, %s2078_s30  ;;  %s4353_s28 = smov (%p41_p0, %s40_s28), 0 }
  0x15   : > { %4259 = sst [smem:[#allocation22_spill]] %s4353_s28  ;;  %s4355_s29 = smov (!%p41_p0, %s43_s29), %s2794_s24 }
  0x16   : > { %p49_p1 = scmp.lt.s32.totalorder %s48_s11, 3  ;;  %p65_p2 = scmp.ne.s32.totalorder %s2778_s0, %s2774_s21 }
  0x17   : > { %p45_p3 = scmp.ge.s32.totalorder %s4355_s29, 2  ;;  %p66_p4 = scmp.eq.s32.totalorder %s2798_s25, 0 }
  0x18   : > { %s4357_s11 = smov (!%p49_p1, %s48_s11), 3  ;;  %p71_p6 = scmp.ne.s32.totalorder %s2774_s21, %s2770_s20 }
  0x19   : > { %s4359_s29 = smov (%p45_p3, %s4355_s29), 0  ;;  %p2944_p5 = por %p66_p4, %p65_p2 }
  0x1a   : > { %4260 = sst [smem:[#allocation23_spill]] %s4359_s29  ;;  %s2079_s14 = sshll.u32 %s4359_s29, 1 }
  0x1b   : > { %s4261_s13 = scalar_select %p2944_p5, 1, 0 }
  0x1c   : > { %p2953_p7 = scmp.eq.s32.totalorder %s4203_s26, 0  ;;  %s52_s16 = sadd.s32 %s2079_s14, %s4353_s28 }
  0x1d   : > { %s259_s30 = ssub.s32 %s2794_s24, %s4359_s29  ;;  %p53_p8 = scmp.lt.s32.totalorder %s52_s16, 3 }
  0x1e   : > { %s4262_s15 = scalar_select %p2953_p7, 1, 0 }
  0x1f   : > { %p2962_p9 = por %p2953_p7, %p71_p6  ;;  %p260_p10 = scmp.eq.s32.totalorder %s259_s30, 0 }
  0x20   : > { %s262_s20 = sadd.s32 1, %s2766_s19  ;;  %s4361_s16 = smov (!%p53_p8, %s52_s16), 3 }
  0x21   : > { %s4263_s27 = scalar_select %p2962_p9, 1, 0 }
  0x22   : > { %s2968_s23 = scalar_select %p260_p10, %s2766_s19, %s262_s20  }
  0x23   : > { %s55_s26 = ssub.s32 %s4357_s11, %s4361_s16  ;;  %p272_p11 = scmp.ne.s32.totalorder %s2766_s19, %s2762_s18 }
  0x24   : > { %4264 = sst [smem:[#allocation24_spill]] %s2968_s23  ;;  %p56_p12 = scmp.eq.s32.totalorder %s55_s26, 0 }
  0x25   : > { %s4265_s10 = sadd.s32 4294967295, %s2798_s25   ;;  %p278_p0 = scmp.ne.s32.totalorder %s2762_s18, %s2758_s17 }
  0x26   : > { %p273_p13 = scmp.eq.s32.totalorder %s4265_s10, 3  ;;  %s4266_s14 = sadd.s32 4294967294, %s2798_s25  }
  0x27   : > { %p279_p1 = scmp.eq.s32.totalorder %s4266_s14, 3  ;;  %p2080_p4 = scmp.ge.s32.totalorder %s2798_s25, 1 }
  0x28   : > { %s2980_s29 = scalar_select %p56_p12, %s2778_s0, %s58_s12  }
  0x29   : > { %p2982_p2 = por %p273_p13, %p272_p11  ;;  %p2986_p3 = por %p279_p1, %p278_p0 }
  0x2a   : > { %4267 = sst [smem:[#allocation25_spill]] %s2980_s29  ;;  %p286_p6 = scmp.lt.s32.totalorder %s2798_s25, 5 }
  0x2b   : > { %s4268_s28 = scalar_select %p2982_p2, 1, 0 }
  0x2c   : > { %s4270_s30 = scalar_select %p2986_p3, 1, 0 }
  0x2d   : > { %4269 = sst [smem:[#allocation26_spill]] %s4268_s28  ;;  %p2992_p8 = pnand %p2080_p4, %p286_p6 }
  0x2e   : > { %4271 = sst [smem:[#allocation27_spill]] %s4270_s30  ;;  %s2800_s10 = smov [#allocation11]  }
  0x2f   : > { %s4272_s16 = scalar_select %p2992_p8, 1, 0 }
  0x30   : > { %s298_s26 = sshll.u32 %s2800_s10, 4  ;;  %p2327_p10 = pneg %p2992_p8  ;;  %s299_s26 = int_to_ptr.vmem [resolvable:$true] %s298_s26 }
  0x31   : > { %s2801_s20 = smov [#allocation13]   ;;  %s2588_s23 = scalar_lea.hbm %s4193_s2, 1024 }
  0x32   : > { %p3000_p11 = pnand %p2327_p10, %p2953_p7  ;;  %s314_s14 = sshll.u32 %s2801_s20, 4  ;;  %s3004_s14 = int_to_ptr.vmem [resolvable:$true] %s314_s14 }
  0x33   : > { %p2589_p12 = scmp.ne.s32.totalorder %s4193_s2, %s2588_s23  ;;  %p2595_p4 = scmp.lt.u32.totalorder %s2588_s23, %s4193_s2 }
  0x34   : > { %p2590_p13 = pneg %p3000_p11 }
  0x36   : > { %p2591_p0 = pnand %p2590_p13, %p2589_p12 }
  0x38   : > { %p2592_p1 = pneg %p2591_p0 }
  0x3a   : > { %p2597_p6 = pnand %p2595_p4, %p2592_p1 }
  0x3c   : > { %2600 = shalt.err (!%p2597_p6)
}
  0x3d   : > { %s2601_s20 = scalar_lea.vmem %s299_s26, 1024  ;;  %p2609_p7 = scmp.lt.s32.totalorder %s299_s26, %s299_s26 }
  0x3e   : > { %p2602_p10 = scmp.ne.s32.totalorder %s299_s26, %s2601_s20  ;;  %p2610_p9 = scmp.lt.s32.totalorder %s2601_s20, %s2601_s20 }
  0x40   : > { %p2604_p3 = pnand %p2602_p10, %p2590_p13  ;;  %p2611_p8 = por %p2610_p9, %p2609_p7 }
  0x42   : > { %p2605_p2 = pneg %p2604_p3 }
  0x44   : > { %p2612_p5 = pnand %p2611_p8, %p2605_p2 }
  0x46   : > { %2615 = shalt.err (!%p2612_p5)
}
  0x47   : > { %s2802_s19 = smov 64   ;;  %s2803_s24 = smov 4  }
  0x48   : > { %2330 = dma.hbm_to_vmem [thread:$0]  (!%p3000_p11), %s4193_s2, 1024, %s299_s26, [#allocation12], %s2802_s19, %s2802_s19, %s2803_s24  }
  0x49   : > { %s2616_s10 = scalar_lea.hbm %s4195_s4, 1024 }
  0x4a   : > { %p2617_p3 = scmp.ne.s32.totalorder %s4195_s4, %s2616_s10  ;;  %p2623_p9 = scmp.lt.u32.totalorder %s2616_s10, %s4195_s4 }
  0x4c   : > { %p2619_p5 = pnand %p2617_p3, %p2590_p13 }
  0x4e   : > { %p2620_p7 = pneg %p2619_p5 }
  0x50   : > { %p2625_p2 = pnand %p2623_p9, %p2620_p7 }
  0x52   : > { %2628 = shalt.err (!%p2625_p2)
}
  0x53   : > { %s2629_s26 = scalar_lea.vmem %s3004_s14, 1024  ;;  %p2637_p1 = scmp.lt.s32.totalorder %s3004_s14, %s3004_s14 }
  0x54   : > { %p2630_p8 = scmp.ne.s32.totalorder %s3004_s14, %s2629_s26  ;;  %p2638_p4 = scmp.lt.s32.totalorder %s2629_s26, %s2629_s26 }
  0x56   : > { %p2632_p12 = pnand %p2630_p8, %p2590_p13  ;;  %p2639_p6 = por %p2638_p4, %p2637_p1 }
  0x58   : > { %p2633_p0 = pneg %p2632_p12 }
  0x5a   : > { %p2640_p10 = pnand %p2639_p6, %p2633_p0 }
  0x5c   : > { %2643 = shalt.err (!%p2640_p10)
}
  0x5d   : > { %2333 = dma.hbm_to_vmem [thread:$0]  (!%p3000_p11), %s4195_s4, 1024, %s3004_s14, [#allocation12], %s2802_s19, %s2802_s19, %s2803_s24  }
  0x5e   : > { %p2083_p3 = scmp.ge.s32.totalorder %s2798_s25, 4 }
  0x5f   : > { %p4274_p5 = scmp.ne.s32.totalorder (!%p2083_p3), %s4261_s13, 0 }
  0x60   : > { %333 = sbr.rel (%p2083_p3) target bundleno = 138 (0x8a), region = 40 }
  0x67   : > { %336 = sbr.rel (!%p4274_p5) target bundleno = 138 (0x8a), region = 44  ;;  %s337_s28 = sand.u32 (%p4274_p5), 1, %s2778_s0  }
  0x68   : > { %s2086_s17 = sshll.u32 (%p4274_p5), %s4357_s11, 5  ;;  %s2084_s23 = sshll.u32 (%p4274_p5), %s337_s28, 8 }
  0x69   : > { %s347_s29 = ssub.s32 (%p4274_p5), 125, %s2086_s17  ;;  %s3061_s10 = scalar_lea.sflag (%p4274_p5), [#allocation9], %s337_s28 }
  0x6a   : > { %p348_p13 = scmp.lt.s32.totalorder (%p4274_p5), %s347_s29, 32  ;;  %s341_s14 = scalar_lea.vmem (%p4274_p5), [#allocation8], %s2084_s23 }
  0x6e   : > { %s4363_s29 = smov (!%p348_p13, %s347_s29), 32 }
  0x6f   : > { %s3058_s12 = sshll.u32 %s4363_s29, 7 }
  0x70   : > { %s352_s30 = ssub.s32 4096, %s3058_s12 }
  0x71   : > { %353 = vsyncadd %s3061_s10, %s352_s30  ;;  %p2088_p11 = scmp.ne.s32.totalorder %s3058_s12, 0  ;;  %s2171_s13 = sshll.u32 %s4357_s11, 12 }
  0x72   : > { %s3069_s20 = scalar_lea.hbm %s4192_s1, %s2171_s13  ;;  %s358_s26 = sshll.u32 %s341_s14, 4  ;;  %s3071_s26 = int_to_ptr.vmem [resolvable:$true] %s358_s26 }
  0x73   : > { %s2644_s5 = scalar_lea.hbm %s3069_s20, %s3058_s12  ;;  %s2648_s11 = scalar_lea.hbm %s4192_s1, 16000 }
  0x74   : > { %p2645_p7 = scmp.ne.s32.totalorder %s3069_s20, %s2644_s5  ;;  %p2649_p8 = scmp.lt.u32.totalorder %s3069_s20, %s4192_s1 }
  0x75   : > { %p2650_p12 = scmp.lt.u32.totalorder %s2648_s11, %s2644_s5  ;;  %p2652_p1 = scmp.lt.u32.totalorder %s2644_s5, %s3069_s20 }
  0x76   : > { %p2646_p9 = pnand %p2645_p7, %p2088_p11 }
  0x77   : > { %p2651_p0 = por %p2650_p12, %p2649_p8 }
  0x78   : > { %p2647_p2 = pneg %p2646_p9 }
  0x79   : > { %p2653_p4 = por %p2652_p1, %p2651_p0 }
  0x7b   : > { %p2654_p6 = pnand %p2653_p4, %p2647_p2 }
  0x7d   : > { %2657 = shalt.err (!%p2654_p6)
}
  0x7e   : > { %s2658_s29 = scalar_lea.vmem %s3071_s26, %s3058_s12  ;;  %s2804_s30 = smov [#allocation8]  }
  0x7f   : > { %p2659_p10 = scmp.ne.s32.totalorder %s3071_s26, %s2658_s29  ;;  %s2662_s14 = sshll.u32 %s2804_s30, 4  ;;  %s2663_s14 = int_to_ptr.vmem [resolvable:$false] %s2662_s14 }
  0x80   : > { %s2664_s13 = scalar_lea.vmem %s2663_s14, 8192  ;;  %p2665_p13 = scmp.lt.s32.totalorder %s3071_s26, %s2663_s14 }
  0x81   : > { %p2660_p3 = pnand %p2659_p10, %p2088_p11  ;;  %p2666_p7 = scmp.lt.s32.totalorder %s2664_s13, %s2658_s29 }
  0x83   : > { %p2661_p5 = pneg %p2660_p3  ;;  %p2667_p9 = por %p2666_p7, %p2665_p13 }
  0x85   : > { %p2668_p8 = pnand %p2667_p9, %p2661_p5 }
  0x87   : > { %2671 = shalt.err (!%p2668_p8)
}
  0x88   : > { %s2805_s19 = smov 128   ;;  %s2806_s24 = smov 8  }
  0x89   : > { %364 = dma.hbm_to_vmem [thread:$0]  (%p2088_p11), %s3069_s20, %s3058_s12, %s3071_s26, %s3061_s10, %s2805_s19, %s2805_s19, %s2806_s24  }
  0x8a PF: > { %p4275_p2 = scmp.ne.s32.totalorder %s4272_s16, 0 }
  0x8c   : > { %370 = sbr.rel (%p4275_p2) target bundleno = 1148 (0x47c), region = 48 }
  0x93   : > { %s372_s5 = sand.u32 1, %s2774_s21   ;;  %p4276_p12 = scmp.ne.s32.totalorder %s4263_s27, 0 }
  0x94   : > { %s2093_s6 = sshll.u32 %s372_s5, 8  ;;  %s373_s28 = scalar_lea.sflag [#allocation9], %s372_s5 }
  0x95   : > { %s3101_s11 = scalar_lea.vmem [#allocation8], %s2093_s6 }
  0x96   : > { %2745 = dma.done.wait (%p4276_p12), %s373_s28, 4096  }
  0x97   : > { %2747 = vsyncadd (%p4276_p12), %s373_s28, 4294963200  ;;  %p4277_p0 = scmp.ne.s32.totalorder %s4262_s15, 0 }
  0x99   : > { %2749 = dma.done.wait (%p4277_p0), [#allocation12], 2048  }
  0x9a   : > { %2751 = vsyncadd (%p4277_p0), [#allocation12], 4294965248  ;;  %s422_s16 = sand.u32 1, %s2762_s18   ;;  %p433_p11 = scmp.lt.s32.totalorder %s2786_s7, 1 }
  0x9b   : > { %s3126_s15 = scalar_lea.vmem [#allocation14], %s422_s16  ;;  %p2096_p1 = scmp.ne.s32.totalorder %s2782_s22, 0 }
  0x9c   : > { %s3114_s12 = scalar_select %p433_p11, %s2786_s7, 1 }
  0x9d   : > { %443 = sbr.rel (%p2096_p1) target bundleno = 164 (0xa4), region = 64  ;;  %vm444_vm0 = vcmask (!%p2096_p1), 0   ;;  %v2807_v1 = vmov (!%p2096_p1), -3.4028235e+38   ;;  %v2808_v2 = vmov (!%p2096_p1), 0.0  }
  0x9e   : > { %s435_s27 = scalar_lea.vmem %s4199_s8, %s3114_s12  ;;  %s438_s23 = scalar_lea.vmem %s4200_s9, %s3114_s12  ;;  %445 = vst.msk [vmem:[#allocation2] sm:$0x1] (!%p2096_p1), %vm444_vm0, %v2807_v1  ;;  %446 = vst.msk [vmem:[#allocation3] sm:$0x1] (!%p2096_p1), %vm444_vm0, %v2808_v2 }
  0x9f   : > { %447 = vst [vmem:[#allocation4] sm:$0x1] (!%p2096_p1), %v2808_v2 }
  0xa4 PF: > { %v2442_v3 = vld [vmem:[#allocation11] sm:$0xff]   ;;  %v2443_v4 = vld [vmem:[#allocation11 + $0x8] sm:$0xff]   ;;  %v2444_v5 = vld [vmem:[#allocation11 + $0x10] sm:$0xff]   ;;  %s2106_s29 = sshll.u32 %s2786_s7, 1  ;;  %s448_s14 = sld [smem:[#allocation6]] }
  0xa5   : > { %2220 = vmatprep.subr.bf16.mxu0 %v2442_v3  ;;  %v2445_v6 = vld [vmem:[#allocation11 + $0x18] sm:$0xff]   ;;  %v449_v7 = vld [vmem:[%s3101_s11] sm:$0xff]  ;;  %v450_v8 = vld [vmem:[%s3101_s11 + $0x8] sm:$0xff]  ;;  %s730_s30 = sadd.s32 %s2782_s22, %s2106_s29  ;;  %s4294_s28 = sld [smem:[#allocation44_spill]] }
  0xa6   : > { %2221 = vmatpush3.bf16.msra.mxu0 %v2442_v3  ;;  %v481_v9 = vpack.c.bf16 %v450_v8, %v449_v7  ;;  %v2446_v10 = vld [vmem:[#allocation11 + $0x20] sm:$0xff]   ;;  %v2447_v11 = vld [vmem:[#allocation11 + $0x28] sm:$0xff]   ;;  %v2448_v12 = vld [vmem:[#allocation11 + $0x30] sm:$0xff]   ;;  %v732_v3 = vlaneseq  ;;  %s2107_s13 = sshll.u32 %s730_s30, 8  ;;  %s4295_s20 = sld [smem:[#allocation45_spill]] }
  0xa7   : > { %2222 = vmatprep.subr.bf16.mxu0 %v2443_v4  ;;  %v2450_v13 = vld [vmem:[#allocation13] sm:$0xff]   ;;  %v2451_v14 = vld [vmem:[#allocation13 + $0x8] sm:$0xff]   ;;  %v2452_v15 = vld [vmem:[#allocation13 + $0x10] sm:$0xff]   ;;  %v3168_v8 = vstv %s2107_s13  ;;  %p2167_p4 = scmp.ne.s32.totalorder %s2782_s22, 1 }
  0xa8   : > { %2236 = vmatprep.mubr.bf16.mxu0 %v481_v9  ;;  %2268 = vmatprep.subr.bf16.mxu1 %v2450_v13  ;;  %v2449_v16 = vld [vmem:[#allocation11 + $0x38] sm:$0xff]   ;;  %v451_v17 = vld [vmem:[%s3101_s11 + $0x10] sm:$0xff]  ;;  %v453_v20 = vld [vmem:[%s3101_s11 + $0x20] sm:$0xff] }
  0xa9   : > { %2269 = vmatpush3.bf16.msra.mxu1 %v2450_v13  ;;  %v452_v18 = vld [vmem:[%s3101_s11 + $0x18] sm:$0xff]  ;;  %v454_v21 = vld [vmem:[%s3101_s11 + $0x28] sm:$0xff]  ;;  %v2454_v24 = vld [vmem:[#allocation13 + $0x20] sm:$0xff]  }
  0xaa   : > { %2223 = vmatpush3.bf16.msra.mxu0 %v2443_v4  ;;  %2270 = vmatprep.subr.bf16.mxu1 %v2451_v14  ;;  %v2453_v19 = vld [vmem:[#allocation13 + $0x18] sm:$0xff]   ;;  %v482_v22 = vpack.c.bf16 %v452_v18, %v451_v17  ;;  %v483_v23 = vpack.c.bf16 %v454_v21, %v453_v20  ;;  %v455_v25 = vld [vmem:[%s3101_s11 + $0x30] sm:$0xff]  ;;  %v2455_v27 = vld [vmem:[#allocation13 + $0x28] sm:$0xff]   ;;  %v3163_v4 = vshrl.u32 %v732_v3, 7  ;;  %v3184_v13 = vstv %s448_s14 }
  0xab   : > { %2224 = vmatprep.subr.bf16.mxu0 %v2444_v5  ;;  %v456_v26 = vld [vmem:[%s3101_s11 + $0x38] sm:$0xff]  ;;  %v457_v28 = vld [vmem:[%s3101_s11 + $0x40] sm:$0xff]  ;;  %v458_v29 = vld [vmem:[%s3101_s11 + $0x48] sm:$0xff] }
  0xac   : > { %v484_v30 = vpack.c.bf16 %v456_v26, %v455_v25  ;;  %v485_v31 = vpack.c.bf16 %v458_v29, %v457_v28  ;;  %v459_v32 = vld [vmem:[%s3101_s11 + $0x50] sm:$0xff]  ;;  %v460_v33 = vld [vmem:[%s3101_s11 + $0x58] sm:$0xff]  ;;  %v461_v34 = vld [vmem:[%s3101_s11 + $0x60] sm:$0xff]  ;;  %v734_v7 = vadd.s32 8, %v3163_v4  ;;  %v740_v17 = vadd.s32 56, %v3163_v4 }
  0xad   : > { %2271 = vmatpush3.bf16.msra.mxu1 %v2451_v14  ;;  %v462_v35 = vld [vmem:[%s3101_s11 + $0x68] sm:$0xff]  ;;  %v486_v36 = vpack.c.bf16 %v460_v33, %v459_v32  ;;  %v463_v38 = vld [vmem:[%s3101_s11 + $0x70] sm:$0xff]  ;;  %v464_v39 = vld [vmem:[%s3101_s11 + $0x78] sm:$0xff]  ;;  %v3188_v14 = vadd.s32 %v3168_v8, %v3163_v4  ;;  %v738_v20 = vadd.s32 40, %v3163_v4  ;;  %v737_v25 = vadd.s32 32, %v3163_v4 }
  0xae   : > { %2225 = vmatpush3.bf16.msra.mxu0 %v2444_v5  ;;  %2272 = vmatprep.subr.bf16.mxu1 %v2452_v15  ;;  %v487_v37 = vpack.c.bf16 %v462_v35, %v461_v34  ;;  %v465_v40 = vld [vmem:[%s3101_s11 + $0x80] sm:$0xff]  ;;  %v466_v41 = vld [vmem:[%s3101_s11 + $0x88] sm:$0xff]  ;;  %v488_v42 = vpack.c.bf16 %v464_v39, %v463_v38  ;;  %v467_v44 = vld [vmem:[%s3101_s11 + $0x90] sm:$0xff]  ;;  %v735_v5 = vadd.s32 16, %v3163_v4  ;;  %v3210_v28 = vadd.s32 %v3168_v8, %v740_v17 }
  0xaf   : > { %2226 = vmatprep.subr.bf16.mxu0 %v2445_v6  ;;  %v489_v43 = vpack.c.bf16 %v466_v41, %v465_v40  ;;  %v468_v45 = vld [vmem:[%s3101_s11 + $0x98] sm:$0xff]  ;;  %v469_v46 = vld [vmem:[%s3101_s11 + $0xa0] sm:$0xff]  ;;  %v470_v47 = vld [vmem:[%s3101_s11 + $0xa8] sm:$0xff]  ;;  %vm799_vm4 = vcmp.lt.s32.totalorder %v3188_v14, %v3184_v13  ;;  %v3225_v32 = vadd.s32 %v3168_v8, %v738_v20  ;;  %v3244_v38 = vadd.s32 %v3168_v8, %v737_v25 }
  0xb0   : > { %v490_v48 = vpack.c.bf16 %v468_v45, %v467_v44  ;;  %v491_v49 = vpack.c.bf16 %v470_v47, %v469_v46  ;;  %v471_v50 = vld [vmem:[%s3101_s11 + $0xb0] sm:$0xff]  ;;  %v472_v51 = vld [vmem:[%s3101_s11 + $0xb8] sm:$0xff]  ;;  %v473_v52 = vld [vmem:[%s3101_s11 + $0xc0] sm:$0xff]  ;;  %v743_v40 = vadd.s32 80, %v3163_v4  ;;  %v744_v41 = vadd.s32 88, %v3163_v4 }
  0xb1   : > { %2273 = vmatpush3.bf16.msra.mxu1 %v2452_v15  ;;  %v474_v53 = vld [vmem:[%s3101_s11 + $0xc8] sm:$0xff]  ;;  %v492_v54 = vpack.c.bf16 %v472_v51, %v471_v50  ;;  %v475_v56 = vld [vmem:[%s3101_s11 + $0xd0] sm:$0xff]  ;;  %v476_v57 = vld [vmem:[%s3101_s11 + $0xd8] sm:$0xff]  ;;  %v742_v44 = vadd.s32 72, %v3163_v4  ;;  %vm806_vm8 = vcmp.lt.s32.totalorder %v3210_v28, %v3184_v13  ;;  %vm804_vm9 = vcmp.lt.s32.totalorder %v3225_v32, %v3184_v13 }
  0xb2   : > { %2227 = vmatpush3.bf16.msra.mxu0 %v2445_v6  ;;  %2274 = vmatprep.subr.bf16.mxu1 %v2453_v19  ;;  %v493_v55 = vpack.c.bf16 %v474_v53, %v473_v52  ;;  %v477_v58 = vld [vmem:[%s3101_s11 + $0xe0] sm:$0xff]  ;;  %v478_v59 = vld [vmem:[%s3101_s11 + $0xe8] sm:$0xff]  ;;  %v494_v60 = vpack.c.bf16 %v476_v57, %v475_v56  ;;  %v479_v62 = vld [vmem:[%s3101_s11 + $0xf0] sm:$0xff]  ;;  %v736_v6 = vadd.s32 24, %v3163_v4  ;;  %vm803_vm10 = vcmp.lt.s32.totalorder %v3244_v38, %v3184_v13 }
  0xb3   : > { %2228 = vmatprep.subr.bf16.mxu0 %v2446_v10  ;;  %v495_v61 = vpack.c.bf16 %v478_v59, %v477_v58  ;;  %v480_v63 = vld [vmem:[%s3101_s11 + $0xf8] sm:$0xff]  ;;  %v2456_v1 = vld [vmem:[#allocation13 + $0x30] sm:$0xff]   ;;  %v3263_v51 = vadd.s32 %v3168_v8, %v743_v40  ;;  %v3266_v52 = vadd.s32 %v3168_v8, %v744_v41  ;;  %vm2123_vm11 = vmpackc.low %vm804_vm9, %vm803_vm10  ;;  %v3281_v56 = vadd.s32 %v3168_v8, %v742_v44 }
  0xb4   : > { %v496_v0 = vpack.c.bf16 %v480_v63, %v479_v62  ;;  %v2457_v2 = vld [vmem:[#allocation13 + $0x38] sm:$0xff]   ;;  %v745_v17 = vadd.s32 96, %v3163_v4 }
  0xb5   : > { %2275 = vmatpush3.bf16.msra.mxu1 %v2453_v19  ;;  %v3173_v9 = vld [vmem:[%s4194_s3] ss:$0 sm:$0xff]  ;;  %vm809_vm13 = vcmp.lt.s32.totalorder %v3263_v51, %v3184_v13  ;;  %vm810_vm14 = vcmp.lt.s32.totalorder %v3266_v52, %v3184_v13  ;;  %vm4218_vm15 = vcmp.lt.s32.totalorder %v3281_v56, %v3184_v13 }
  0xb6   : > { %2229 = vmatpush3.bf16.msra.mxu0 %v2446_v10  ;;  %2276 = vmatprep.subr.bf16.mxu1 %v2454_v24  ;;  %v3176_v10 = vadd.s32 %v3168_v8, %v735_v5  ;;  %v746_v5 = vadd.s32 104, %v3163_v4 }
  0xb7   : > { %2230 = vmatprep.subr.bf16.mxu0 %v2447_v11 }
  0xb8   : > { %vm801_vm1 = vcmp.lt.s32.totalorder %v3176_v10, %v3184_v13 }
  0xb9   : > { %2277 = vmatpush3.bf16.msra.mxu1 %v2454_v24 }
  0xba   : > { %2231 = vmatpush3.bf16.msra.mxu0 %v2447_v11  ;;  %2278 = vmatprep.subr.bf16.mxu1 %v2455_v27  ;;  %v3179_v11 = vadd.s32 %v3168_v8, %v736_v6 }
  0xbb   : > { %2232 = vmatprep.subr.bf16.mxu0 %v2448_v12 }
  0xbc   : > { %vm802_vm2 = vcmp.lt.s32.totalorder %v3179_v11, %v3184_v13 }
  0xbd   : > { %2279 = vmatpush3.bf16.msra.mxu1 %v2455_v27  ;;  %vm2120_vm6 = vmpackc.low %vm802_vm2, %vm801_vm1 }
  0xbe   : > { %2233 = vmatpush3.bf16.msra.mxu0 %v2448_v12  ;;  %2280 = vmatprep.subr.bf16.mxu1 %v2456_v1  ;;  %v3182_v12 = vadd.s32 %v3168_v8, %v734_v7 }
  0xbf   : > { %2234 = vmatprep.subr.bf16.mxu0 %v2449_v16 }
  0xc0   : > { %vm800_vm3 = vcmp.lt.s32.totalorder %v3182_v12, %v3184_v13 }
  0xc1   : > { %2281 = vmatpush3.bf16.msra.mxu1 %v2456_v1  ;;  %vm2117_vm5 = vmpackc.low %vm800_vm3, %vm799_vm4  ;;  %v748_v1 = vadd.s32 120, %v3163_v4 }
  0xc2   : > { %2235 = vmatpush3.bf16.msra.mxu0 %v2449_v16  ;;  %2282 = vmatprep.subr.bf16.mxu1 %v2457_v2  ;;  %v739_v16 = vadd.s32 48, %v3163_v4 }
  0xc3   : > { %v3322_v20 = vadd.s32 %v3168_v8, %v748_v1 }
  0xc4   : > { %v3207_v27 = vadd.s32 %v3168_v8, %v739_v16 }
  0xc5   : > { %2237 = vmatmul.mubr.bf16.vlgmr.msra.gmra.mrb[0].mxu0 %v482_v22  ;;  %2283 = vmatpush3.bf16.msra.mxu1 %v2457_v2 }
  0xc6   : > { %2240 = vmatprep.mubr.bf16.mxu0 %v483_v23  ;;  %vm805_vm7 = vcmp.lt.s32.totalorder %v3207_v27, %v3184_v13 }
  0xc7   : > { %vm2126_vm12 = vmpackc.low %vm806_vm8, %vm805_vm7 }
  0xcd   : > { %2241 = vmatmul.mubr.bf16.gmra.mrb[4].mxu0 %v484_v30 }
  0xce   : > { %2244 = vmatprep.mubr.bf16.mxu0 %v485_v31 }
  0xd5   : > { %2245 = vmatmul.mubr.bf16.gmra.mrb[8].mxu0 %v486_v36 }
  0xd6   : > { %2248 = vmatprep.mubr.bf16.mxu0 %v487_v37 }
  0xdd   : > { %2249 = vmatmul.mubr.bf16.gmra.mrb[12].mxu0 %v488_v42 }
  0xde   : > { %2252 = vmatprep.mubr.bf16.mxu0 %v489_v43 }
  0xe5   : > { %2253 = vmatmul.mubr.bf16.gmra.mrb[16].mxu0 %v490_v48 }
  0xe6   : > { %2256 = vmatprep.mubr.bf16.mxu0 %v491_v49  ;;  %v741_v49 = vadd.s32 64, %v3163_v4 }
  0xe8   : > { %v3300_v62 = vadd.s32 %v3168_v8, %v741_v49 }
  0xea   : > { %vm4219_vm0 = vcmp.lt.s32.totalorder %v3300_v62, %v3184_v13 }
  0xed   : > { %2257 = vmatmul.mubr.bf16.gmra.mrb[20].mxu0 %v492_v54 }
  0xee   : > { %2260 = vmatprep.mubr.bf16.mxu0 %v493_v55 }
  0xf5   : > { %2261 = vmatmul.mubr.bf16.gmra.mrb[24].mxu0 %v494_v60 }
  0xf6   : > { %2264 = vmatprep.mubr.bf16.mxu0 %v495_v61 }
  0xfd   : > { %2265 = vmatmul.mubr.bf16.gmra.mrb[28].mxu0 %v496_v0  ;;  %v747_v0 = vadd.s32 112, %v3163_v4 }
 0x198   : > { %v2238_v15 = vpop.f32.mrb[0].mxu0 }
 0x199   : > { %v611_v18 = vadd.f32 %v2238_v15, %v3173_v9  ;;  %v602_v19 = vpop.f32.mrb[1].mxu0 }
 0x19a   : > { %v603_v21 = vadd.f32 %v3173_v9, %v602_v19  ;;  %v2239_v22 = vpop.f32.mrb[2].mxu0  ;;  %v3319_v19 = vadd.s32 %v3168_v8, %v747_v0 }
 0x19b   : > { %v614_v23 = vadd.f32 %v2239_v22, %v3173_v9  ;;  %v605_v24 = vpop.f32.mrb[3].mxu0  ;;  %v897_v29 = vsel %vm801_vm1, %v611_v18, 0.0 }
 0x19c   : > { %v606_v26 = vadd.f32 %v3173_v9, %v605_v24  ;;  %v895_v33 = vsel %vm799_vm4, %v603_v21, 0.0  ;;  %v3337_v24 = vadd.s32 %v3168_v8, %v746_v5  ;;  %v755_v5 = vadd.s32 176, %v3163_v4 }
 0x19d   : > { %v898_v30 = vsel %vm802_vm2, %v614_v23, 0.0  ;;  %v2121_v31 = vpack.c.bf16 %v614_v23, %v611_v18 }
 0x19e   : > { %v3230_v34 = vpack.c.bf16 %v898_v30, %v897_v29  ;;  %v896_v35 = vsel %vm800_vm3, %v606_v26, 0.0  ;;  %v2118_v36 = vpack.c.bf16 %v606_v26, %v603_v21 }
 0x19f   : > { %v3241_v37 = vpack.c.bf16 %v896_v35, %v895_v33  ;;  %v3356_v33 = vadd.s32 %v3168_v8, %v745_v17 }
 0x1a0   : > { %4278 = vst [vmem:[#allocation28_spill] sm:$0xff] %v3230_v34  ;;  %v2242_v39 = vpop.f32.mrb[4].mxu0  ;;  %2284 = vmatprep.mubr.msk.bf16.mxu1 %vm2117_vm5, %v2118_v36  ;;  %vm2129_vm5 = vmpackc.low %vm4218_vm15, %vm4219_vm0  ;;  %v751_v36 = vadd.s32 144, %v3163_v4 }
 0x1a1   : > { %4279 = vst [vmem:[#allocation29_spill] sm:$0xff] %v3241_v37  ;;  %v627_v42 = vadd.f32 %v2242_v39, %v3173_v9  ;;  %v618_v43 = vpop.f32.mrb[5].mxu0  ;;  %2285 = vmatmul.mubr.msk.bf16.vlgmr.msra.gmra.mrb[0].mxu1 %vm2120_vm6, %v2121_v31  ;;  %vm2132_vm6 = vmpackc.low %vm810_vm14, %vm809_vm13  ;;  %v752_v39 = vadd.s32 152, %v3163_v4 }
 0x1a2   : > { %v619_v45 = vadd.f32 %v3173_v9, %v618_v43  ;;  %v2243_v46 = vpop.f32.mrb[6].mxu0  ;;  %v3375_v49 = vadd.s32 %v3168_v8, %v751_v36 }
 0x1a3   : > { %v630_v47 = vadd.f32 %v2243_v46, %v3173_v9  ;;  %v621_v48 = vpop.f32.mrb[7].mxu0  ;;  %v901_v53 = vsel %vm805_vm7, %v627_v42, 0.0 }
 0x1a4   : > { %v622_v50 = vadd.f32 %v3173_v9, %v621_v48  ;;  %v899_v57 = vsel %vm803_vm10, %v619_v45, 0.0 }
 0x1a5   : > { %v902_v54 = vsel %vm806_vm8, %v630_v47, 0.0  ;;  %v2127_v55 = vpack.c.bf16 %v630_v47, %v627_v42  ;;  %v750_v42 = vadd.s32 136, %v3163_v4  ;;  %v749_v47 = vadd.s32 128, %v3163_v4 }
 0x1a6   : > { %v3286_v58 = vpack.c.bf16 %v902_v54, %v901_v53  ;;  %v900_v59 = vsel %vm804_vm9, %v622_v50, 0.0  ;;  %v2124_v60 = vpack.c.bf16 %v622_v50, %v619_v45  ;;  %v3378_v50 = vadd.s32 %v3168_v8, %v752_v39 }
 0x1a7   : > { %v3297_v61 = vpack.c.bf16 %v900_v59, %v899_v57  ;;  %v3393_v57 = vadd.s32 %v3168_v8, %v750_v42 }
 0x1a8   : > { %4280 = vst [vmem:[#allocation30_spill] sm:$0xff] %v3286_v58  ;;  %v2246_v63 = vpop.f32.mrb[8].mxu0  ;;  %2288 = vmatprep.mubr.msk.bf16.mxu1 %vm2123_vm11, %v2124_v60  ;;  %vm4223_vm11 = vcmp.lt.s32.totalorder %v3319_v19, %v3184_v13 }
 0x1a9   : > { %4281 = vst [vmem:[#allocation31_spill] sm:$0xff] %v3297_v61  ;;  %v643_v2 = vadd.f32 %v2246_v63, %v3173_v9  ;;  %v634_v3 = vpop.f32.mrb[9].mxu0  ;;  %2289 = vmatmul.mubr.msk.bf16.gmra.mrb[4].mxu1 %vm2126_vm12, %v2127_v55  ;;  %vm4222_vm12 = vcmp.lt.s32.totalorder %v3322_v20, %v3184_v13 }
 0x1aa   : > { %v635_v6 = vadd.f32 %v3173_v9, %v634_v3  ;;  %v2247_v7 = vpop.f32.mrb[10].mxu0 }
 0x1ab   : > { %v646_v15 = vadd.f32 %v2247_v7, %v3173_v9  ;;  %v637_v16 = vpop.f32.mrb[11].mxu0  ;;  %v905_v21 = vsel %vm809_vm13, %v643_v2, 0.0 }
 0x1ac   : > { %v638_v18 = vadd.f32 %v3173_v9, %v637_v16  ;;  %v903_v25 = vsel %vm4219_vm0, %v635_v6, 0.0  ;;  %vm2138_vm0 = vmpackc.low %vm4222_vm12, %vm4223_vm11  ;;  %v754_v16 = vadd.s32 168, %v3163_v4 }
 0x1ad   : > { %v906_v22 = vsel %vm810_vm14, %v646_v15, 0.0  ;;  %v2133_v23 = vpack.c.bf16 %v646_v15, %v643_v2  ;;  %v3412_v2 = vadd.s32 %v3168_v8, %v749_v47 }
 0x1ae   : > { %v3342_v26 = vpack.c.bf16 %v906_v22, %v905_v21  ;;  %v904_v29 = vsel %vm4218_vm15, %v638_v18, 0.0  ;;  %v2130_v30 = vpack.c.bf16 %v638_v18, %v635_v6  ;;  %vm4221_vm15 = vcmp.lt.s32.totalorder %v3356_v33, %v3184_v13 }
 0x1af   : > { %v3353_v31 = vpack.c.bf16 %v904_v29, %v903_v25  ;;  %v756_v6 = vadd.s32 184, %v3163_v4  ;;  %v3431_v29 = vadd.s32 %v3168_v8, %v755_v5 }
 0x1b0   : > { %4282 = vst [vmem:[#allocation32_spill] sm:$0xff] %v3342_v26  ;;  %v2250_v35 = vpop.f32.mrb[12].mxu0  ;;  %2292 = vmatprep.mubr.msk.bf16.mxu1 %vm2129_vm5, %v2130_v30  ;;  %vm4220_vm5 = vcmp.lt.s32.totalorder %v3337_v24, %v3184_v13 }
 0x1b1   : > { %4283 = vst [vmem:[#allocation33_spill] sm:$0xff] %v3353_v31  ;;  %v659_v40 = vadd.f32 %v2250_v35, %v3173_v9  ;;  %v650_v41 = vpop.f32.mrb[13].mxu0  ;;  %2293 = vmatmul.mubr.msk.bf16.gmra.mrb[8].mxu1 %vm2132_vm6, %v2133_v23  ;;  %vm2135_vm6 = vmpackc.low %vm4220_vm5, %vm4221_vm15  ;;  %v753_v23 = vadd.s32 160, %v3163_v4  ;;  %v3434_v30 = vadd.s32 %v3168_v8, %v756_v6  ;;  %v757_v6 = vadd.s32 192, %v3163_v4 }
 0x1b2   : > { %v651_v43 = vadd.f32 %v3173_v9, %v650_v41  ;;  %v2251_v44 = vpop.f32.mrb[14].mxu0 }
 0x1b3   : > { %v662_v45 = vadd.f32 %v2251_v44, %v3173_v9  ;;  %v653_v46 = vpop.f32.mrb[15].mxu0  ;;  %v909_v53 = vsel %vm4223_vm11, %v659_v40, 0.0 }
 0x1b4   : > { %v654_v48 = vadd.f32 %v3173_v9, %v653_v46  ;;  %v907_v59 = vsel %vm4221_vm15, %v651_v43, 0.0  ;;  %vm4226_vm15 = vcmp.lt.s32.totalorder %v3378_v50, %v3184_v13  ;;  %v3468_v46 = vadd.s32 %v3168_v8, %v753_v23 }
 0x1b5   : > { %v910_v54 = vsel %vm4222_vm12, %v662_v45, 0.0  ;;  %v2139_v55 = vpack.c.bf16 %v662_v45, %v659_v40  ;;  %vm4225_vm12 = vcmp.lt.s32.totalorder %v3412_v2, %v3184_v13  ;;  %v3449_v40 = vadd.s32 %v3168_v8, %v754_v16 }
 0x1b6   : > { %v3398_v60 = vpack.c.bf16 %v910_v54, %v909_v53  ;;  %v908_v63 = vsel %vm4220_vm5, %v654_v48, 0.0  ;;  %v2136_v0 = vpack.c.bf16 %v654_v48, %v651_v43  ;;  %vm4227_vm5 = vcmp.lt.s32.totalorder %v3375_v49, %v3184_v13 }
 0x1b7   : > { %v3409_v1 = vpack.c.bf16 %v908_v63, %v907_v59  ;;  %vm2144_vm11 = vmpackc.low %vm4226_vm15, %vm4227_vm5  ;;  %v759_v48 = vadd.s32 208, %v3163_v4  ;;  %v760_v53 = vadd.s32 216, %v3163_v4  ;;  %v758_v59 = vadd.s32 200, %v3163_v4 }
 0x1b8   : > { %4284 = vst [vmem:[#allocation34_spill] sm:$0xff] %v3398_v60  ;;  %v2254_v3 = vpop.f32.mrb[16].mxu0  ;;  %2296 = vmatprep.mubr.msk.bf16.mxu1 %vm2135_vm6, %v2136_v0  ;;  %vm4224_vm6 = vcmp.lt.s32.totalorder %v3393_v57, %v3184_v13 }
 0x1b9   : > { %4285 = vst [vmem:[#allocation35_spill] sm:$0xff] %v3409_v1  ;;  %v675_v7 = vadd.f32 %v2254_v3, %v3173_v9  ;;  %v666_v15 = vpop.f32.mrb[17].mxu0  ;;  %2297 = vmatmul.mubr.msk.bf16.gmra.mrb[12].mxu1 %vm2138_vm0, %v2139_v55  ;;  %vm2141_vm0 = vmpackc.low %vm4224_vm6, %vm4225_vm12  ;;  %v3490_v16 = vadd.s32 %v3168_v8, %v760_v53 }
 0x1ba   : > { %v667_v17 = vadd.f32 %v3173_v9, %v666_v15  ;;  %v2255_v18 = vpop.f32.mrb[18].mxu0  ;;  %v3487_v15 = vadd.s32 %v3168_v8, %v759_v48 }
 0x1bb   : > { %v678_v21 = vadd.f32 %v2255_v18, %v3173_v9  ;;  %v669_v22 = vpop.f32.mrb[19].mxu0  ;;  %v913_v35 = vsel %vm4227_vm5, %v675_v7, 0.0 }
 0x1bc   : > { %v670_v25 = vadd.f32 %v3173_v9, %v669_v22  ;;  %v911_v41 = vsel %vm4225_vm12, %v667_v17, 0.0  ;;  %vm4229_vm12 = vcmp.lt.s32.totalorder %v3434_v30, %v3184_v13  ;;  %v3505_v22 = vadd.s32 %v3168_v8, %v758_v59 }
 0x1bd   : > { %v914_v36 = vsel %vm4226_vm15, %v678_v21, 0.0  ;;  %v2145_v39 = vpack.c.bf16 %v678_v21, %v675_v7  ;;  %vm4228_vm15 = vcmp.lt.s32.totalorder %v3468_v46, %v3184_v13 }
 0x1be   : > { %v3454_v42 = vpack.c.bf16 %v914_v36, %v913_v35  ;;  %v912_v43 = vsel %vm4224_vm6, %v670_v25, 0.0  ;;  %v2142_v44 = vpack.c.bf16 %v670_v25, %v667_v17  ;;  %vm4231_vm6 = vcmp.lt.s32.totalorder %v3431_v29, %v3184_v13 }
 0x1bf   : > { %v3465_v45 = vpack.c.bf16 %v912_v43, %v911_v41  ;;  %vm2150_vm5 = vmpackc.low %vm4229_vm12, %vm4231_vm6  ;;  %v3524_v41 = vadd.s32 %v3168_v8, %v757_v6 }
 0x1c0   : > { %4286 = vst [vmem:[#allocation36_spill] sm:$0xff] %v3454_v42  ;;  %v2258_v47 = vpop.f32.mrb[20].mxu0  ;;  %2300 = vmatprep.mubr.msk.bf16.mxu1 %vm2141_vm0, %v2142_v44  ;;  %vm4230_vm0 = vcmp.lt.s32.totalorder %v3449_v40, %v3184_v13  ;;  %v763_v44 = vadd.s32 240, %v3163_v4 }
 0x1c1   : > { %4287 = vst [vmem:[#allocation37_spill] sm:$0xff] %v3465_v45  ;;  %v691_v54 = vadd.f32 %v2258_v47, %v3173_v9  ;;  %v682_v55 = vpop.f32.mrb[21].mxu0  ;;  %2301 = vmatmul.mubr.msk.bf16.gmra.mrb[16].mxu1 %vm2144_vm11, %v2145_v39  ;;  %vm2147_vm11 = vmpackc.low %vm4230_vm0, %vm4228_vm15  ;;  %v764_v47 = vadd.s32 248, %v3163_v4 }
 0x1c2   : > { %v683_v63 = vadd.f32 %v3173_v9, %v682_v55  ;;  %v2259_v0 = vpop.f32.mrb[22].mxu0  ;;  %v3543_v6 = vadd.s32 %v3168_v8, %v763_v44 }
 0x1c3   : > { %v694_v3 = vadd.f32 %v2259_v0, %v3173_v9  ;;  %v685_v5 = vpop.f32.mrb[23].mxu0  ;;  %v917_v17 = vsel %vm4231_vm6, %v691_v54, 0.0 }
 0x1c4   : > { %v686_v7 = vadd.f32 %v3173_v9, %v685_v5  ;;  %v915_v23 = vsel %vm4228_vm15, %v683_v63, 0.0  ;;  %vm4234_vm15 = vcmp.lt.s32.totalorder %v3487_v15, %v3184_v13 }
 0x1c5   : > { %v918_v18 = vsel %vm4229_vm12, %v694_v3, 0.0  ;;  %v2151_v21 = vpack.c.bf16 %v694_v3, %v691_v54  ;;  %v762_v54 = vadd.s32 232, %v3163_v4  ;;  %vm4233_vm12 = vcmp.lt.s32.totalorder %v3490_v16, %v3184_v13 }
 0x1c6   : > { %v3510_v25 = vpack.c.bf16 %v918_v18, %v917_v17  ;;  %v916_v35 = vsel %vm4230_vm0, %v686_v7, 0.0  ;;  %v2148_v36 = vpack.c.bf16 %v686_v7, %v683_v63  ;;  %vm4232_vm0 = vcmp.lt.s32.totalorder %v3524_v41, %v3184_v13  ;;  %vm2156_vm6 = vmpackc.low %vm4233_vm12, %vm4234_vm15 }
 0x1c7   : > { %v3521_v39 = vpack.c.bf16 %v916_v35, %v915_v23  ;;  %v761_v3 = vadd.s32 224, %v3163_v4  ;;  %v3546_v7 = vadd.s32 %v3168_v8, %v764_v47  ;;  %v3561_v23 = vadd.s32 %v3168_v8, %v762_v54 }
 0x1c8   : > { %4288 = vst [vmem:[#allocation38_spill] sm:$0xff] %v3510_v25  ;;  %v2262_v43 = vpop.f32.mrb[24].mxu0  ;;  %2304 = vmatprep.mubr.msk.bf16.mxu1 %vm2147_vm11, %v2148_v36  ;;  %vm4235_vm11 = vcmp.lt.s32.totalorder %v3505_v22, %v3184_v13  ;;  %v3696_v25 = vld [vmem:[#allocation7] ss:$0 sm:$0xff] }
 0x1c9   : > { %4289 = vst [vmem:[#allocation39_spill] sm:$0xff] %v3521_v39  ;;  %v707_v48 = vadd.f32 %v2262_v43, %v3173_v9  ;;  %v698_v53 = vpop.f32.mrb[25].mxu0  ;;  %2305 = vmatmul.mubr.msk.bf16.gmra.mrb[20].mxu1 %vm2150_vm5, %v2151_v21  ;;  %vm2153_vm5 = vmpackc.low %vm4235_vm11, %vm4232_vm0 }
 0x1ca   : > { %v699_v55 = vadd.f32 %v3173_v9, %v698_v53  ;;  %v2263_v59 = vpop.f32.mrb[26].mxu0 }
 0x1cb   : > { %v710_v63 = vadd.f32 %v2263_v59, %v3173_v9  ;;  %v701_v0 = vpop.f32.mrb[27].mxu0  ;;  %v921_v17 = vsel %vm4234_vm15, %v707_v48, 0.0  ;;  %vm828_vm15 = vcmp.lt.s32.totalorder %v3561_v23, %v3184_v13 }
 0x1cc   : > { %v702_v5 = vadd.f32 %v3173_v9, %v701_v0  ;;  %v919_v35 = vsel %vm4232_vm0, %v699_v55, 0.0  ;;  %vm829_vm0 = vcmp.lt.s32.totalorder %v3543_v6, %v3184_v13 }
 0x1cd   : > { %v922_v18 = vsel %vm4233_vm12, %v710_v63, 0.0  ;;  %v2157_v21 = vpack.c.bf16 %v710_v63, %v707_v48  ;;  %v3580_v48 = vadd.s32 %v3168_v8, %v761_v3  ;;  %vm830_vm12 = vcmp.lt.s32.totalorder %v3546_v7, %v3184_v13 }
 0x1ce   : > { %v3566_v36 = vpack.c.bf16 %v922_v18, %v921_v17  ;;  %v920_v43 = vsel %vm4235_vm11, %v702_v5, 0.0  ;;  %v2154_v44 = vpack.c.bf16 %v702_v5, %v699_v55 }
 0x1cf   : > { %v3577_v47 = vpack.c.bf16 %v920_v43, %v919_v35  ;;  %vm827_vm11 = vcmp.lt.s32.totalorder %v3580_v48, %v3184_v13 }
 0x1d0   : > { %4290 = vst [vmem:[#allocation40_spill] sm:$0xff] %v3566_v36  ;;  %v2266_v53 = vpop.f32.mrb[28].mxu0  ;;  %2308 = vmatprep.mubr.msk.bf16.mxu1 %vm2153_vm5, %v2154_v44  ;;  %vm2162_vm5 = vmpackc.low %vm830_vm12, %vm829_vm0 }
 0x1d1   : > { %4291 = vst [vmem:[#allocation41_spill] sm:$0xff] %v3577_v47  ;;  %v723_v54 = vadd.f32 %v2266_v53, %v3173_v9  ;;  %v714_v59 = vpop.f32.mrb[29].mxu0  ;;  %2309 = vmatmul.mubr.msk.bf16.gmra.mrb[24].mxu1 %vm2156_vm6, %v2157_v21  ;;  %vm2159_vm6 = vmpackc.low %vm828_vm15, %vm827_vm11  ;;  %v3625_v53 = vld [vmem:[%s4294_s28] ss:$0 sm:$0xff] }
 0x1d2   : > { %v715_v55 = vadd.f32 %v3173_v9, %v714_v59  ;;  %v2267_v63 = vpop.f32.mrb[30].mxu0 }
 0x1d3   : > { %v726_v8 = vadd.f32 %v2267_v63, %v3173_v9  ;;  %v717_v0 = vpop.f32.mrb[31].mxu0  ;;  %v925_v5 = vsel %vm829_vm0, %v723_v54, 0.0 }
 0x1d4   : > { %v718_v3 = vadd.f32 %v3173_v9, %v717_v0  ;;  %v923_v9 = vsel %vm827_vm11, %v715_v55, 0.0 }
 0x1d5   : > { %v926_v17 = vsel %vm830_vm12, %v726_v8, 0.0  ;;  %v2163_v18 = vpack.c.bf16 %v726_v8, %v723_v54 }
 0x1d6   : > { %v3609_v21 = vpack.c.bf16 %v926_v17, %v925_v5  ;;  %v924_v35 = vsel %vm828_vm15, %v718_v3, 0.0  ;;  %v2160_v43 = vpack.c.bf16 %v718_v3, %v715_v55 }
 0x1d7   : > { %v3620_v44 = vpack.c.bf16 %v924_v35, %v923_v9 }
 0x1d8   : > { %4292 = vst [vmem:[#allocation42_spill] sm:$0xff] %v3609_v21  ;;  %2312 = vmatprep.mubr.msk.bf16.mxu1 %vm2159_vm6, %v2160_v43  ;;  %vm1382_vm6 = vcmask 7168  }
 0x1d9   : > { %4293 = vst [vmem:[#allocation43_spill] sm:$0xff] %v3620_v44  ;;  %2313 = vmatmul.mubr.msk.bf16.gmra.mrb[28].mxu1 %vm2162_vm5, %v2163_v18  ;;  %vm4306_vm5 = vcmp.lt.s32.totalorder %v3431_v29, %v3184_v13 }
 0x274   : > { %v2286_v54 = vpop.f32.mrb[0].mxu1 }
 0x275   : > { %v1057_v59 = vadd.f32 %v2286_v54, %v3625_v53  ;;  %v1048_v55 = vpop.f32.mrb[1].mxu1 }
 0x276   : > { %v1049_v63 = vadd.f32 %v3625_v53, %v1048_v55  ;;  %v2287_v8 = vpop.f32.mrb[2].mxu1 }
 0x277   : > { %2458 = vtanh.f32 %v1057_v59  ;;  %v1060_v0 = vadd.f32 %v2287_v8, %v3625_v53  ;;  %v1051_v3 = vpop.f32.mrb[3].mxu1  ;;  %v3637_v59 = vld [vmem:[%s4295_s20] ss:$0 sm:$0xff] }
 0x278   : > { %2460 = vtanh.f32 %v1049_v63  ;;  %v1052_v5 = vadd.f32 %v3625_v53, %v1051_v3 }
 0x279   : > { %2462 = vtanh.f32 %v1060_v0 }
 0x27a   : > { %2464 = vtanh.f32 %v1052_v5 }
 0x27c   : > { %v2290_v17 = vpop.f32.mrb[4].mxu1 }
 0x27d   : > { %v1073_v18 = vadd.f32 %v2290_v17, %v3625_v53  ;;  %v1064_v9 = vpop.f32.mrb[5].mxu1 }
 0x27e   : > { %v1065_v35 = vadd.f32 %v3625_v53, %v1064_v9  ;;  %v2291_v43 = vpop.f32.mrb[6].mxu1 }
 0x27f   : > { %2466 = vtanh.f32 %v1073_v18  ;;  %v1076_v54 = vadd.f32 %v2291_v43, %v3625_v53  ;;  %v1067_v55 = vpop.f32.mrb[7].mxu1 }
 0x280   : > { %v1068_v63 = vadd.f32 %v3625_v53, %v1067_v55 }
 0x281   : > { %v2459_v8 = vpop.eup %2458  ;;  %2468 = vtanh.f32 %v1076_v54 }
 0x282   : > { %v2461_v0 = vpop.eup %2460  ;;  %2470 = vtanh.f32 %v1065_v35  ;;  %v1216_v3 = vmul.f32 %v2459_v8, %v3637_v59 }
 0x283   : > { %v2463_v5 = vpop.eup %2462  ;;  %2472 = vtanh.f32 %v1068_v63  ;;  %v1214_v17 = vmul.f32 %v2461_v0, %v3637_v59 }
 0x284   : > { %v2465_v18 = vpop.eup %2464  ;;  %1250 = vadd.xlane.f32.xlu1 %v1216_v3  ;;  %v2294_v9 = vpop.f32.mrb[8].mxu1  ;;  %v1217_v54 = vmul.f32 %v2463_v5, %v3637_v59 }
 0x285   : > { %v1089_v43 = vadd.f32 %v2294_v9, %v3625_v53  ;;  %v1080_v21 = vpop.f32.mrb[9].mxu1  ;;  %1246 = vadd.xlane.f32.xlu0 %v1214_v17  ;;  %v1215_v63 = vmul.f32 %v2465_v18, %v3637_v59 }
 0x286   : > { %v1081_v44 = vadd.f32 %v3625_v53, %v1080_v21  ;;  %v2295_v55 = vpop.f32.mrb[10].mxu1 }
 0x287   : > { %2474 = vtanh.f32 %v1089_v43  ;;  %v1092_v35 = vadd.f32 %v2295_v55, %v3625_v53  ;;  %v1083_v8 = vpop.f32.mrb[11].mxu1 }
 0x288   : > { %v1084_v0 = vadd.f32 %v3625_v53, %v1083_v8  ;;  %1252 = vadd.xlane.f32.xlu1 %v1217_v54 }
 0x289   : > { %v2467_v3 = vpop.eup %2466  ;;  %2476 = vtanh.f32 %v1092_v35  ;;  %1248 = vadd.xlane.f32.xlu0 %v1215_v63 }
 0x28a   : > { %2478 = vtanh.f32 %v1081_v44  ;;  %v1220_v17 = vmul.f32 %v2467_v3, %v3637_v59 }
 0x28b   : > { %v2469_v9 = vpop.eup %2468  ;;  %2480 = vtanh.f32 %v1084_v0 }
 0x28c   : > { %v2471_v21 = vpop.eup %2470  ;;  %v2298_v36 = vpop.f32.mrb[12].mxu1  ;;  %v1221_v5 = vmul.f32 %v2469_v9, %v3637_v59 }
 0x28d   : > { %v2473_v43 = vpop.eup %2472  ;;  %v1105_v55 = vadd.f32 %v2298_v36, %v3625_v53  ;;  %v1096_v47 = vpop.f32.mrb[13].mxu1  ;;  %1258 = vadd.xlane.f32.xlu0 %v1220_v17  ;;  %v1218_v8 = vmul.f32 %v2471_v21, %v3637_v59 }
 0x28e   : > { %v1097_v18 = vadd.f32 %v3625_v53, %v1096_v47  ;;  %1260 = vadd.xlane.f32.xlu1 %v1221_v5  ;;  %v2299_v54 = vpop.f32.mrb[14].mxu1  ;;  %v1219_v0 = vmul.f32 %v2473_v43, %v3637_v59 }
 0x28f   : > { %2482 = vtanh.f32 %v1105_v55  ;;  %v1108_v44 = vadd.f32 %v2299_v54, %v3625_v53  ;;  %v1099_v35 = vpop.f32.mrb[15].mxu1 }
 0x290   : > { %v1100_v63 = vadd.f32 %v3625_v53, %v1099_v35 }
 0x291   : > { %v2475_v3 = vpop.eup %2474  ;;  %2484 = vtanh.f32 %v1108_v44  ;;  %1254 = vadd.xlane.f32.xlu0 %v1218_v8 }
 0x292   : > { %2486 = vtanh.f32 %v1097_v18  ;;  %1256 = vadd.xlane.f32.xlu1 %v1219_v0  ;;  %v1224_v36 = vmul.f32 %v2475_v3, %v3637_v59 }
 0x293   : > { %v2477_v47 = vpop.eup %2476  ;;  %2488 = vtanh.f32 %v1100_v63 }
 0x294   : > { %v2479_v17 = vpop.eup %2478  ;;  %v2302_v9 = vpop.f32.mrb[16].mxu1  ;;  %v1225_v5 = vmul.f32 %v2477_v47, %v3637_v59 }
 0x295   : > { %v2481_v55 = vpop.eup %2480  ;;  %v1121_v21 = vadd.f32 %v2302_v9, %v3625_v53  ;;  %v1112_v54 = vpop.f32.mrb[17].mxu1  ;;  %1266 = vadd.xlane.f32.xlu0 %v1224_v36  ;;  %v1222_v8 = vmul.f32 %v2479_v17, %v3637_v59 }
 0x296   : > { %v1113_v43 = vadd.f32 %v3625_v53, %v1112_v54  ;;  %v2303_v35 = vpop.f32.mrb[18].mxu1  ;;  %1268 = vadd.xlane.f32.xlu1 %v1225_v5  ;;  %v1223_v0 = vmul.f32 %v2481_v55, %v3637_v59 }
 0x297   : > { %2490 = vtanh.f32 %v1121_v21  ;;  %v1124_v18 = vadd.f32 %v2303_v35, %v3625_v53  ;;  %v1115_v44 = vpop.f32.mrb[19].mxu1 }
 0x298   : > { %v1116_v63 = vadd.f32 %v3625_v53, %v1115_v44 }
 0x299   : > { %v2483_v3 = vpop.eup %2482  ;;  %2492 = vtanh.f32 %v1124_v18  ;;  %1262 = vadd.xlane.f32.xlu0 %v1222_v8 }
 0x29a   : > { %2494 = vtanh.f32 %v1113_v43  ;;  %1264 = vadd.xlane.f32.xlu1 %v1223_v0  ;;  %v1228_v36 = vmul.f32 %v2483_v3, %v3637_v59 }
 0x29b   : > { %v2485_v47 = vpop.eup %2484  ;;  %2496 = vtanh.f32 %v1116_v63 }
 0x29c   : > { %v2487_v9 = vpop.eup %2486  ;;  %v2306_v5 = vpop.f32.mrb[20].mxu1  ;;  %v1229_v21 = vmul.f32 %v2485_v47, %v3637_v59 }
 0x29d   : > { %v2489_v54 = vpop.eup %2488  ;;  %v1137_v17 = vadd.f32 %v2306_v5, %v3625_v53  ;;  %v1128_v35 = vpop.f32.mrb[21].mxu1  ;;  %1274 = vadd.xlane.f32.xlu0 %v1228_v36  ;;  %v1226_v8 = vmul.f32 %v2487_v9, %v3637_v59 }
 0x29e   : > { %v1129_v55 = vadd.f32 %v3625_v53, %v1128_v35  ;;  %v2307_v44 = vpop.f32.mrb[22].mxu1  ;;  %1276 = vadd.xlane.f32.xlu1 %v1229_v21  ;;  %v1227_v0 = vmul.f32 %v2489_v54, %v3637_v59 }
 0x29f   : > { %2498 = vtanh.f32 %v1137_v17  ;;  %v1140_v43 = vadd.f32 %v2307_v44, %v3625_v53  ;;  %v1131_v18 = vpop.f32.mrb[23].mxu1 }
 0x2a0   : > { %v1132_v63 = vadd.f32 %v3625_v53, %v1131_v18 }
 0x2a1   : > { %v2491_v3 = vpop.eup %2490  ;;  %2500 = vtanh.f32 %v1140_v43  ;;  %1270 = vadd.xlane.f32.xlu0 %v1226_v8 }
 0x2a2   : > { %2502 = vtanh.f32 %v1129_v55  ;;  %1272 = vadd.xlane.f32.xlu1 %v1227_v0  ;;  %v1232_v36 = vmul.f32 %v2491_v3, %v3637_v59 }
 0x2a3   : > { %v2493_v47 = vpop.eup %2492  ;;  %2504 = vtanh.f32 %v1132_v63 }
 0x2a4   : > { %v2495_v5 = vpop.eup %2494  ;;  %v2310_v21 = vpop.f32.mrb[24].mxu1  ;;  %v1233_v17 = vmul.f32 %v2493_v47, %v3637_v59 }
 0x2a5   : > { %v2497_v35 = vpop.eup %2496  ;;  %v1153_v9 = vadd.f32 %v2310_v21, %v3625_v53  ;;  %v1144_v44 = vpop.f32.mrb[25].mxu1  ;;  %1282 = vadd.xlane.f32.xlu0 %v1232_v36  ;;  %v1230_v8 = vmul.f32 %v2495_v5, %v3637_v59 }
 0x2a6   : > { %v1145_v54 = vadd.f32 %v3625_v53, %v1144_v44  ;;  %v2311_v18 = vpop.f32.mrb[26].mxu1  ;;  %1284 = vadd.xlane.f32.xlu1 %v1233_v17  ;;  %v1231_v0 = vmul.f32 %v2497_v35, %v3637_v59 }
 0x2a7   : > { %2506 = vtanh.f32 %v1153_v9  ;;  %v1156_v55 = vadd.f32 %v2311_v18, %v3625_v53  ;;  %v1147_v43 = vpop.f32.mrb[27].mxu1 }
 0x2a8   : > { %v1148_v63 = vadd.f32 %v3625_v53, %v1147_v43 }
 0x2a9   : > { %v2499_v3 = vpop.eup %2498  ;;  %2508 = vtanh.f32 %v1156_v55  ;;  %1278 = vadd.xlane.f32.xlu0 %v1230_v8 }
 0x2aa   : > { %2510 = vtanh.f32 %v1145_v54  ;;  %1280 = vadd.xlane.f32.xlu1 %v1231_v0  ;;  %v1236_v36 = vmul.f32 %v2499_v3, %v3637_v59 }
 0x2ab   : > { %v2501_v47 = vpop.eup %2500  ;;  %2512 = vtanh.f32 %v1148_v63 }
 0x2ac   : > { %v2503_v21 = vpop.eup %2502  ;;  %v2314_v17 = vpop.f32.mrb[28].mxu1  ;;  %v1237_v9 = vmul.f32 %v2501_v47, %v3637_v59 }
 0x2ad   : > { %v2505_v44 = vpop.eup %2504  ;;  %v1169_v5 = vadd.f32 %v2314_v17, %v3625_v53  ;;  %v1160_v18 = vpop.f32.mrb[29].mxu1  ;;  %1290 = vadd.xlane.f32.xlu0 %v1236_v36  ;;  %v1234_v54 = vmul.f32 %v2503_v21, %v3637_v59 }
 0x2ae   : > { %v1161_v35 = vadd.f32 %v3625_v53, %v1160_v18  ;;  %v2315_v43 = vpop.f32.mrb[30].mxu1  ;;  %1292 = vadd.xlane.f32.xlu1 %v1237_v9  ;;  %v1235_v0 = vmul.f32 %v2505_v44, %v3637_v59 }
 0x2af   : > { %v1163_v55 = vpop.f32.mrb[31].mxu1  ;;  %v1172_v8 = vadd.f32 %v2315_v43, %v3625_v53 }
 0x2b0   : > { %2514 = vtanh.f32 %v1161_v35  ;;  %v1164_v63 = vadd.f32 %v3625_v53, %v1163_v55 }
 0x2b1   : > { %v2507_v3 = vpop.eup %2506  ;;  %2516 = vtanh.f32 %v1169_v5  ;;  %1286 = vadd.xlane.f32.xlu0 %v1234_v54 }
 0x2b2   : > { %2518 = vtanh.f32 %v1164_v63  ;;  %1288 = vadd.xlane.f32.xlu1 %v1235_v0  ;;  %v1240_v36 = vmul.f32 %v2507_v3, %v3637_v59 }
 0x2b3   : > { %v2509_v47 = vpop.eup %2508  ;;  %2520 = vtanh.f32 %v1172_v8 }
 0x2b4   : > { %v2511_v17 = vpop.eup %2510  ;;  %v1241_v9 = vmul.f32 %v2509_v47, %v3637_v59 }
 0x2b5   : > { %v2513_v21 = vpop.eup %2512  ;;  %1298 = vadd.xlane.f32.xlu0 %v1240_v36  ;;  %v1238_v18 = vmul.f32 %v2511_v17, %v3637_v59 }
 0x2b6   : > { %1300 = vadd.xlane.f32.xlu1 %v1241_v9  ;;  %v1239_v53 = vmul.f32 %v2513_v21, %v3637_v59  ;;  %v2809_v21 = vmov 0  }
 0x2b7   : > { %2440 = vset.pattern.permute.xlu0 %v2809_v21  ;;  %2441 = vset.pattern.permute.xlu1 %v2809_v21 }
 0x2b9   : > { %1294 = vadd.xlane.f32.xlu0 %v1238_v18 }
 0x2ba   : > { %v2515_v44 = vpop.eup %2514  ;;  %1296 = vadd.xlane.f32.xlu1 %v1239_v53 }
 0x2bb   : > { %v2517_v5 = vpop.eup %2516  ;;  %v1242_v35 = vmul.f32 %v2515_v44, %v3637_v59 }
 0x2bc   : > { %v2519_v43 = vpop.eup %2518  ;;  %v1244_v8 = vmul.f32 %v2517_v5, %v3637_v59 }
 0x2bd   : > { %1302 = vadd.xlane.f32.xlu0 %v1242_v35  ;;  %v1243_v55 = vmul.f32 %v2519_v43, %v3637_v59  ;;  %v2521_v54 = vpop.eup %2520 }
 0x2be   : > { %v1245_v63 = vmul.f32 %v2521_v54, %v3637_v59 }
 0x2bf   : > { %1304 = vadd.xlane.f32.xlu1 %v1243_v55 }
 0x2c1   : > { %1306 = vadd.xlane.f32.xlu0 %v1244_v8 }
 0x2c3   : > { %1308 = vadd.xlane.f32.xlu1 %v1245_v63 }
 0x311   : > { %v1251_v0 = vpop.xlane.xlu1 %1250 }
 0x312   : > { %v1247_v3 = vpop.xlane.xlu0 %1246  ;;  %v1319_v63 = vadd.f32 %v3696_v25, %v1251_v0 }
 0x313   : > { %v1317_v1 = vadd.f32 %v3696_v25, %v1247_v3 }
 0x314   : > { %v3704_v60 = vsel %vm801_vm1, %v1319_v63, -inf  ;;  %vm4296_vm1 = vcmp.lt.s32.totalorder %v3300_v62, %v3184_v13 }
 0x315   : > { %v1253_v47 = vpop.xlane.xlu1 %1252  ;;  %v1385_v10 = vsel %vm1382_vm6, %v3704_v60, -inf }
 0x316   : > { %v1249_v36 = vpop.xlane.xlu0 %1248  ;;  %v1320_v26 = vadd.f32 %v3696_v25, %v1253_v47 }
 0x317   : > { %v1318_v0 = vadd.f32 %v3696_v25, %v1249_v36  ;;  %v3727_v36 = vsel %vm799_vm4, %v1317_v1, -inf  ;;  %vm4299_vm4 = vcmp.lt.s32.totalorder %v3322_v20, %v3184_v13 }
 0x318   : > { %v3732_v27 = vsel %vm802_vm2, %v1320_v26, -inf  ;;  %vm4297_vm2 = vcmp.lt.s32.totalorder %v3281_v56, %v3184_v13 }
 0x319   : > { %v1386_v63 = vsel %vm1382_vm6, %v3732_v27, -inf }
 0x31a   : > { %v1259_v17 = vpop.xlane.xlu0 %1258 }
 0x31b   : > { %v1261_v9 = vpop.xlane.xlu1 %1260  ;;  %v1323_v42 = vadd.f32 %v3696_v25, %v1259_v17 }
 0x31c   : > { %v1324_v21 = vadd.f32 %v3696_v25, %v1261_v9 }
 0x31d   : > { %v3713_v17 = vsel %vm805_vm7, %v1323_v42, -inf  ;;  %vm4300_vm7 = vcmp.lt.s32.totalorder %v3356_v33, %v3184_v13 }
 0x31e   : > { %v1255_v18 = vpop.xlane.xlu0 %1254  ;;  %v3721_v3 = vsel %vm806_vm8, %v1324_v21, -inf  ;;  %v1391_v14 = vsel %vm1382_vm6, %v3713_v17, -inf  ;;  %vm4301_vm8 = vcmp.lt.s32.totalorder %v3337_v24, %v3184_v13 }
 0x31f   : > { %v1257_v53 = vpop.xlane.xlu1 %1256  ;;  %v1321_v31 = vadd.f32 %v3696_v25, %v1255_v18  ;;  %v3743_v18 = vsel %vm800_vm3, %v1318_v0, -inf  ;;  %v1393_v38 = vsel %vm1382_vm6, %v3721_v3, -inf  ;;  %vm4298_vm3 = vcmp.lt.s32.totalorder %v3319_v19, %v3184_v13 }
 0x320   : > { %v1322_v9 = vadd.f32 %v3696_v25, %v1257_v53  ;;  %v1394_v0 = vmax.f32 %v1386_v63, %v1393_v38 }
 0x321   : > { %v3737_v42 = vsel %vm803_vm10, %v1321_v31, -inf  ;;  %vm4303_vm10 = vcmp.lt.s32.totalorder %v3378_v50, %v3184_v13 }
 0x322   : > { %v1267_v44 = vpop.xlane.xlu0 %1266  ;;  %v3754_v31 = vsel %vm804_vm9, %v1322_v9, -inf  ;;  %vm4302_vm9 = vcmp.lt.s32.totalorder %v3375_v49, %v3184_v13 }
 0x323   : > { %v1269_v35 = vpop.xlane.xlu1 %1268  ;;  %v1327_v47 = vadd.f32 %v3696_v25, %v1267_v44  ;;  %v1389_v51 = vsel %vm1382_vm6, %v3754_v31, -inf }
 0x324   : > { %v1328_v28 = vadd.f32 %v3696_v25, %v1269_v35  ;;  %v1383_v35 = vsel %vm1382_vm6, %v3727_v36, -inf }
 0x326   : > { %v1263_v43 = vpop.xlane.xlu0 %1262  ;;  %v3775_v21 = vsel %vm810_vm14, %v1328_v28, -inf  ;;  %vm4305_vm14 = vcmp.lt.s32.totalorder %v3393_v57, %v3184_v13 }
 0x327   : > { %v1265_v55 = vpop.xlane.xlu1 %1264  ;;  %v1325_v1 = vadd.f32 %v3696_v25, %v1263_v43  ;;  %v1387_v43 = vsel %vm1382_vm6, %v3737_v42, -inf  ;;  %v1401_v56 = vsel %vm1382_vm6, %v3775_v21, -inf }
 0x328   : > { %v1326_v11 = vadd.f32 %v3696_v25, %v1265_v55  ;;  %v3765_v55 = vsel %vm809_vm13, %v1327_v47, -inf  ;;  %v1388_v47 = vmax.f32 %v1383_v35, %v1387_v43  ;;  %v1402_v63 = vmax.f32 %v1394_v0, %v1401_v56 }
 0x329   : > { %v1399_v52 = vsel %vm1382_vm6, %v3765_v55, -inf  ;;  %vm4304_vm13 = vcmp.lt.s32.totalorder %v3412_v2, %v3184_v13 }
 0x32a   : > { %v1275_v5 = vpop.xlane.xlu0 %1274  ;;  %v3787_v9 = vsel %vm4297_vm2, %v1326_v11, -inf  ;;  %vm4308_vm2 = vcmp.lt.s32.totalorder %v3434_v30, %v3184_v13 }
 0x32b   : > { %v1277_v8 = vpop.xlane.xlu1 %1276  ;;  %v1331_v12 = vadd.f32 %v3696_v25, %v1275_v5  ;;  %v1384_v5 = vsel %vm1382_vm6, %v3743_v18, -inf  ;;  %v1397_v20 = vsel %vm1382_vm6, %v3787_v9, -inf }
 0x32c   : > { %v1332_v53 = vadd.f32 %v3696_v25, %v1277_v8  ;;  %v1392_v8 = vmax.f32 %v1385_v10, %v1391_v14  ;;  %v1390_v38 = vmax.f32 %v1384_v5, %v1389_v51 }
 0x32d   : > { %v3794_v28 = vsel %vm4298_vm3, %v1331_v12, -inf  ;;  %vm4309_vm3 = vcmp.lt.s32.totalorder %v3468_v46, %v3184_v13 }
 0x32e   : > { %v1271_v59 = vpop.xlane.xlu0 %1270  ;;  %v3799_v62 = vsel %vm4299_vm4, %v1332_v53, -inf  ;;  %v1407_v35 = vsel %vm1382_vm6, %v3794_v28, -inf  ;;  %vm4310_vm4 = vcmp.lt.s32.totalorder %v3505_v22, %v3184_v13 }
 0x32f   : > { %v1273_v54 = vpop.xlane.xlu1 %1272  ;;  %v1329_v32 = vadd.f32 %v3696_v25, %v1271_v59  ;;  %v3782_v59 = vsel %vm4296_vm1, %v1325_v1, -inf  ;;  %v1409_v33 = vsel %vm1382_vm6, %v3799_v62, -inf  ;;  %vm4307_vm1 = vcmp.lt.s32.totalorder %v3449_v40, %v3184_v13 }
 0x330   : > { %v1330_v11 = vadd.f32 %v3696_v25, %v1273_v54  ;;  %v1395_v12 = vsel %vm1382_vm6, %v3782_v59, -inf }
 0x331   : > { %v3806_v1 = vsel %vm4300_vm7, %v1329_v32, -inf  ;;  %v1400_v32 = vmax.f32 %v1392_v8, %v1399_v52  ;;  %v1398_v8 = vmax.f32 %v1390_v38, %v1397_v20  ;;  %v1410_v52 = vmax.f32 %v1402_v63, %v1409_v33 }
 0x332   : > { %v1283_v39 = vpop.xlane.xlu0 %1282  ;;  %v1403_v5 = vsel %vm1382_vm6, %v3806_v1, -inf  ;;  %v3827_v37 = vsel %vm4301_vm8, %v1330_v11, -inf  ;;  %vm4311_vm7 = vcmp.lt.s32.totalorder %v3487_v15, %v3184_v13  ;;  %vm4312_vm8 = vcmp.lt.s32.totalorder %v3490_v16, %v3184_v13 }
 0x333   : > { %v1285_v45 = vpop.xlane.xlu1 %1284  ;;  %v1335_v19 = vadd.f32 %v3696_v25, %v1283_v39  ;;  %v1408_v0 = vmax.f32 %v1400_v32, %v1407_v35  ;;  %v1405_v11 = vsel %vm1382_vm6, %v3827_v37, -inf }
 0x334   : > { %v1336_v53 = vadd.f32 %v3696_v25, %v1285_v45  ;;  %v1396_v45 = vmax.f32 %v1388_v47, %v1395_v12  ;;  %v1406_v33 = vmax.f32 %v1398_v8, %v1405_v11 }
 0x336   : > { %v1279_v58 = vpop.xlane.xlu0 %1278  ;;  %v1404_v47 = vmax.f32 %v1396_v45, %v1403_v5 }
 0x337   : > { %v1281_v61 = vpop.xlane.xlu1 %1280  ;;  %v1333_v43 = vadd.f32 %v3696_v25, %v1279_v58  ;;  %v3832_v58 = vsel %vm4302_vm9, %v1335_v19, -inf  ;;  %vm4313_vm9 = vcmp.lt.s32.totalorder %v3524_v41, %v3184_v13  ;;  %v1459_v13 = vsub.s32 0, %v3163_v4 }
 0x338   : > { %v1334_v54 = vadd.f32 %v3696_v25, %v1281_v61  ;;  %v1415_v50 = vsel %vm1382_vm6, %v3832_v58, -inf }
 0x339   : > { %v3843_v24 = vsel %vm4304_vm13, %v1333_v43, -inf  ;;  %v1416_v43 = vmax.f32 %v1408_v0, %v1415_v50 }
 0x33a   : > { %v1291_v26 = vpop.xlane.xlu0 %1290  ;;  %v3848_v49 = vsel %vm4305_vm14, %v1334_v54, -inf  ;;  %v1411_v29 = vsel %vm1382_vm6, %v3843_v24, -inf }
 0x33b   : > { %v1293_v44 = vpop.xlane.xlu1 %1292  ;;  %v1339_v51 = vadd.f32 %v3696_v25, %v1291_v26  ;;  %v3838_v26 = vsel %vm4303_vm10, %v1336_v53, -inf  ;;  %v1413_v53 = vsel %vm1382_vm6, %v3848_v49, -inf  ;;  %v1412_v30 = vmax.f32 %v1404_v47, %v1411_v29 }
 0x33c   : > { %v1417_v57 = vsel %vm1382_vm6, %v3838_v26, -inf  ;;  %v1414_v45 = vmax.f32 %v1406_v33, %v1413_v53 }
 0x33d   : > { %v3858_v2 = vsel %vm4306_vm5, %v1339_v51, -inf  ;;  %v1418_v51 = vmax.f32 %v1410_v52, %v1417_v57 }
 0x33e   : > { %v1287_v10 = vpop.xlane.xlu0 %1286  ;;  %v1423_v40 = vsel %vm1382_vm6, %v3858_v2, -inf }
 0x33f   : > { %v1289_v14 = vpop.xlane.xlu1 %1288  ;;  %v1337_v19 = vadd.f32 %v3696_v25, %v1287_v10  ;;  %v1424_v47 = vmax.f32 %v1416_v43, %v1423_v40 }
 0x340   : > { %v1338_v61 = vadd.f32 %v3696_v25, %v1289_v14  ;;  %v1340_v14 = vadd.f32 %v3696_v25, %v1293_v44 }
 0x341   : > { %v3886_v32 = vsel %vm4309_vm3, %v1337_v19, -inf }
 0x342   : > { %v1299_v39 = vpop.xlane.xlu0 %1298  ;;  %v3866_v44 = vsel %vm4307_vm1, %v1338_v61, -inf  ;;  %v3881_v54 = vsel %vm4308_vm2, %v1340_v14, -inf  ;;  %v1419_v15 = vsel %vm1382_vm6, %v3886_v32, -inf }
 0x343   : > { %v1301_v34 = vpop.xlane.xlu1 %1300  ;;  %v1343_v12 = vadd.f32 %v3696_v25, %v1299_v39  ;;  %v1425_v8 = vsel %vm1382_vm6, %v3881_v54, -inf  ;;  %v1420_v29 = vmax.f32 %v1412_v30, %v1419_v15 }
 0x344   : > { %v1344_v10 = vadd.f32 %v3696_v25, %v1301_v34  ;;  %v1421_v34 = vsel %vm1382_vm6, %v3866_v44, -inf }
 0x345   : > { %v3899_v61 = vsel %vm4311_vm7, %v1343_v12, -inf  ;;  %v1422_v14 = vmax.f32 %v1414_v45, %v1421_v34 }
 0x346   : > { %v1295_v56 = vpop.xlane.xlu0 %1294  ;;  %v3906_v22 = vsel %vm4312_vm8, %v1344_v10, -inf  ;;  %v1431_v16 = vsel %vm1382_vm6, %v3899_v61, -inf }
 0x347   : > { %v1297_v38 = vpop.xlane.xlu1 %1296  ;;  %v1341_v35 = vadd.f32 %v3696_v25, %v1295_v56  ;;  %v1433_v57 = vsel %vm1382_vm6, %v3906_v22, -inf }
 0x348   : > { %v1342_v20 = vadd.f32 %v3696_v25, %v1297_v38  ;;  %v1426_v38 = vmax.f32 %v1418_v51, %v1425_v8 }
 0x349   : > { %v3911_v0 = vsel %vm4313_vm9, %v1341_v35, -inf  ;;  %v1432_v35 = vmax.f32 %v1424_v47, %v1431_v16 }
 0x34a   : > { %v1303_v39 = vpop.xlane.xlu0 %1302  ;;  %v3893_v63 = vsel %vm4310_vm4, %v1342_v20, -inf  ;;  %v1427_v12 = vsel %vm1382_vm6, %v3911_v0, -inf  ;;  %v1434_v40 = vmax.f32 %v1426_v38, %v1433_v57 }
 0x34b   : > { %v1345_v5 = vadd.f32 %v3696_v25, %v1303_v39  ;;  %v1429_v56 = vsel %vm1382_vm6, %v3893_v63, -inf  ;;  %v1428_v39 = vmax.f32 %v1420_v29, %v1427_v12 }
 0x34c   : > { %v1305_v46 = vpop.xlane.xlu1 %1304  ;;  %v1430_v53 = vmax.f32 %v1422_v14, %v1429_v56 }
 0x34d   : > { %v1346_v52 = vadd.f32 %v3696_v25, %v1305_v46  ;;  %v3923_v41 = vsel %vm827_vm11, %v1345_v5, -inf }
 0x34e   : > { %v1307_v11 = vpop.xlane.xlu0 %1306  ;;  %v1435_v33 = vsel %vm1382_vm6, %v3923_v41, -inf }
 0x34f   : > { %v3928_v50 = vsel %vm828_vm15, %v1346_v52, -inf  ;;  %v1347_v19 = vadd.f32 %v3696_v25, %v1307_v11  ;;  %v1436_v51 = vmax.f32 %v1428_v39, %v1435_v33  ;;  %v1381_v11 = vld [vmem:[#allocation2] sm:$0x1]  ;;  %vm1630_vm15 = vcmask 0  }
 0x350   : > { %v1437_v20 = vsel %vm1382_vm6, %v3928_v50, -inf  ;;  %v1309_v48 = vpop.xlane.xlu1 %1308 }
 0x351   : > { %v3940_v23 = vsel %vm829_vm0, %v1347_v19, -inf  ;;  %v1348_v10 = vadd.f32 %v3696_v25, %v1309_v48  ;;  %v1438_v34 = vmax.f32 %v1430_v53, %v1437_v20 }
 0x352   : > { %v1439_v43 = vsel %vm1382_vm6, %v3940_v23, -inf }
 0x353   : > { %v3950_v5 = vsel %vm830_vm12, %v1348_v10, -inf  ;;  %v1440_v25 = vmax.f32 %v1432_v35, %v1439_v43  ;;  %v1443_v45 = vmax.f32 %v1436_v51, %v1438_v34 }
 0x354   : > { %v1441_v6 = vsel %vm1382_vm6, %v3950_v5, -inf }
 0x355   : > { %v1442_v30 = vmax.f32 %v1434_v40, %v1441_v6 }
 0x357   : > { %v1444_v46 = vmax.f32 %v1440_v25, %v1442_v30 }
 0x359   : > { %v1445_v8 = vmax.f32 %v1443_v45, %v1444_v46 }
 0x35b   : > { %v1446_v52 = vrot.slane %v1445_v8, 4 }
 0x35d   : > { %v1447_v47 = vmax.f32 %v1445_v8, %v1446_v52 }
 0x35f   : > { %v1448_v15 = vrot.slane %v1447_v47, 2 }
 0x361   : > { %v1449_v14 = vmax.f32 %v1447_v47, %v1448_v15 }
 0x363   : > { %v1450_v56 = vrot.slane %v1449_v14, 1 }
 0x365   : > { %v1451_v16 = vmax.f32 %v1449_v14, %v1450_v56 }
 0x367   : > { %v1452_v7 = vmax.f32 %v1381_v11, %v1451_v16 }
 0x369   : > { %v1453_v19 = vsub.f32 %v1381_v11, %v1452_v7  ;;  %1906 = vst.msk [vmem:[#allocation2] sm:$0x1] %vm1630_vm15, %v1452_v7  ;;  %v3958_v57 = vrot.slane %v1452_v7, %v1459_v13 }
 0x36b   : > { %v1454_v38 = vmul.f32 1.442695, %v1453_v19  ;;  %v1462_v12 = vsub.f32 %v3727_v36, %v3958_v57  ;;  %v1463_v20 = vsub.f32 %v3743_v18, %v3958_v57  ;;  %v1464_v48 = vsub.f32 %v3704_v60, %v3958_v57 }
 0x36c   : > { %v1465_v29 = vsub.f32 %v3732_v27, %v3958_v57  ;;  %v1466_v53 = vsub.f32 %v3737_v42, %v3958_v57  ;;  %v1467_v33 = vsub.f32 %v3754_v31, %v3958_v57  ;;  %v1470_v36 = vsub.f32 %v3782_v59, %v3958_v57 }
 0x36d   : > { %2522 = vpow2.f32 %v1454_v38  ;;  %v1494_v10 = vmul.f32 1.442695, %v1462_v12  ;;  %v1496_v35 = vmul.f32 1.442695, %v1463_v20  ;;  %v1498_v43 = vmul.f32 1.442695, %v1464_v48 }
 0x36e   : > { %v1500_v40 = vmul.f32 1.442695, %v1465_v29  ;;  %v1468_v60 = vsub.f32 %v3713_v17, %v3958_v57  ;;  %v1502_v18 = vmul.f32 1.442695, %v1466_v53  ;;  %v1469_v42 = vsub.f32 %v3721_v3, %v3958_v57 }
 0x36f   : > { %2524 = vpow2.f32 %v1494_v10  ;;  %v1504_v39 = vmul.f32 1.442695, %v1467_v33  ;;  %v1472_v31 = vsub.f32 %v3765_v55, %v3958_v57  ;;  %v1510_v59 = vmul.f32 1.442695, %v1470_v36 }
 0x370   : > { %2526 = vpow2.f32 %v1496_v35  ;;  %v1506_v34 = vmul.f32 1.442695, %v1468_v60  ;;  %v1471_v17 = vsub.f32 %v3787_v9, %v3958_v57  ;;  %v1508_v6 = vmul.f32 1.442695, %v1469_v42 }
 0x371   : > { %2528 = vpow2.f32 %v1498_v43  ;;  %v1474_v51 = vsub.f32 %v3806_v1, %v3958_v57  ;;  %v1514_v3 = vmul.f32 1.442695, %v1472_v31  ;;  %v1473_v45 = vsub.f32 %v3775_v21, %v3958_v57 }
 0x372   : > { %2530 = vpow2.f32 %v1500_v40  ;;  %v1512_v55 = vmul.f32 1.442695, %v1471_v17  ;;  %v1476_v9 = vsub.f32 %v3794_v28, %v3958_v57  ;;  %v1475_v21 = vsub.f32 %v3827_v37, %v3958_v57 }
 0x373   : > { %2532 = vpow2.f32 %v1502_v18  ;;  %v1518_v52 = vmul.f32 1.442695, %v1474_v51  ;;  %v1516_v11 = vmul.f32 1.442695, %v1473_v45  ;;  %v1478_v7 = vsub.f32 %v3843_v24, %v3958_v57 }
 0x374   : > { %2534 = vpow2.f32 %v1504_v39  ;;  %v1522_v28 = vmul.f32 1.442695, %v1476_v9  ;;  %v1477_v37 = vsub.f32 %v3799_v62, %v3958_v57  ;;  %v1520_v53 = vmul.f32 1.442695, %v1475_v21 }
 0x375   : > { %2536 = vpow2.f32 %v1510_v59  ;;  %v1480_v24 = vsub.f32 %v3832_v58, %v3958_v57  ;;  %v1526_v35 = vmul.f32 1.442695, %v1478_v7  ;;  %v1479_v62 = vsub.f32 %v3848_v49, %v3958_v57 }
 0x376   : > { %2538 = vpow2.f32 %v1506_v34  ;;  %v1524_v18 = vmul.f32 1.442695, %v1477_v37  ;;  %v1482_v58 = vsub.f32 %v3886_v32, %v3958_v57  ;;  %v1481_v49 = vsub.f32 %v3838_v26, %v3958_v57 }
 0x377   : > { %v3976_v27 = vpop.eup %2522  ;;  %2540 = vpow2.f32 %v1508_v6  ;;  %v1530_v39 = vmul.f32 1.442695, %v1480_v24  ;;  %v1528_v51 = vmul.f32 1.442695, %v1479_v62  ;;  %v1484_v32 = vsub.f32 %v3858_v2, %v3958_v57 }
 0x378   : > { %1635 = vperm.xlu0 %2440, %v3976_v27   ;;  %2542 = vpow2.f32 %v1514_v3  ;;  %v1483_v26 = vsub.f32 %v3866_v44, %v3958_v57  ;;  %v1532_v9 = vmul.f32 1.442695, %v1481_v49  ;;  %v1486_v2 = vsub.f32 %v3911_v0, %v3958_v57 }
 0x379   : > { %v2525_v25 = vpop.eup %2524  ;;  %2544 = vpow2.f32 %v1512_v55  ;;  %v1485_v44 = vsub.f32 %v3881_v54, %v3958_v57  ;;  %v1488_v0 = vsub.f32 %v3899_v61, %v3958_v57  ;;  %v1487_v54 = vsub.f32 %v3893_v63, %v3958_v57 }
 0x37a   : > { %v2527_v30 = vpop.eup %2526  ;;  %v1560_v46 = vsel %vm1382_vm6, %v2525_v25, 0.0  ;;  %1677 = vperm.xlu1 %2441, %v2525_v25   ;;  %2546 = vpow2.f32 %v1518_v52  ;;  %v1534_v25 = vmul.f32 1.442695, %v1482_v58  ;;  %v1542_v7 = vmul.f32 1.442695, %v1486_v2 }
 0x37b   : > { %v2529_v8 = vpop.eup %2528  ;;  %v1561_v1 = vsel %vm1382_vm6, %v2527_v30, 0.0  ;;  %2548 = vpow2.f32 %v1516_v11  ;;  %v1536_v11 = vmul.f32 1.442695, %v1483_v26  ;;  %v1490_v61 = vsub.f32 %v3923_v41, %v3958_v57 }
 0x37c   : > { %v2531_v47 = vpop.eup %2530  ;;  %v1562_v15 = vadd.f32 %v1561_v1, %v1560_v46  ;;  %v1563_v14 = vsel %vm1382_vm6, %v2529_v8, 0.0  ;;  %2550 = vpow2.f32 %v1522_v28  ;;  %v1538_v1 = vmul.f32 1.442695, %v1484_v32 }
 0x37d   : > { %v2533_v56 = vpop.eup %2532  ;;  %v1565_v19 = vsel %vm1382_vm6, %v2531_v47, 0.0  ;;  %2552 = vpow2.f32 %v1520_v53  ;;  %v1489_v63 = vsub.f32 %v3906_v22, %v3958_v57  ;;  %v1492_v41 = vsub.f32 %v3940_v23, %v3958_v57 }
 0x37e   : > { %v1564_v16 = vadd.f32 %v1563_v14, %v1562_v15  ;;  %1682 = vperm.xlu1 %2441, %v2527_v30   ;;  %v2535_v38 = vpop.eup %2534  ;;  %v1567_v48 = vsel %vm1382_vm6, %v2533_v56, 0.0  ;;  %2554 = vpow2.f32 %v1526_v35  ;;  %v1491_v22 = vsub.f32 %v3928_v50, %v3958_v57 }
 0x37f   : > { %v2537_v20 = vpop.eup %2536  ;;  %v1569_v33 = vsel %vm1382_vm6, %v2535_v38, 0.0  ;;  %2556 = vpow2.f32 %v1524_v18  ;;  %v1554_v23 = vmul.f32 1.442695, %v1492_v41  ;;  %v4314_v41 = vld [vmem:[#allocation29_spill] sm:$0xff] }
 0x380   : > { %v1566_v12 = vadd.f32 %v1565_v19, %v1564_v16  ;;  %v2539_v29 = vpop.eup %2538  ;;  %1717 = vperm.xlu0 %2440, %v2537_v20   ;;  %v1575_v6 = vsel %vm1382_vm6, %v2537_v20, 0.0  ;;  %2558 = vpow2.f32 %v1530_v39  ;;  %v1548_v39 = vmul.f32 1.442695, %v1489_v63 }
 0x381   : > { %v4005_v43 = vpop.eup %2540  ;;  %v1571_v60 = vsel %vm1382_vm6, %v2539_v29, 0.0  ;;  %2560 = vpow2.f32 %v1528_v51  ;;  %v1493_v51 = vsub.f32 %v3950_v5, %v3958_v57  ;;  %v1552_v50 = vmul.f32 1.442695, %v1491_v22 }
 0x382   : > { %v1568_v10 = vadd.f32 %v1567_v48, %v1566_v12  ;;  %1687 = vperm.xlu1 %2441, %v2529_v8   ;;  %v2543_v36 = vpop.eup %2542  ;;  %v1573_v31 = vsel %vm1382_vm6, %v4005_v43, 0.0  ;;  %2562 = vpow2.f32 %v1534_v25  ;;  %v1540_v48 = vmul.f32 1.442695, %v1485_v44 }
 0x383   : > { %v4014_v59 = vpop.eup %2544  ;;  %v1579_v8 = vsel %vm1382_vm6, %v2543_v36, 0.0  ;;  %2564 = vpow2.f32 %v1532_v9 }
 0x384   : > { %v1570_v40 = vadd.f32 %v1569_v33, %v1568_v10  ;;  %1727 = vperm.xlu0 %2440, %v2543_v36   ;;  %v2547_v17 = vpop.eup %2546  ;;  %v1577_v30 = vsel %vm1382_vm6, %v4014_v59, 0.0  ;;  %2566 = vpow2.f32 %v1538_v1 }
 0x385   : > { %v4023_v45 = vpop.eup %2548  ;;  %v1583_v21 = vsel %vm1382_vm6, %v2547_v17, 0.0  ;;  %2568 = vpow2.f32 %v1536_v11 }
 0x386   : > { %v1572_v42 = vadd.f32 %v1571_v60, %v1570_v40  ;;  %1692 = vperm.xlu1 %2441, %v2531_v47   ;;  %v2551_v46 = vpop.eup %2550  ;;  %v1581_v47 = vsel %vm1382_vm6, %v4023_v45, 0.0  ;;  %2570 = vpow2.f32 %v1542_v7  ;;  %v1544_v40 = vmul.f32 1.442695, %v1487_v54 }
 0x387   : > { %v4032_v15 = vpop.eup %2552  ;;  %v1587_v20 = vsel %vm1382_vm6, %v2551_v46, 0.0  ;;  %2572 = vpow2.f32 %v1540_v48 }
 0x388   : > { %v1574_v34 = vadd.f32 %v1573_v31, %v1572_v42  ;;  %1737 = vperm.xlu0 %2440, %v2547_v17   ;;  %v1585_v28 = vsel %vm1382_vm6, %v4032_v15, 0.0 }
 0x38a   : > { %v1576_v3 = vadd.f32 %v1575_v6, %v1574_v34  ;;  %1697 = vperm.xlu1 %2441, %v2533_v56   ;;  %v2555_v56 = vpop.eup %2554 }
 0x38b   : > { %v2557_v19 = vpop.eup %2556  ;;  %v1591_v33 = vsel %vm1382_vm6, %v2555_v56, 0.0 }
 0x38c   : > { %v1578_v55 = vadd.f32 %v1577_v30, %v1576_v3  ;;  %1747 = vperm.xlu0 %2440, %v2551_v46   ;;  %v2559_v12 = vpop.eup %2558  ;;  %v1589_v53 = vsel %vm1382_vm6, %v2557_v19, 0.0  ;;  %v1556_v46 = vmul.f32 1.442695, %v1493_v51 }
 0x38d   : > { %v2561_v10 = vpop.eup %2560  ;;  %v1595_v58 = vsel %vm1382_vm6, %v2559_v12, 0.0 }
 0x38e   : > { %v1580_v52 = vadd.f32 %v1579_v8, %v1578_v55  ;;  %1702 = vperm.xlu1 %2441, %v2535_v38   ;;  %v2563_v35 = vpop.eup %2562  ;;  %v1593_v60 = vsel %vm1382_vm6, %v2561_v10, 0.0 }
 0x38f   : > { %v2565_v62 = vpop.eup %2564  ;;  %v1599_v49 = vsel %vm1382_vm6, %v2563_v35, 0.0 }
 0x390   : > { %v1582_v14 = vadd.f32 %v1581_v47, %v1580_v52  ;;  %1757 = vperm.xlu0 %2440, %v2555_v56   ;;  %v2567_v42 = vpop.eup %2566 }
 0x391   : > { %v2569_v34 = vpop.eup %2568  ;;  %v1603_v55 = vsel %vm1382_vm6, %v2567_v42, 0.0 }
 0x392   : > { %v1584_v16 = vadd.f32 %v1583_v21, %v1582_v14  ;;  %1707 = vperm.xlu1 %2441, %v2539_v29   ;;  %v1546_v29 = vmul.f32 1.442695, %v1488_v0  ;;  %v2571_v6 = vpop.eup %2570  ;;  %v1601_v32 = vsel %vm1382_vm6, %v2569_v34, 0.0 }
 0x393   : > { %v2573_v25 = vpop.eup %2572  ;;  %v1607_v52 = vsel %vm1382_vm6, %v2571_v6, 0.0 }
 0x394   : > { %v1586_v38 = vadd.f32 %v1585_v28, %v1584_v16  ;;  %1767 = vperm.xlu0 %2440, %v2559_v12   ;;  %2574 = vpow2.f32 %v1546_v29  ;;  %v1605_v5 = vsel %vm1382_vm6, %v2573_v25, 0.0 }
 0x395   : > { %2576 = vpow2.f32 %v1544_v40 }
 0x396   : > { %v1588_v37 = vadd.f32 %v1587_v20, %v1586_v38  ;;  %1712 = vperm.xlu1 %2441, %v4005_v43   ;;  %v1550_v43 = vmul.f32 1.442695, %v1490_v61 }
 0x398   : > { %v1590_v24 = vadd.f32 %v1589_v53, %v1588_v37  ;;  %1777 = vperm.xlu0 %2440, %v2563_v35   ;;  %2578 = vpow2.f32 %v1550_v43  ;;  %v1644_v43 = vunpack.c.h.bf16 %v4314_v41 }
 0x399   : > { %2580 = vpow2.f32 %v1548_v39 }
 0x39a   : > { %v1592_v36 = vadd.f32 %v1591_v33, %v1590_v24  ;;  %1722 = vperm.xlu1 %2441, %v4014_v59   ;;  %v1597_v59 = vsel %vm1382_vm6, %v2565_v62, 0.0  ;;  %2582 = vpow2.f32 %v1554_v23 }
 0x39b   : > { %2584 = vpow2.f32 %v1552_v50  ;;  %v4316_v50 = vld [vmem:[#allocation31_spill] sm:$0xff] }
 0x39c   : > { %v1594_v18 = vadd.f32 %v1593_v60, %v1592_v36  ;;  %1787 = vperm.xlu0 %2440, %v2567_v42   ;;  %2586 = vpow2.f32 %v1556_v46 }
 0x39e   : > { %v1596_v31 = vadd.f32 %v1595_v58, %v1594_v18  ;;  %1732 = vperm.xlu1 %2441, %v4023_v45   ;;  %v2575_v45 = vpop.eup %2574  ;;  %v4315_v58 = vld [vmem:[#allocation28_spill] sm:$0xff] }
 0x39f   : > { %v2577_v57 = vpop.eup %2576  ;;  %v1611_v56 = vsel %vm1382_vm6, %v2575_v45, 0.0  ;;  %v1645_v22 = vunpack.c.l.bf16 %v4315_v58 }
 0x3a0   : > { %v1598_v17 = vadd.f32 %v1597_v59, %v1596_v31  ;;  %1797 = vperm.xlu0 %2440, %v2571_v6   ;;  %v1609_v1 = vsel %vm1382_vm6, %v2577_v57, 0.0 }
 0x3a2   : > { %v1600_v3 = vadd.f32 %v1599_v49, %v1598_v17  ;;  %1742 = vperm.xlu1 %2441, %v4032_v15   ;;  %v2579_v9 = vpop.eup %2578 }
 0x3a3   : > { %v2581_v47 = vpop.eup %2580  ;;  %v1615_v0 = vsel %vm1382_vm6, %v2579_v9, 0.0 }
 0x3a4   : > { %v1602_v30 = vadd.f32 %v1601_v32, %v1600_v3  ;;  %1807 = vperm.xlu0 %2440, %v2575_v45   ;;  %v2583_v14 = vpop.eup %2582  ;;  %v1613_v44 = vsel %vm1382_vm6, %v2581_v47, 0.0  ;;  %v1647_v3 = vunpack.c.l.bf16 %v4316_v50 }
 0x3a5   : > { %v2585_v11 = vpop.eup %2584  ;;  %v1619_v12 = vsel %vm1382_vm6, %v2583_v14, 0.0 }
 0x3a6   : > { %v1604_v8 = vadd.f32 %v1603_v55, %v1602_v30  ;;  %1752 = vperm.xlu1 %2441, %v2557_v19   ;;  %v1617_v28 = vsel %vm1382_vm6, %v2585_v11, 0.0  ;;  %v2587_v19 = vpop.eup %2586  ;;  %v1648_v55 = vunpack.c.h.bf16 %v4316_v50  ;;  %v4323_v50 = vld [vmem:[#allocation36_spill] sm:$0xff] }
 0x3a7   : > { %v1621_v54 = vsel %vm1382_vm6, %v2587_v19, 0.0 }
 0x3a8   : > { %v1606_v26 = vadd.f32 %v1605_v5, %v1604_v8  ;;  %1817 = vperm.xlu0 %2440, %v2579_v9  }
 0x3aa   : > { %v1608_v2 = vadd.f32 %v1607_v52, %v1606_v26  ;;  %1762 = vperm.xlu1 %2441, %v2561_v10   ;;  %v1558_v10 = vld [vmem:[#allocation3] sm:$0x1] }
 0x3ab   : > { %v1559_v35 = vmul.f32 %v3976_v27, %v1558_v10 }
 0x3ac   : > { %v1610_v15 = vadd.f32 %v1609_v1, %v1608_v2  ;;  %1827 = vperm.xlu0 %2440, %v2583_v14   ;;  %v4318_v14 = vld [vmem:[#allocation33_spill] sm:$0xff] }
 0x3ae   : > { %v1612_v21 = vadd.f32 %v1611_v56, %v1610_v15  ;;  %1772 = vperm.xlu1 %2441, %v2565_v62   ;;  %v1643_v62 = vunpack.c.l.bf16 %v4314_v41  ;;  %v1651_v56 = vunpack.c.l.bf16 %v4318_v14  ;;  %v4321_v41 = vld [vmem:[#allocation34_spill] sm:$0xff] }
 0x3b0   : > { %v1614_v16 = vadd.f32 %v1613_v44, %v1612_v21 }
 0x3b2   : > { %v1616_v7 = vadd.f32 %v1615_v0, %v1614_v16  ;;  %1782 = vperm.xlu1 %2441, %v2569_v34   ;;  %v1646_v34 = vunpack.c.h.bf16 %v4315_v58  ;;  %v1652_v0 = vunpack.c.h.bf16 %v4318_v14 }
 0x3b4   : > { %v1618_v38 = vadd.f32 %v1617_v28, %v1616_v7  ;;  %v4319_v28 = vld [vmem:[#allocation32_spill] sm:$0xff] }
 0x3b6   : > { %v1620_v20 = vadd.f32 %v1619_v12, %v1618_v38  ;;  %1792 = vperm.xlu1 %2441, %v2573_v25  }
 0x3b8   : > { %v1622_v48 = vadd.f32 %v1621_v54, %v1620_v20 }
 0x3ba   : > { %v1623_v37 = vrot.slane %v1622_v48, 4  ;;  %1802 = vperm.xlu1 %2441, %v2577_v57   ;;  %v4317_v57 = vld [vmem:[#allocation30_spill] sm:$0xff] }
 0x3bb   : > { %v1649_v26 = vunpack.c.l.bf16 %v4317_v57 }
 0x3bc   : > { %v1624_v61 = vadd.f32 %v1623_v37, %v1622_v48  ;;  %v1654_v48 = vunpack.c.h.bf16 %v4319_v28 }
 0x3be   : > { %v1625_v29 = vrot.slane %v1624_v61, 2  ;;  %1812 = vperm.xlu1 %2441, %v2581_v47   ;;  %v1650_v47 = vunpack.c.h.bf16 %v4317_v57 }
 0x3c0   : > { %v1626_v53 = vadd.f32 %v1625_v29, %v1624_v61  ;;  %v4320_v29 = vld [vmem:[#allocation35_spill] sm:$0xff] }
 0x3c2   : > { %v1627_v24 = vrot.slane %v1626_v53, 1  ;;  %1822 = vperm.xlu1 %2441, %v2585_v11  }
 0x3c4   : > { %v1628_v33 = vadd.f32 %v1627_v24, %v1626_v53  ;;  %v1655_v53 = vunpack.c.l.bf16 %v4320_v29 }
 0x3c6   : > { %v1629_v63 = vadd.f32 %v1628_v33, %v1559_v35  ;;  %1832 = vperm.xlu1 %2441, %v2587_v19   ;;  %v1653_v19 = vunpack.c.l.bf16 %v4319_v28  ;;  %v4326_v28 = vld [vmem:[#allocation41_spill] sm:$0xff] }
 0x3c8   : > { %1631 = vst.msk [vmem:[#allocation3] sm:$0x1] %vm1630_vm15, %v1629_v63  ;;  %v1656_v63 = vunpack.c.h.bf16 %v4320_v29 }
 0x3f7   : > { %v4077_v36 = vpop.permute.xlu0 %1635 }
 0x3f9   : > { %v1678_v40 = vpop.permute.xlu1 %1677 }
 0x3fa   : > { %v1835_v42 = vmul.f32 %v1678_v40, %v1643_v62 }
 0x3fd   : > { %v1683_v60 = vpop.permute.xlu1 %1682 }
 0x3fe   : > { %v1836_v18 = vmul.f32 %v1683_v60, %v1644_v43  ;;  %v1657_v43 = vunpack.c.l.bf16 %v4321_v41 }
 0x3ff   : > { %v1718_v39 = vpop.permute.xlu0 %1717 }
 0x400   : > { %v1867_v27 = vadd.f32 %v1836_v18, %v1835_v42  ;;  %v1843_v11 = vmul.f32 %v1718_v39, %v1651_v56 }
 0x401   : > { %v1688_v31 = vpop.permute.xlu1 %1687 }
 0x402   : > { %v1837_v23 = vmul.f32 %v1688_v31, %v1645_v22  ;;  %v1658_v22 = vunpack.c.h.bf16 %v4321_v41  ;;  %v4322_v31 = vld [vmem:[#allocation37_spill] sm:$0xff]  ;;  %v4328_v41 = vld [vmem:[#allocation43_spill] sm:$0xff] }
 0x403   : > { %v1728_v17 = vpop.permute.xlu0 %1727 }
 0x404   : > { %v1868_v59 = vadd.f32 %v1867_v27, %v1837_v23  ;;  %v1845_v20 = vmul.f32 %v1728_v17, %v1653_v19  ;;  %v1659_v27 = vunpack.c.l.bf16 %v4322_v31  ;;  %v1667_v19 = vunpack.c.l.bf16 %v4326_v28 }
 0x405   : > { %v1693_v6 = vpop.permute.xlu1 %1692 }
 0x406   : > { %v1838_v49 = vmul.f32 %v1693_v6, %v1646_v34  ;;  %v1660_v6 = vunpack.c.h.bf16 %v4322_v31  ;;  %v4329_v31 = vld [vmem:[#allocation42_spill] sm:$0xff] }
 0x407   : > { %v1738_v30 = vpop.permute.xlu0 %1737 }
 0x408   : > { %v1869_v51 = vadd.f32 %v1868_v59, %v1838_v49  ;;  %v1847_v35 = vmul.f32 %v1738_v30, %v1655_v53 }
 0x409   : > { %v1698_v32 = vpop.permute.xlu1 %1697 }
 0x40a   : > { %v1839_v25 = vmul.f32 %v1698_v32, %v1647_v3  ;;  %v1661_v3 = vunpack.c.l.bf16 %v4323_v50 }
 0x40b   : > { %v1748_v9 = vpop.permute.xlu0 %1747 }
 0x40c   : > { %v1870_v45 = vadd.f32 %v1869_v51, %v1839_v25  ;;  %v1849_v42 = vmul.f32 %v1748_v9, %v1657_v43  ;;  %v1671_v43 = vunpack.c.l.bf16 %v4328_v41 }
 0x40d   : > { %v1703_v46 = vpop.permute.xlu1 %1702 }
 0x40e   : > { %v1840_v8 = vmul.f32 %v1703_v46, %v1648_v55  ;;  %v1662_v55 = vunpack.c.h.bf16 %v4323_v50 }
 0x40f   : > { %v1758_v44 = vpop.permute.xlu0 %1757 }
 0x410   : > { %v1871_v5 = vadd.f32 %v1870_v45, %v1840_v8  ;;  %v1851_v34 = vmul.f32 %v1758_v44, %v1659_v27  ;;  %v4324_v8 = vld [vmem:[#allocation39_spill] sm:$0xff]  ;;  %v1673_v27 = vunpack.c.l.bf16 %v4329_v31 }
 0x411   : > { %v1708_v52 = vpop.permute.xlu1 %1707 }
 0x412   : > { %v1841_v2 = vmul.f32 %v1708_v52, %v1649_v26 }
 0x413   : > { %v1768_v37 = vpop.permute.xlu0 %1767 }
 0x414   : > { %v1872_v1 = vadd.f32 %v1871_v5, %v1841_v2  ;;  %v1853_v30 = vmul.f32 %v1768_v37, %v1661_v3  ;;  %v1663_v5 = vunpack.c.l.bf16 %v4324_v8 }
 0x415   : > { %v1713_v15 = vpop.permute.xlu1 %1712 }
 0x416   : > { %v1842_v21 = vmul.f32 %v1713_v15, %v1650_v47  ;;  %v4325_v15 = vld [vmem:[#allocation38_spill] sm:$0xff] }
 0x417   : > { %v1778_v18 = vpop.permute.xlu0 %1777  ;;  %v1665_v14 = vunpack.c.l.bf16 %v4325_v15 }
 0x418   : > { %v1873_v16 = vadd.f32 %v1872_v1, %v1842_v21  ;;  %v1855_v52 = vmul.f32 %v1778_v18, %v1663_v5  ;;  %v1664_v1 = vunpack.c.h.bf16 %v4324_v8 }
 0x419   : > { %v1723_v7 = vpop.permute.xlu1 %1722 }
 0x41a   : > { %v1844_v38 = vmul.f32 %v1723_v7, %v1652_v0  ;;  %v1874_v12 = vadd.f32 %v1873_v16, %v1843_v11  ;;  %v1666_v16 = vunpack.c.h.bf16 %v4325_v15 }
 0x41b   : > { %v1788_v49 = vpop.permute.xlu0 %1787 }
 0x41c   : > { %v1875_v54 = vadd.f32 %v1874_v12, %v1844_v38  ;;  %v1857_v44 = vmul.f32 %v1788_v49, %v1665_v14 }
 0x41d   : > { %v1733_v61 = vpop.permute.xlu1 %1732 }
 0x41e   : > { %v1846_v10 = vmul.f32 %v1733_v61, %v1654_v48  ;;  %v1876_v24 = vadd.f32 %v1875_v54, %v1845_v20  ;;  %v1668_v48 = vunpack.c.h.bf16 %v4326_v28  ;;  %v4327_v61 = vld [vmem:[#allocation40_spill] sm:$0xff] }
 0x41f   : > { %v1798_v9 = vpop.permute.xlu0 %1797  ;;  %v1669_v29 = vunpack.c.l.bf16 %v4327_v61 }
 0x420   : > { %v1877_v33 = vadd.f32 %v1876_v24, %v1846_v10  ;;  %v1859_v20 = vmul.f32 %v1798_v9, %v1667_v19  ;;  %v1911_v9 = vld [vmem:[#allocation2] sm:$0x1] (!%p2167_p4) }
 0x421   : > { %v1743_v40 = vpop.permute.xlu1 %1742  ;;  %1912 = vst.msk [vmem:[%s435_s27] sm:$0x1] (!%p2167_p4), %vm1630_vm15, %v1911_v9 }
 0x422   : > { %v1848_v60 = vmul.f32 %v1743_v40, %v1656_v63  ;;  %v1878_v62 = vadd.f32 %v1877_v33, %v1847_v35  ;;  %v1670_v63 = vunpack.c.h.bf16 %v4327_v61 }
 0x423   : > { %v1808_v0 = vpop.permute.xlu0 %1807 }
 0x424   : > { %v1879_v58 = vadd.f32 %v1878_v62, %v1848_v60  ;;  %v1861_v35 = vmul.f32 %v1808_v0, %v1669_v29 }
 0x425   : > { %v1753_v39 = vpop.permute.xlu1 %1752 }
 0x426   : > { %v1850_v23 = vmul.f32 %v1753_v39, %v1658_v22  ;;  %v1880_v59 = vadd.f32 %v1879_v58, %v1849_v42  ;;  %v1672_v58 = vunpack.c.h.bf16 %v4328_v41 }
 0x427   : > { %v1818_v24 = vpop.permute.xlu0 %1817 }
 0x428   : > { %v1881_v17 = vadd.f32 %v1880_v59, %v1850_v23  ;;  %v1863_v18 = vmul.f32 %v1818_v24, %v1671_v43 }
 0x429   : > { %v1763_v51 = vpop.permute.xlu1 %1762 }
 0x42a   : > { %v1852_v32 = vmul.f32 %v1763_v51, %v1660_v6  ;;  %v1882_v25 = vadd.f32 %v1881_v17, %v1851_v34  ;;  %v1674_v6 = vunpack.c.h.bf16 %v4329_v31 }
 0x42b   : > { %v1828_v22 = vpop.permute.xlu0 %1827 }
 0x42c   : > { %v1883_v45 = vadd.f32 %v1882_v25, %v1852_v32  ;;  %v1865_v34 = vmul.f32 %v1828_v22, %v1673_v27 }
 0x42d   : > { %v1773_v46 = vpop.permute.xlu1 %1772 }
 0x42e   : > { %v1854_v57 = vmul.f32 %v1773_v46, %v1662_v55  ;;  %v1884_v26 = vadd.f32 %v1883_v45, %v1853_v30  ;;  %v1641_v45 = vrot.slane %v4077_v36, %v1459_v13  ;;  %v1632_v46 = vld [vmem:[#allocation4] sm:$0x1] }
 0x430   : > { %v1885_v2 = vadd.f32 %v1884_v26, %v1854_v57  ;;  %v1642_v5 = vmul.f32 %v1641_v45, %v1632_v46 }
 0x431   : > { %v1783_v47 = vpop.permute.xlu1 %1782 }
 0x432   : > { %v1856_v56 = vmul.f32 %v1783_v47, %v1664_v1  ;;  %v1886_v21 = vadd.f32 %v1885_v2, %v1855_v52  ;;  %v1913_v52 = vld [vmem:[#allocation3] sm:$0x1] (!%p2167_p4) }
 0x433   : > { %1914 = vst.msk [vmem:[%s438_s23] sm:$0x1] (!%p2167_p4), %vm1630_vm15, %v1913_v52 }
 0x434   : > { %v1887_v11 = vadd.f32 %v1886_v21, %v1856_v56 }
 0x435   : > { %v1793_v7 = vpop.permute.xlu1 %1792 }
 0x436   : > { %v1858_v38 = vmul.f32 %v1793_v7, %v1666_v16  ;;  %v1888_v12 = vadd.f32 %v1887_v11, %v1857_v44 }
 0x438   : > { %v1889_v54 = vadd.f32 %v1888_v12, %v1858_v38 }
 0x439   : > { %v1803_v37 = vpop.permute.xlu1 %1802 }
 0x43a   : > { %v1860_v53 = vmul.f32 %v1803_v37, %v1668_v48  ;;  %v1890_v10 = vadd.f32 %v1889_v54, %v1859_v20 }
 0x43c   : > { %v1891_v33 = vadd.f32 %v1890_v10, %v1860_v53 }
 0x43d   : > { %v1813_v40 = vpop.permute.xlu1 %1812 }
 0x43e   : > { %v1862_v60 = vmul.f32 %v1813_v40, %v1670_v63  ;;  %v1892_v62 = vadd.f32 %v1891_v33, %v1861_v35 }
 0x440   : > { %v1893_v42 = vadd.f32 %v1892_v62, %v1862_v60 }
 0x441   : > { %v1823_v39 = vpop.permute.xlu1 %1822 }
 0x442   : > { %v1864_v23 = vmul.f32 %v1823_v39, %v1672_v58  ;;  %v1894_v59 = vadd.f32 %v1893_v42, %v1863_v18 }
 0x444   : > { %v1895_v17 = vadd.f32 %v1894_v59, %v1864_v23 }
 0x445   : > { %v1833_v49 = vpop.permute.xlu1 %1832 }
 0x446   : > { %v1866_v51 = vmul.f32 %v1833_v49, %v1674_v6  ;;  %v1896_v50 = vadd.f32 %v1895_v17, %v1865_v34 }
 0x448   : > { %v1897_v3 = vadd.f32 %v1896_v50, %v1866_v51 }
 0x44a   : > { %v1898_v32 = vrot.slane %v1897_v3, 4 }
 0x44c   : > { %v1899_v25 = vadd.f32 %v1898_v32, %v1897_v3 }
 0x44e   : > { %v1900_v30 = vrot.slane %v1899_v25, 2 }
 0x450   : > { %v1901_v55 = vadd.f32 %v1900_v30, %v1899_v25 }
 0x452   : > { %v1902_v8 = vrot.slane %v1901_v55, 1  ;;  %1910 = sbr.rel (%p2167_p4) target bundleno = 1121 (0x461), region = 68 }
 0x454   : > { %v1903_v57 = vadd.f32 %v1902_v8, %v1901_v55 }
 0x456   : > { %v1904_v26 = vadd.f32 %v1903_v57, %v1642_v5 }
 0x458   : > { %1905 = vst [vmem:[#allocation4] sm:$0x1] %v1904_v26 }
 0x45f   : > { %v1915_v2 = vld [vmem:[#allocation4] sm:$0x1] }
 0x460   : > { %1916 = vst [vmem:[%s3126_s15] sm:$0x1] %v1915_v2 }
 0x461 PF: > { %s4330_s22 = sld [smem:[#allocation26_spill]]  ;;  %s2168_s14 = sshll.u32 %s2786_s7, 4 }
 0x462   : > { %s4331_s24 = sld [smem:[#allocation46_spill]]  ;;  %s1942_s28 = sshll.u32 %s3126_s15, 4  ;;  %s1943_s28 = int_to_ptr.vmem [resolvable:$true] %s1942_s28 }
 0x463   : > { %s1924_s27 = scalar_lea.sflag [#allocation10], %s422_s16  ;;  %s2672_s11 = scalar_lea.vmem %s1943_s28, 16 }
 0x464   : > { %p2673_p6 = scmp.ne.s32.totalorder %s1943_s28, %s2672_s11  ;;  %s2810_s12 = smov [#allocation14]  }
 0x465   : > { %s2676_s23 = sshll.u32 %s2810_s12, 4  ;;  %s2677_s23 = int_to_ptr.vmem [resolvable:$false] %s2676_s23 }
 0x466   : > { %s2678_s10 = scalar_lea.vmem %s2677_s23, 32  ;;  %p2679_p13 = scmp.lt.s32.totalorder %s1943_s28, %s2677_s23 }
 0x467   : > { %p4333_p10 = scmp.ne.s32.totalorder %s4330_s22, 0  ;;  %p2680_p7 = scmp.lt.s32.totalorder %s2678_s10, %s2672_s11 }
 0x468   : > { %s4332_s5 = smov %s4331_s24  ;;  %s4132_s6 = scalar_lea.hbm %s4331_s24, %s2168_s14 }
 0x469   : > { %p2674_p3 = pnand %p2673_p6, %p4333_p10  ;;  %p2681_p9 = por %p2680_p7, %p2679_p13 }
 0x46b   : > { %p2675_p5 = pneg %p2674_p3 }
 0x46d   : > { %p2682_p8 = pnand %p2681_p9, %p2675_p5 }
 0x46f   : > { %2685 = shalt.err (!%p2682_p8)
}
 0x470   : > { %s2686_s7 = scalar_lea.hbm %s4132_s6, 16  ;;  %s2690_s20 = scalar_lea.hbm %s4332_s5, 32 }
 0x471   : > { %p2687_p2 = scmp.ne.s32.totalorder %s4132_s6, %s2686_s7  ;;  %p2691_p11 = scmp.lt.u32.totalorder %s4132_s6, %s4332_s5 }
 0x472   : > { %p2692_p1 = scmp.lt.u32.totalorder %s2690_s20, %s2686_s7  ;;  %p2694_p6 = scmp.lt.u32.totalorder %s2686_s7, %s4132_s6 }
 0x473   : > { %p2688_p12 = pnand %p2687_p2, %p4333_p10 }
 0x474   : > { %p2693_p4 = por %p2692_p1, %p2691_p11 }
 0x475   : > { %p2689_p0 = pneg %p2688_p12 }
 0x476   : > { %p2695_p3 = por %p2694_p6, %p2693_p4 }
 0x478   : > { %p2696_p5 = pnand %p2695_p3, %p2689_p0 }
 0x47a   : > { %2699 = shalt.err (!%p2696_p5)
}
 0x47b   : > { %2325 = dma.vmem_to_hbm [thread:$0]  (%p4333_p10), %s1943_s28, 16, %s4132_s6, %s1924_s27  }
 0x47c PF: > { %s4334_s29 = sld [smem:[#allocation18_spill]]  ;;  %s4335_s30 = sld [smem:[#allocation27_spill]] }
 0x47d   : > { %p2342_p13 = scmp.ge.s32.totalorder %s2798_s25, 2 }
 0x482   : > { %s1966_s14 = sand.u32 1, %s4334_s29   ;;  %p4336_p7 = scmp.ne.s32.totalorder %s4335_s30, 0 }
 0x483   : > { %s1967_s13 = scalar_lea.sflag [#allocation10], %s1966_s14 }
 0x484   : > { %p2335_p9 = pnand %p2342_p13, %p4336_p7 }
 0x486   : > { %2753 = dma.done.wait (!%p2335_p9), %s1967_s13, 16  }
 0x487   : > { %2755 = vsyncadd (!%p2335_p9), %s1967_s13, 4294967280  ;;  %s31_s25 = sadd.s32 1, %s2798_s25   ;;  %s4337_s19 = sld [smem:[#allocation19_spill]] }
 0x488   : > { %p28_p8 = scmp.ge.s32.totalorder %s31_s25, 6   ;;  %s4338_s24 = sld [smem:[#allocation24_spill]] }
 0x489   : > { %s4339_s22 = sld [smem:[#allocation25_spill]]  ;;  %s4340_s6 = sld [smem:[#allocation20_spill]] }
 0x48a   : > { %s4341_s7 = sld [smem:[#allocation21_spill]]  ;;  %s4342_s23 = sld [smem:[#allocation22_spill]] }
 0x48b   : > { %s4343_s28 = sld [smem:[#allocation23_spill]]  ;;  %s4344_s17 = smov %s2762_s18 }
 0x48c   : > { %s4347_s20 = smov %s2774_s21  ;;  %s4348_s21 = smov %s2778_s0 }
 0x48d   : > { %s4345_s18 = smov %s4337_s19  ;;  %30 = sbr.rel (!%p28_p8) target bundleno = 15 (0xf), region = 133 }
 0x48e   : > { %s4346_s19 = smov %s4338_s24 }
 0x48f   : > { %s4349_s0 = smov %s4339_s22  ;;  %s4350_s22 = smov %s4340_s6 }
 0x491   : > { %s4351_s24 = smov %s4343_s28 }
 0x494   :  { %1971 = vsyncpa [#allocation9], 1 }
 0x495   :  { %1973 = vsyncpa [#allocation9 + $0x1], 1 }
 0x496   :  { %1974 = vsyncpa [#allocation12], 1 }
 0x497   :  { %1975 = vsyncpa [#allocation10], 1 }
 0x498   :  { %1977 = vsyncpa [#allocation10 + $0x1], 1 }

</bundles_post_ra>
